<compile_context>
chip_gen: v7x
topology: tpu7x:2x2x1
jax: 0.10.0
libtpu: 0.0.40
codegen_flags: <defaults>
</compile_context>

<pallas_src>
import functools
import math

import jax
import jax.numpy as jnp
from jax import lax
from jax.experimental import pallas as pl
from jax.experimental.pallas import tpu as pltpu

_PAD_L = 8  # sublane-aligned start column of the interior inside the scratch


def _erf(z):
    # Abramowitz & Stegun 7.1.26 rational approximation (|err| <= 1.5e-7).
    # Built only from exp/mul/add/where so it lowers cleanly in Mosaic.
    a1, a2, a3, a4, a5 = (0.254829592, -0.284496736, 1.421413741,
                          -1.453152027, 1.061405429)
    p = 0.3275911
    s = jnp.where(z >= 0.0, 1.0, -1.0)
    za = jnp.abs(z)
    t = 1.0 / (1.0 + p * za)
    poly = ((((a5 * t + a4) * t + a3) * t + a2) * t + a1) * t
    return s * (1.0 - poly * jnp.exp(-za * za))


def _gelu_exact(x):
    # Matches torch.nn.functional.gelu default (erf-based GELU).
    return 0.5 * x * (1.0 + _erf(x * (1.0 / math.sqrt(2.0))))


def _ffn_kernel(x_ref, w_in_ref, b_in_ref, w_dw_ref, b_dw_ref,
                w_out_ref, b_out_ref, o_ref, y1_pad_ref, *, H, W):
    HW = H * W
    hidden = w_in_ref.shape[1]

    # ---- project_in: 1x1 conv == one lane-dense GEMM -----------------------
    y1 = jnp.dot(x_ref[0], w_in_ref[...],
                 preferred_element_type=jnp.float32) + b_in_ref[...]   # (HW, hid)

    # ---- zero-pad (spatial pad=1) into VMEM scratch for the 3x3 conv -------
    # Scratch layout: (H+2, W+_PAD_L+1, hidden); interior lives at
    # rows 1..H, columns _PAD_L.._PAD_L+W-1 so the interior store is a
    # sublane-aligned full-tile store.  The zero fill provides the halo.
    y1_pad_ref[...] = jnp.zeros_like(y1_pad_ref)
    y1_pad_ref[1:H + 1, _PAD_L:_PAD_L + W, :] = y1.reshape(H, W, hidden)

    # ---- dense 3x3 conv as 9 shifted MXU GEMMs (no im2col / concat) --------
    acc = jnp.zeros((HW, hidden), jnp.float32)
    for kh in range(3):
        for kw in range(3):
            c0 = _PAD_L - 1 + kw
            win = y1_pad_ref[kh:kh + H, c0:c0 + W, :]          # (H, W, hidden)
            acc = acc + jnp.dot(win.reshape(HW, hidden),
                                w_dw_ref[kh * 3 + kw],
                                preferred_element_type=jnp.float32)
    acc = acc + b_dw_ref[...]

    # ---- GELU (exact / erf, matching F.gelu default) ------------------------
    g = _gelu_exact(acc)

    # ---- project_out: 1x1 conv == one GEMM ----------------------------------
    out = jnp.dot(g, w_out_ref[...],
                  preferred_element_type=jnp.float32) + b_out_ref[...]
    o_ref[0] = out.astype(o_ref.dtype)


def feed_forward(x_nchw, w_in, b_in, w_dw, b_dw, w_out, b_out):
    """Pallas equivalent of FeedForward.forward (bias=True).

    x_nchw : (N, dim, H, W)          float32
    w_in   : (hidden, dim, 1, 1)     PyTorch OIHW 1x1 conv weight
    b_in   : (hidden,)
    w_dw   : (hidden, hidden, 3, 3)  PyTorch OIHW 3x3 conv weight
    b_dw   : (hidden,)
    w_out  : (dim, hidden, 1, 1)
    b_out  : (dim,)
    returns: (N, dim, H, W)          float32
    """
    N, C, H, W = x_nchw.shape
    hidden = w_in.shape[0]
    dim_out = w_out.shape[0]
    HW = H * W
    assert W % 8 == 0, "W must be a multiple of 8 for layout-preserving reshapes"

    # Layout glue in plain JAX: NCHW -> (N, H*W, C), channels in lanes.
    x_flat = jnp.transpose(x_nchw, (0, 2, 3, 1)).reshape(N, HW, C)

    # Weights as GEMM operands (cin rows, cout lanes). Tap order = kh*3 + kw.
    w_in_m = jnp.transpose(w_in.reshape(hidden, C), (1, 0))                 # (C, hid)
    w_dw_m = jnp.transpose(w_dw, (2, 3, 1, 0)).reshape(9, hidden, hidden)   # (9, cin, cout)
    w_out_m = jnp.transpose(w_out.reshape(dim_out, hidden), (1, 0))         # (hid, dim)
    b_in_m = b_in.reshape(1, hidden)
    b_dw_m = b_dw.reshape(1, hidden)
    b_out_m = b_out.reshape(1, dim_out)

    kernel = functools.partial(_ffn_kernel, H=H, W=W)

    out_flat = pl.pallas_call(
        kernel,
        out_shape=jax.ShapeDtypeStruct((N, HW, dim_out), x_nchw.dtype),
        grid=(N,),
        in_specs=[
            pl.BlockSpec((1, HW, C), lambda n: (n, 0, 0)),
            pl.BlockSpec((C, hidden), lambda n: (0, 0)),
            pl.BlockSpec((1, hidden), lambda n: (0, 0)),
            pl.BlockSpec((9, hidden, hidden), lambda n: (0, 0, 0)),
            pl.BlockSpec((1, hidden), lambda n: (0, 0)),
            pl.BlockSpec((hidden, dim_out), lambda n: (0, 0)),
            pl.BlockSpec((1, dim_out), lambda n: (0, 0)),
        ],
        out_specs=pl.BlockSpec((1, HW, dim_out), lambda n: (n, 0, 0)),
        scratch_shapes=[pltpu.VMEM((H + 2, W + _PAD_L + 1, hidden), jnp.float32)],
        compiler_params=pltpu.CompilerParams(
            dimension_semantics=("parallel",)),
    )(x_flat, w_in_m, b_in_m, w_dw_m, b_dw_m, w_out_m, b_out_m)

    # (N, H*W, dim) -> NCHW
    return jnp.transpose(out_flat.reshape(N, H, W, dim_out), (0, 3, 1, 2))


if __name__ == "__main__":
    # Module config: dim=64, ffn_expansion_factor=2.0 -> hidden=128, bias=True.
    N, dim, H, W = 2, 64, 16, 16
    hidden = int(dim * 2.0)

    key = jax.random.PRNGKey(0)
    kx, k1, k2, k3, k4, k5, k6 = jax.random.split(key, 7)
    x = jax.random.normal(kx, (N, dim, H, W), dtype=jnp.float32)
    w_in = jax.random.normal(k1, (hidden, dim, 1, 1), dtype=jnp.float32) * 0.1
    b_in = jax.random.normal(k2, (hidden,), dtype=jnp.float32) * 0.1
    w_dw = jax.random.normal(k3, (hidden, hidden, 3, 3), dtype=jnp.float32) * 0.03
    b_dw = jax.random.normal(k4, (hidden,), dtype=jnp.float32) * 0.1
    w_out = jax.random.normal(k5, (dim, hidden, 1, 1), dtype=jnp.float32) * 0.1
    b_out = jax.random.normal(k6, (dim,), dtype=jnp.float32) * 0.1

    out = feed_forward(x, w_in, b_in, w_dw, b_dw, w_out, b_out)
    out = jax.block_until_ready(out)

    # Reference: XLA convs + exact GELU (same semantics as the PyTorch module).
    dn = ("NCHW", "OIHW", "NCHW")
    y = lax.conv_general_dilated(x, w_in, (1, 1), ((0, 0), (0, 0)),
                                 dimension_numbers=dn)
    y = y + b_in.reshape(1, hidden, 1, 1)
    y = lax.conv_general_dilated(y, w_dw, (1, 1), ((1, 1), (1, 1)),
                                 dimension_numbers=dn)
    y = y + b_dw.reshape(1, hidden, 1, 1)
    y = jax.nn.gelu(y, approximate=False)
    y = lax.conv_general_dilated(y, w_out, (1, 1), ((0, 0), (0, 0)),
                                 dimension_numbers=dn)
    ref = y + b_out.reshape(1, dim, 1, 1)

    assert out.shape == (N, dim, H, W)
    err = float(jnp.max(jnp.abs(out - ref)))
    assert jnp.allclose(out, ref, atol=1e-3, rtol=1e-3), f"max abs err {err}"

    print("KERNEL_OK")
</pallas_src>

<mosaic_0001>
module attributes {stable_mosaic.version = 11 : i64} {
  func.func @_ffn_kernel(%arg0: i32, %arg1: memref<1x256x64xf32, #tpu.memory_space<vmem>>, %arg2: memref<64x128xf32, #tpu.memory_space<vmem>>, %arg3: memref<1x128xf32, #tpu.memory_space<vmem>>, %arg4: memref<9x128x128xf32, #tpu.memory_space<vmem>>, %arg5: memref<1x128xf32, #tpu.memory_space<vmem>>, %arg6: memref<128x64xf32, #tpu.memory_space<vmem>>, %arg7: memref<1x64xf32, #tpu.memory_space<vmem>>, %arg8: memref<1x256x64xf32, #tpu.memory_space<vmem>>, %arg9: memref<18x25x128xf32, #tpu.memory_space<vmem>>) attributes {dimension_semantics = [#tpu.dimension_semantics<parallel>], iteration_bounds = array<i64: 2>, scalar_prefetch = 0 : i64, scratch_operands = 1 : i64, tpu.core_type = #tpu.core_type<tc>, window_params = [{transform_indices = @transform_0, window_bounds = array<i64: 1, 256, 64>}, {pipeline_mode = #tpu.pipeline_mode<synchronous>, transform_indices = @transform_1, window_bounds = array<i64: 64, 128>}, {pipeline_mode = #tpu.pipeline_mode<synchronous>, transform_indices = @transform_2, window_bounds = array<i64: 1, 128>}, {pipeline_mode = #tpu.pipeline_mode<synchronous>, transform_indices = @transform_3, window_bounds = array<i64: 9, 128, 128>}, {pipeline_mode = #tpu.pipeline_mode<synchronous>, transform_indices = @transform_4, window_bounds = array<i64: 1, 128>}, {pipeline_mode = #tpu.pipeline_mode<synchronous>, transform_indices = @transform_5, window_bounds = array<i64: 128, 64>}, {pipeline_mode = #tpu.pipeline_mode<synchronous>, transform_indices = @transform_6, window_bounds = array<i64: 1, 64>}, {transform_indices = @transform_7, window_bounds = array<i64: 1, 256, 64>}]} {
    %c0 = arith.constant 0 : index
    %c0_0 = arith.constant 0 : index
    %c0_1 = arith.constant 0 : index
    %0 = vector.load %arg1[%c0, %c0_0, %c0_1] : memref<1x256x64xf32, #tpu.memory_space<vmem>>, vector<1x256x64xf32>
    %1 = vector.shape_cast %0 : vector<1x256x64xf32> to vector<256x64xf32>
    %c0_2 = arith.constant 0 : index
    %c0_3 = arith.constant 0 : index
    %2 = vector.load %arg2[%c0_2, %c0_3] : memref<64x128xf32, #tpu.memory_space<vmem>>, vector<64x128xf32>
    %cst = arith.constant dense<0.000000e+00> : vector<256x128xf32>
    %3 = tpu.matmul %1, %2, %cst {dimension_numbers = #tpu.dot_dimension_numbers<[1], [0], [0], [1], [0, 0, 1, 1], [], []>} : vector<256x64xf32>, vector<64x128xf32>, vector<256x128xf32> -> vector<256x128xf32>
    %c0_4 = arith.constant 0 : index
    %c0_5 = arith.constant 0 : index
    %4 = vector.load %arg3[%c0_4, %c0_5] : memref<1x128xf32, #tpu.memory_space<vmem>>, vector<1x128xf32>
    %5 = vector.broadcast %4 : vector<1x128xf32> to vector<256x128xf32>
    %6 = arith.addf %3, %5 : vector<256x128xf32>
    %cst_6 = arith.constant 0.000000e+00 : f32
    %7 = vector.broadcast %cst_6 : f32 to vector<18x25x128xf32>
    %c0_7 = arith.constant 0 : index
    %c0_8 = arith.constant 0 : index
    %c0_9 = arith.constant 0 : index
    %8 = vector.load %arg9[%c0_7, %c0_8, %c0_9] : memref<18x25x128xf32, #tpu.memory_space<vmem>>, vector<18x25x128xf32>
    tpu.vector_store %arg9[%c0_7, %c0_8, %c0_9], %7 {strides = array<i32>} : memref<18x25x128xf32, #tpu.memory_space<vmem>>, vector<18x25x128xf32>,
    %9 = vector.shape_cast %6 : vector<256x128xf32> to vector<16x16x128xf32>
    %c1 = arith.constant 1 : index
    %c8 = arith.constant 8 : index
    %c0_10 = arith.constant 0 : index
    %10 = vector.load %arg9[%c1, %c8, %c0_10] : memref<18x25x128xf32, #tpu.memory_space<vmem>>, vector<16x16x128xf32>
    tpu.vector_store %arg9[%c1, %c8, %c0_10], %9 {strides = array<i32>} : memref<18x25x128xf32, #tpu.memory_space<vmem>>, vector<16x16x128xf32>,
    %cst_11 = arith.constant 0.000000e+00 : f32
    %11 = vector.broadcast %cst_11 : f32 to vector<256x128xf32>
    %c0_12 = arith.constant 0 : index
    %c7 = arith.constant 7 : index
    %c0_13 = arith.constant 0 : index
    %12 = vector.load %arg9[%c0_12, %c7, %c0_13] : memref<18x25x128xf32, #tpu.memory_space<vmem>>, vector<16x16x128xf32>
    %13 = vector.shape_cast %12 : vector<16x16x128xf32> to vector<256x128xf32>
    %c0_14 = arith.constant 0 : index
    %c0_15 = arith.constant 0 : index
    %c0_16 = arith.constant 0 : index
    %14 = vector.load %arg4[%c0_14, %c0_15, %c0_16] : memref<9x128x128xf32, #tpu.memory_space<vmem>>, vector<1x128x128xf32>
    %15 = vector.shape_cast %14 : vector<1x128x128xf32> to vector<128x128xf32>
    %cst_17 = arith.constant dense<0.000000e+00> : vector<256x128xf32>
    %16 = tpu.matmul %13, %15, %cst_17 {dimension_numbers = #tpu.dot_dimension_numbers<[1], [0], [0], [1], [0, 0, 1, 1], [], []>} : vector<256x128xf32>, vector<128x128xf32>, vector<256x128xf32> -> vector<256x128xf32>
    %17 = arith.addf %11, %16 : vector<256x128xf32>
    %c0_18 = arith.constant 0 : index
    %c8_19 = arith.constant 8 : index
    %c0_20 = arith.constant 0 : index
    %18 = vector.load %arg9[%c0_18, %c8_19, %c0_20] : memref<18x25x128xf32, #tpu.memory_space<vmem>>, vector<16x16x128xf32>
    %19 = vector.shape_cast %18 : vector<16x16x128xf32> to vector<256x128xf32>
    %c1_21 = arith.constant 1 : index
    %c0_22 = arith.constant 0 : index
    %c0_23 = arith.constant 0 : index
    %20 = vector.load %arg4[%c1_21, %c0_22, %c0_23] : memref<9x128x128xf32, #tpu.memory_space<vmem>>, vector<1x128x128xf32>
    %21 = vector.shape_cast %20 : vector<1x128x128xf32> to vector<128x128xf32>
    %cst_24 = arith.constant dense<0.000000e+00> : vector<256x128xf32>
    %22 = tpu.matmul %19, %21, %cst_24 {dimension_numbers = #tpu.dot_dimension_numbers<[1], [0], [0], [1], [0, 0, 1, 1], [], []>} : vector<256x128xf32>, vector<128x128xf32>, vector<256x128xf32> -> vector<256x128xf32>
    %23 = arith.addf %17, %22 : vector<256x128xf32>
    %c0_25 = arith.constant 0 : index
    %c9 = arith.constant 9 : index
    %c0_26 = arith.constant 0 : index
    %24 = vector.load %arg9[%c0_25, %c9, %c0_26] : memref<18x25x128xf32, #tpu.memory_space<vmem>>, vector<16x16x128xf32>
    %25 = vector.shape_cast %24 : vector<16x16x128xf32> to vector<256x128xf32>
    %c2 = arith.constant 2 : index
    %c0_27 = arith.constant 0 : index
    %c0_28 = arith.constant 0 : index
    %26 = vector.load %arg4[%c2, %c0_27, %c0_28] : memref<9x128x128xf32, #tpu.memory_space<vmem>>, vector<1x128x128xf32>
    %27 = vector.shape_cast %26 : vector<1x128x128xf32> to vector<128x128xf32>
    %cst_29 = arith.constant dense<0.000000e+00> : vector<256x128xf32>
    %28 = tpu.matmul %25, %27, %cst_29 {dimension_numbers = #tpu.dot_dimension_numbers<[1], [0], [0], [1], [0, 0, 1, 1], [], []>} : vector<256x128xf32>, vector<128x128xf32>, vector<256x128xf32> -> vector<256x128xf32>
    %29 = arith.addf %23, %28 : vector<256x128xf32>
    %c1_30 = arith.constant 1 : index
    %c7_31 = arith.constant 7 : index
    %c0_32 = arith.constant 0 : index
    %30 = vector.load %arg9[%c1_30, %c7_31, %c0_32] : memref<18x25x128xf32, #tpu.memory_space<vmem>>, vector<16x16x128xf32>
    %31 = vector.shape_cast %30 : vector<16x16x128xf32> to vector<256x128xf32>
    %c3 = arith.constant 3 : index
    %c0_33 = arith.constant 0 : index
    %c0_34 = arith.constant 0 : index
    %32 = vector.load %arg4[%c3, %c0_33, %c0_34] : memref<9x128x128xf32, #tpu.memory_space<vmem>>, vector<1x128x128xf32>
    %33 = vector.shape_cast %32 : vector<1x128x128xf32> to vector<128x128xf32>
    %cst_35 = arith.constant dense<0.000000e+00> : vector<256x128xf32>
    %34 = tpu.matmul %31, %33, %cst_35 {dimension_numbers = #tpu.dot_dimension_numbers<[1], [0], [0], [1], [0, 0, 1, 1], [], []>} : vector<256x128xf32>, vector<128x128xf32>, vector<256x128xf32> -> vector<256x128xf32>
    %35 = arith.addf %29, %34 : vector<256x128xf32>
    %c1_36 = arith.constant 1 : index
    %c8_37 = arith.constant 8 : index
    %c0_38 = arith.constant 0 : index
    %36 = vector.load %arg9[%c1_36, %c8_37, %c0_38] : memref<18x25x128xf32, #tpu.memory_space<vmem>>, vector<16x16x128xf32>
    %37 = vector.shape_cast %36 : vector<16x16x128xf32> to vector<256x128xf32>
    %c4 = arith.constant 4 : index
    %c0_39 = arith.constant 0 : index
    %c0_40 = arith.constant 0 : index
    %38 = vector.load %arg4[%c4, %c0_39, %c0_40] : memref<9x128x128xf32, #tpu.memory_space<vmem>>, vector<1x128x128xf32>
    %39 = vector.shape_cast %38 : vector<1x128x128xf32> to vector<128x128xf32>
    %cst_41 = arith.constant dense<0.000000e+00> : vector<256x128xf32>
    %40 = tpu.matmul %37, %39, %cst_41 {dimension_numbers = #tpu.dot_dimension_numbers<[1], [0], [0], [1], [0, 0, 1, 1], [], []>} : vector<256x128xf32>, vector<128x128xf32>, vector<256x128xf32> -> vector<256x128xf32>
    %41 = arith.addf %35, %40 : vector<256x128xf32>
    %c1_42 = arith.constant 1 : index
    %c9_43 = arith.constant 9 : index
    %c0_44 = arith.constant 0 : index
    %42 = vector.load %arg9[%c1_42, %c9_43, %c0_44] : memref<18x25x128xf32, #tpu.memory_space<vmem>>, vector<16x16x128xf32>
    %43 = vector.shape_cast %42 : vector<16x16x128xf32> to vector<256x128xf32>
    %c5 = arith.constant 5 : index
    %c0_45 = arith.constant 0 : index
    %c0_46 = arith.constant 0 : index
    %44 = vector.load %arg4[%c5, %c0_45, %c0_46] : memref<9x128x128xf32, #tpu.memory_space<vmem>>, vector<1x128x128xf32>
    %45 = vector.shape_cast %44 : vector<1x128x128xf32> to vector<128x128xf32>
    %cst_47 = arith.constant dense<0.000000e+00> : vector<256x128xf32>
    %46 = tpu.matmul %43, %45, %cst_47 {dimension_numbers = #tpu.dot_dimension_numbers<[1], [0], [0], [1], [0, 0, 1, 1], [], []>} : vector<256x128xf32>, vector<128x128xf32>, vector<256x128xf32> -> vector<256x128xf32>
    %47 = arith.addf %41, %46 : vector<256x128xf32>
    %c2_48 = arith.constant 2 : index
    %c7_49 = arith.constant 7 : index
    %c0_50 = arith.constant 0 : index
    %48 = vector.load %arg9[%c2_48, %c7_49, %c0_50] : memref<18x25x128xf32, #tpu.memory_space<vmem>>, vector<16x16x128xf32>
    %49 = vector.shape_cast %48 : vector<16x16x128xf32> to vector<256x128xf32>
    %c6 = arith.constant 6 : index
    %c0_51 = arith.constant 0 : index
    %c0_52 = arith.constant 0 : index
    %50 = vector.load %arg4[%c6, %c0_51, %c0_52] : memref<9x128x128xf32, #tpu.memory_space<vmem>>, vector<1x128x128xf32>
    %51 = vector.shape_cast %50 : vector<1x128x128xf32> to vector<128x128xf32>
    %cst_53 = arith.constant dense<0.000000e+00> : vector<256x128xf32>
    %52 = tpu.matmul %49, %51, %cst_53 {dimension_numbers = #tpu.dot_dimension_numbers<[1], [0], [0], [1], [0, 0, 1, 1], [], []>} : vector<256x128xf32>, vector<128x128xf32>, vector<256x128xf32> -> vector<256x128xf32>
    %53 = arith.addf %47, %52 : vector<256x128xf32>
    %c2_54 = arith.constant 2 : index
    %c8_55 = arith.constant 8 : index
    %c0_56 = arith.constant 0 : index
    %54 = vector.load %arg9[%c2_54, %c8_55, %c0_56] : memref<18x25x128xf32, #tpu.memory_space<vmem>>, vector<16x16x128xf32>
    %55 = vector.shape_cast %54 : vector<16x16x128xf32> to vector<256x128xf32>
    %c7_57 = arith.constant 7 : index
    %c0_58 = arith.constant 0 : index
    %c0_59 = arith.constant 0 : index
    %56 = vector.load %arg4[%c7_57, %c0_58, %c0_59] : memref<9x128x128xf32, #tpu.memory_space<vmem>>, vector<1x128x128xf32>
    %57 = vector.shape_cast %56 : vector<1x128x128xf32> to vector<128x128xf32>
    %cst_60 = arith.constant dense<0.000000e+00> : vector<256x128xf32>
    %58 = tpu.matmul %55, %57, %cst_60 {dimension_numbers = #tpu.dot_dimension_numbers<[1], [0], [0], [1], [0, 0, 1, 1], [], []>} : vector<256x128xf32>, vector<128x128xf32>, vector<256x128xf32> -> vector<256x128xf32>
    %59 = arith.addf %53, %58 : vector<256x128xf32>
    %c2_61 = arith.constant 2 : index
    %c9_62 = arith.constant 9 : index
    %c0_63 = arith.constant 0 : index
    %60 = vector.load %arg9[%c2_61, %c9_62, %c0_63] : memref<18x25x128xf32, #tpu.memory_space<vmem>>, vector<16x16x128xf32>
    %61 = vector.shape_cast %60 : vector<16x16x128xf32> to vector<256x128xf32>
    %c8_64 = arith.constant 8 : index
    %c0_65 = arith.constant 0 : index
    %c0_66 = arith.constant 0 : index
    %62 = vector.load %arg4[%c8_64, %c0_65, %c0_66] : memref<9x128x128xf32, #tpu.memory_space<vmem>>, vector<1x128x128xf32>
    %63 = vector.shape_cast %62 : vector<1x128x128xf32> to vector<128x128xf32>
    %cst_67 = arith.constant dense<0.000000e+00> : vector<256x128xf32>
    %64 = tpu.matmul %61, %63, %cst_67 {dimension_numbers = #tpu.dot_dimension_numbers<[1], [0], [0], [1], [0, 0, 1, 1], [], []>} : vector<256x128xf32>, vector<128x128xf32>, vector<256x128xf32> -> vector<256x128xf32>
    %65 = arith.addf %59, %64 : vector<256x128xf32>
    %c0_68 = arith.constant 0 : index
    %c0_69 = arith.constant 0 : index
    %66 = vector.load %arg5[%c0_68, %c0_69] : memref<1x128xf32, #tpu.memory_space<vmem>>, vector<1x128xf32>
    %67 = vector.broadcast %66 : vector<1x128xf32> to vector<256x128xf32>
    %68 = arith.addf %65, %67 : vector<256x128xf32>
    %cst_70 = arith.constant 5.000000e-01 : f32
    %69 = vector.broadcast %cst_70 : f32 to vector<256x128xf32>
    %70 = arith.mulf %69, %68 : vector<256x128xf32>
    %cst_71 = arith.constant 0.707106769 : f32
    %71 = vector.broadcast %cst_71 : f32 to vector<256x128xf32>
    %72 = arith.mulf %68, %71 : vector<256x128xf32>
    %cst_72 = arith.constant 0.000000e+00 : f32
    %73 = vector.broadcast %cst_72 : f32 to vector<256x128xf32>
    %74 = arith.cmpf oge, %72, %73 : vector<256x128xf32>
    %cst_73 = arith.constant 1.000000e+00 : f32
    %cst_74 = arith.constant -1.000000e+00 : f32
    %75 = vector.broadcast %cst_73 : f32 to vector<256x128xf32>
    %76 = vector.broadcast %cst_74 : f32 to vector<256x128xf32>
    %77 = arith.select %74, %75, %76 : vector<256x128xi1>, vector<256x128xf32>
    %78 = math.absf %72 : vector<256x128xf32>
    %cst_75 = arith.constant 0.327591091 : f32
    %79 = vector.broadcast %cst_75 : f32 to vector<256x128xf32>
    %80 = arith.mulf %79, %78 : vector<256x128xf32>
    %cst_76 = arith.constant 1.000000e+00 : f32
    %81 = vector.broadcast %cst_76 : f32 to vector<256x128xf32>
    %82 = arith.addf %81, %80 : vector<256x128xf32>
    %cst_77 = arith.constant 1.000000e+00 : f32
    %83 = vector.broadcast %cst_77 : f32 to vector<256x128xf32>
    %84 = arith.divf %83, %82 : vector<256x128xf32>
    %cst_78 = arith.constant 1.06140542 : f32
    %85 = vector.broadcast %cst_78 : f32 to vector<256x128xf32>
    %86 = arith.mulf %85, %84 : vector<256x128xf32>
    %cst_79 = arith.constant -1.45315206 : f32
    %87 = vector.broadcast %cst_79 : f32 to vector<256x128xf32>
    %88 = arith.addf %86, %87 : vector<256x128xf32>
    %89 = arith.mulf %88, %84 : vector<256x128xf32>
    %cst_80 = arith.constant 1.42141378 : f32
    %90 = vector.broadcast %cst_80 : f32 to vector<256x128xf32>
    %91 = arith.addf %89, %90 : vector<256x128xf32>
    %92 = arith.mulf %91, %84 : vector<256x128xf32>
    %cst_81 = arith.constant -0.284496725 : f32
    %93 = vector.broadcast %cst_81 : f32 to vector<256x128xf32>
    %94 = arith.addf %92, %93 : vector<256x128xf32>
    %95 = arith.mulf %94, %84 : vector<256x128xf32>
    %cst_82 = arith.constant 0.254829586 : f32
    %96 = vector.broadcast %cst_82 : f32 to vector<256x128xf32>
    %97 = arith.addf %95, %96 : vector<256x128xf32>
    %98 = arith.mulf %97, %84 : vector<256x128xf32>
    %cst_83 = arith.constant 0.000000e+00 : f32
    %99 = vector.broadcast %cst_83 : f32 to vector<256x128xf32>
    %100 = arith.subf %99, %78 : vector<256x128xf32>
    %101 = arith.mulf %100, %78 : vector<256x128xf32>
    %102 = math.exp %101 : vector<256x128xf32>
    %103 = arith.mulf %98, %102 : vector<256x128xf32>
    %cst_84 = arith.constant 1.000000e+00 : f32
    %104 = vector.broadcast %cst_84 : f32 to vector<256x128xf32>
    %105 = arith.subf %104, %103 : vector<256x128xf32>
    %106 = arith.mulf %77, %105 : vector<256x128xf32>
    %cst_85 = arith.constant 1.000000e+00 : f32
    %107 = vector.broadcast %cst_85 : f32 to vector<256x128xf32>
    %108 = arith.addf %107, %106 : vector<256x128xf32>
    %109 = arith.mulf %70, %108 : vector<256x128xf32>
    %c0_86 = arith.constant 0 : index
    %c0_87 = arith.constant 0 : index
    %110 = vector.load %arg6[%c0_86, %c0_87] : memref<128x64xf32, #tpu.memory_space<vmem>>, vector<128x64xf32>
    %cst_88 = arith.constant dense<0.000000e+00> : vector<256x64xf32>
    %111 = tpu.matmul %109, %110, %cst_88 {dimension_numbers = #tpu.dot_dimension_numbers<[1], [0], [0], [1], [0, 0, 1, 1], [], []>} : vector<256x128xf32>, vector<128x64xf32>, vector<256x64xf32> -> vector<256x64xf32>
    %c0_89 = arith.constant 0 : index
    %c0_90 = arith.constant 0 : index
    %112 = vector.load %arg7[%c0_89, %c0_90] : memref<1x64xf32, #tpu.memory_space<vmem>>, vector<1x64xf32>
    %113 = vector.broadcast %112 : vector<1x64xf32> to vector<256x64xf32>
    %114 = arith.addf %111, %113 : vector<256x64xf32>
    %c0_91 = arith.constant 0 : index
    %c0_92 = arith.constant 0 : index
    %c0_93 = arith.constant 0 : index
    %115 = vector.load %arg8[%c0_91, %c0_92, %c0_93] : memref<1x256x64xf32, #tpu.memory_space<vmem>>, vector<1x256x64xf32>
    %116 = vector.shape_cast %115 : vector<1x256x64xf32> to vector<256x64xf32>
    %117 = vector.shape_cast %114 : vector<256x64xf32> to vector<1x256x64xf32>
    tpu.vector_store %arg8[%c0_91, %c0_92, %c0_93], %117 {strides = array<i32>} : memref<1x256x64xf32, #tpu.memory_space<vmem>>, vector<1x256x64xf32>,
    return
  }
  func.func @transform_0(%arg0: i32) -> (i32, i32, i32) {
    %c0_i32 = arith.constant 0 : i32
    %c0_i32_0 = arith.constant 0 : i32
    %c0_i32_1 = arith.constant 0 : i32
    return %arg0, %c0_i32, %c0_i32_0 : i32, i32, i32
  }
  func.func @transform_1(%arg0: i32) -> (i32, i32) {
    %c0_i32 = arith.constant 0 : i32
    %c0_i32_0 = arith.constant 0 : i32
    %c0_i32_1 = arith.constant 0 : i32
    return %c0_i32, %c0_i32_0 : i32, i32
  }
  func.func @transform_2(%arg0: i32) -> (i32, i32) {
    %c0_i32 = arith.constant 0 : i32
    %c0_i32_0 = arith.constant 0 : i32
    %c0_i32_1 = arith.constant 0 : i32
    return %c0_i32, %c0_i32_0 : i32, i32
  }
  func.func @transform_3(%arg0: i32) -> (i32, i32, i32) {
    %c0_i32 = arith.constant 0 : i32
    %c0_i32_0 = arith.constant 0 : i32
    %c0_i32_1 = arith.constant 0 : i32
    %c0_i32_2 = arith.constant 0 : i32
    return %c0_i32, %c0_i32_0, %c0_i32_1 : i32, i32, i32
  }
  func.func @transform_4(%arg0: i32) -> (i32, i32) {
    %c0_i32 = arith.constant 0 : i32
    %c0_i32_0 = arith.constant 0 : i32
    %c0_i32_1 = arith.constant 0 : i32
    return %c0_i32, %c0_i32_0 : i32, i32
  }
  func.func @transform_5(%arg0: i32) -> (i32, i32) {
    %c0_i32 = arith.constant 0 : i32
    %c0_i32_0 = arith.constant 0 : i32
    %c0_i32_1 = arith.constant 0 : i32
    return %c0_i32, %c0_i32_0 : i32, i32
  }
  func.func @transform_6(%arg0: i32) -> (i32, i32) {
    %c0_i32 = arith.constant 0 : i32
    %c0_i32_0 = arith.constant 0 : i32
    %c0_i32_1 = arith.constant 0 : i32
    return %c0_i32, %c0_i32_0 : i32, i32
  }
  func.func @transform_7(%arg0: i32) -> (i32, i32, i32) {
    %c0_i32 = arith.constant 0 : i32
    %c0_i32_0 = arith.constant 0 : i32
    %c0_i32_1 = arith.constant 0 : i32
    return %arg0, %c0_i32, %c0_i32_0 : i32, i32, i32
  }
}

</mosaic_0001>

<bundles_post_ra>
// kernel: tpu_custom_call.1
= control target key start
LH: loop header
LB: loop body
LE: loop exit
PB: predicated region body
PF: predicated region fallthrough
CT: control target
= control target key end

     0   :  { %12 = vsyncpa [#allocation4], 0  ;;  %s6988_s24 = smov 0   ;;  %s8765_s0 = inlined_call_operand.vmem [shape: f32[2,256,64], index: 0, kind: input, shape index: {}]   ;;  %s8766_s1 = inlined_call_operand.vmem [shape: f32[64,128], index: 1, kind: input, shape index: {}]   ;;  %s8767_s2 = inlined_call_operand.vmem [shape: f32[1,128], index: 2, kind: input, shape index: {}]   ;;  %s8768_s3 = inlined_call_operand.hbm [shape: f32[9,128,128], index: 3, kind: input, shape index: {}]   ;;  %s8769_s4 = inlined_call_operand.vmem [shape: f32[1,128], index: 4, kind: input, shape index: {}]   ;;  %s8770_s5 = inlined_call_operand.vmem [shape: f32[128,64], index: 5, kind: input, shape index: {}]   ;;  %s8771_s6 = inlined_call_operand.vmem [shape: f32[1,64], index: 6, kind: input, shape index: {}]   ;;  %s8772_s7 = inlined_call_operand.vmem [shape: f32[2,256,64], index: 7, kind: output, shape index: {}]  }
   0x1 LB: > { %s6994_s25 = sadd.s32 4294967295, %s6941_s24   ;;  %p4710_p0 = scmp.ge.s32.totalorder %s6941_s24, 1  ;;  %s6941_s24 = sphi %s6988_s24, %s18_s24  }
   0x2   : > { %p201_p1 = scmp.lt.s32.totalorder %s6941_s24, 3  ;;  %s6943_s26 = smov [#allocation3]  }
   0x3   : > { %s219_s27 = sshll.u32 %s6943_s26, 4  ;;  %p8773_p3 = scmp.eq.s32.totalorder %s6994_s25, 0  ;;  %s220_s27 = int_to_ptr.vmem [resolvable:$true] %s219_s27 }
   0x4   : > { %p6998_p2 = pnand %p4710_p0, %p201_p1  ;;  %s6903_s9 = scalar_lea.hbm %s8768_s3, 18432 }
   0x5   : > { %p6904_p6 = scmp.ne.s32.totalorder %s8768_s3, %s6903_s9  ;;  %p6910_p10 = scmp.lt.u32.totalorder %s6903_s9, %s8768_s3 }
   0x6   : > { %s8837_s28 = scalar_select %p6998_p2, 1, 0 }
   0x7   : > { %p6754_p4 = pneg %p6998_p2 }
   0x9   : > { %p7007_p5 = pnand %p8773_p3, %p6754_p4 }
   0xb   : > { %p6905_p7 = pneg %p7007_p5 }
   0xd   : > { %p6906_p8 = pnand %p6905_p7, %p6904_p6 }
   0xf   : > { %p6907_p9 = pneg %p6906_p8 }
  0x11   : > { %p6912_p11 = pnand %p6910_p10, %p6907_p9 }
  0x13   : > { %6915 = shalt.err (!%p6912_p11)
}
  0x14   : > { %s6916_s14 = scalar_lea.vmem %s220_s27, 18432  ;;  %p6924_p1 = scmp.lt.s32.totalorder %s220_s27, %s220_s27 }
  0x15   : > { %p6917_p12 = scmp.ne.s32.totalorder %s220_s27, %s6916_s14  ;;  %p6925_p4 = scmp.lt.s32.totalorder %s6916_s14, %s6916_s14 }
  0x17   : > { %p6919_p13 = pnand %p6917_p12, %p6905_p7  ;;  %p6926_p3 = por %p6925_p4, %p6924_p1 }
  0x19   : > { %p6920_p0 = pneg %p6919_p13 }
  0x1b   : > { %p6927_p2 = pnand %p6926_p3, %p6920_p0 }
  0x1d   : > { %6930 = shalt.err (!%p6927_p2)
}
  0x1e   : > { %s6944_s15 = smov 128   ;;  %s6945_s16 = smov 8  }
  0x1f   : > { %6757 = dma.hbm_to_vmem [thread:$0]  (!%p7007_p5), %s8768_s3, 18432, %s220_s27, [#allocation4], %s6944_s15, %s6944_s15, %s6945_s16  }
  0x20   : > { %p8839_p6 = scmp.ne.s32.totalorder %s8837_s28, 0 }
  0x22   : > { %252 = sbr.rel (%p8839_p6) target bundleno = 1213 (0x4bd), region = 48 }
  0x29   : > { %p8840_p8 = scmp.eq.s32.totalorder %s6994_s25, 0 }
  0x2b   : > { %6936 = dma.done.wait (%p8840_p8), [#allocation4], 18432   ;;  %p8841_p7 = pmov %p8840_p8 }
  0x2c   : > { %p284_p2 = scmp.lt.s32.totalorder %s6994_s25, 1  ;;  %v326_v0 = vld [vmem:[%s8766_s1] sm:$0xff]  ;;  %v327_v1 = vld [vmem:[%s8766_s1 + $0x8] sm:$0xff]  ;;  %v328_v2 = vld [vmem:[%s8766_s1 + $0x10] sm:$0xff]  ;;  %vm341_vm0 = vcmask 523264  }
  0x2d   : > { %6938 = vsyncadd (%p8841_p7), [#allocation4], 4294948864  ;;  %v6142_v3 = vpack.c.bf16 %v327_v1, %v326_v0  ;;  %v329_v4 = vld [vmem:[%s8766_s1 + $0x18] sm:$0xff]  ;;  %v330_v6 = vld [vmem:[%s8766_s1 + $0x20] sm:$0xff] }
  0x2e   : > { %s9004_s25 = smov (!%p284_p2, %s6994_s25), 1  ;;  %v6146_v5 = vpack.c.bf16 %v329_v4, %v328_v2  ;;  %v331_v7 = vld [vmem:[%s8766_s1 + $0x28] sm:$0xff]  ;;  %v332_v10 = vld [vmem:[%s8766_s1 + $0x30] sm:$0xff]  ;;  %v333_v11 = vld [vmem:[%s8766_s1 + $0x38] sm:$0xff] }
  0x2f   : > { %s4756_s19 = sshll.u32 %s9004_s25, 8  ;;  %6143 = vmatprep.subr.bf16.mxu0 %v6142_v3  ;;  %v6150_v9 = vpack.c.bf16 %v331_v7, %v330_v6  ;;  %v6154_v12 = vpack.c.bf16 %v333_v11, %v332_v10  ;;  %v849_v13 = vld [vmem:[#allocation3 + $0x80] sm:$0xff]  ;;  %v850_v14 = vld [vmem:[#allocation3 + $0x88] sm:$0xff]  ;;  %v851_v18 = vld [vmem:[#allocation3 + $0x90] sm:$0xff] }
  0x30   : > { %s7043_s22 = scalar_lea.vmem %s8765_s0, %s4756_s19  ;;  %6145 = vmatpush3.bf16.msra.mxu0 %v6142_v3  ;;  %v6158_v15 = vpack.c.bf16 %v850_v14, %v849_v13  ;;  %v1654_v16 = vld [vmem:[#allocation3 + $0x180] sm:$0xff]  ;;  %v1655_v17 = vld [vmem:[#allocation3 + $0x188] sm:$0xff]  ;;  %v852_v20 = vld [vmem:[#allocation3 + $0x98] sm:$0xff]  ;;  %s8664_s21 = scalar_lea.vmem %s8772_s7, %s4756_s19 }
  0x31   : > { %v294_v8 = vld [vmem:[%s7043_s22] sm:$0xff]  ;;  %6147 = vmatprep.subr.bf16.mxu0 %v6146_v5  ;;  %v6254_v19 = vpack.c.bf16 %v1655_v17, %v1654_v16  ;;  %v1656_v21 = vld [vmem:[#allocation3 + $0x190] sm:$0xff]  ;;  %v1657_v22 = vld [vmem:[#allocation3 + $0x198] sm:$0xff]  ;;  %v6162_v27 = vpack.c.bf16 %v852_v20, %v851_v18 }
  0x32   : > { %5294 = vmatprep.mubr.msk.f32.mxu0 %vm341_vm0, %v294_v8  ;;  %v295_v23 = vld [vmem:[%s7043_s22 + $0x8] sm:$0xff]  ;;  %v6258_v24 = vpack.c.bf16 %v1657_v22, %v1656_v21  ;;  %v1658_v25 = vld [vmem:[#allocation3 + $0x1a0] sm:$0xff]  ;;  %v296_v26 = vld [vmem:[%s7043_s22 + $0x10] sm:$0xff]  ;;  %v6946_v22 = vmov 0.0  }
  0x33   : > { %6255 = vmatprep.subr.bf16.mxu1 %v6254_v19  ;;  %v1659_v28 = vld [vmem:[#allocation3 + $0x1a8] sm:$0xff]  ;;  %v853_v29 = vld [vmem:[#allocation3 + $0xa0] sm:$0xff]  ;;  %v297_v32 = vld [vmem:[%s7043_s22 + $0x18] sm:$0xff]  ;;  %663 = vst [vmem:[#allocation2] sm:$0xff] %v6946_v22 }
  0x34   : > { %6149 = vmatpush3.bf16.msra.mxu0 %v6146_v5  ;;  %6257 = vmatpush3.bf16.msra.mxu1 %v6254_v19  ;;  %v854_v30 = vld [vmem:[#allocation3 + $0xa8] sm:$0xff]  ;;  %v6262_v31 = vpack.c.bf16 %v1659_v28, %v1658_v25  ;;  %v1660_v33 = vld [vmem:[#allocation3 + $0x1b0] sm:$0xff]  ;;  %v1661_v34 = vld [vmem:[#allocation3 + $0x1b8] sm:$0xff]  ;;  %664 = vst [vmem:[#allocation2 + $0x8] sm:$0xff] %v6946_v22 }
  0x35   : > { %6151 = vmatprep.subr.bf16.mxu0 %v6150_v9  ;;  %6259 = vmatprep.subr.bf16.mxu1 %v6258_v24  ;;  %v298_v35 = vld [vmem:[%s7043_s22 + $0x20] sm:$0xff]  ;;  %v6166_v36 = vpack.c.bf16 %v854_v30, %v853_v29  ;;  %v855_v37 = vld [vmem:[#allocation3 + $0xb0] sm:$0xff]  ;;  %v856_v38 = vld [vmem:[#allocation3 + $0xb8] sm:$0xff]  ;;  %v6266_v39 = vpack.c.bf16 %v1661_v34, %v1660_v33  ;;  %665 = vst [vmem:[#allocation2 + $0x10] sm:$0xff] %v6946_v22 }
  0x36   : > { %v299_v40 = vld [vmem:[%s7043_s22 + $0x28] sm:$0xff]  ;;  %v1662_v41 = vld [vmem:[#allocation3 + $0x1c0] sm:$0xff]  ;;  %v300_v43 = vld [vmem:[%s7043_s22 + $0x30] sm:$0xff]  ;;  %v6170_v44 = vpack.c.bf16 %v856_v38, %v855_v37  ;;  %666 = vst [vmem:[#allocation2 + $0x18] sm:$0x1] %v6946_v22 }
  0x37   : > { %v1663_v42 = vld [vmem:[#allocation3 + $0x1c8] sm:$0xff]  ;;  %v857_v45 = vld [vmem:[#allocation3 + $0xc0] sm:$0xff]  ;;  %v301_v48 = vld [vmem:[%s7043_s22 + $0x38] sm:$0xff]  ;;  %667 = vst [vmem:[#allocation2 + $0x20] sm:$0xff] %v6946_v22 }
  0x38   : > { %6153 = vmatpush3.bf16.msra.mxu0 %v6150_v9  ;;  %6261 = vmatpush3.bf16.msra.mxu1 %v6258_v24  ;;  %v858_v46 = vld [vmem:[#allocation3 + $0xc8] sm:$0xff]  ;;  %v6270_v47 = vpack.c.bf16 %v1663_v42, %v1662_v41  ;;  %v302_v49 = vld [vmem:[%s7043_s22 + $0x40] sm:$0xff]  ;;  %v859_v51 = vld [vmem:[#allocation3 + $0xd0] sm:$0xff]  ;;  %670 = vst [vmem:[#allocation2 + $0x38] sm:$0x1] %v6946_v22 }
  0x39   : > { %6155 = vmatprep.subr.bf16.mxu0 %v6154_v12  ;;  %6263 = vmatprep.subr.bf16.mxu1 %v6262_v31  ;;  %v6174_v50 = vpack.c.bf16 %v858_v46, %v857_v45  ;;  %v860_v52 = vld [vmem:[#allocation3 + $0xd8] sm:$0xff]  ;;  %v303_v53 = vld [vmem:[%s7043_s22 + $0x48] sm:$0xff]  ;;  %v304_v54 = vld [vmem:[%s7043_s22 + $0x50] sm:$0xff]  ;;  %671 = vst [vmem:[#allocation2 + $0x40] sm:$0xff] %v6946_v22 }
  0x3a   : > { %v6178_v55 = vpack.c.bf16 %v860_v52, %v859_v51  ;;  %v305_v56 = vld [vmem:[%s7043_s22 + $0x58] sm:$0xff]  ;;  %v306_v57 = vld [vmem:[%s7043_s22 + $0x60] sm:$0xff]  ;;  %v307_v58 = vld [vmem:[%s7043_s22 + $0x68] sm:$0xff]  ;;  %674 = vst [vmem:[#allocation2 + $0x58] sm:$0x1] %v6946_v22 }
  0x3b   : > { %v308_v59 = vld [vmem:[%s7043_s22 + $0x70] sm:$0xff]  ;;  %v309_v60 = vld [vmem:[%s7043_s22 + $0x78] sm:$0xff]  ;;  %v310_v61 = vld [vmem:[%s7043_s22 + $0x80] sm:$0xff]  ;;  %675 = vst [vmem:[#allocation2 + $0x60] sm:$0xff] %v6946_v22 }
  0x3c   : > { %6157 = vmatpush3.bf16.msra.mxu0 %v6154_v12  ;;  %6265 = vmatpush3.bf16.msra.mxu1 %v6262_v31  ;;  %v311_v62 = vld [vmem:[%s7043_s22 + $0x88] sm:$0xff]  ;;  %v312_v63 = vld [vmem:[%s7043_s22 + $0x90] sm:$0xff]  ;;  %v313_v0 = vld [vmem:[%s7043_s22 + $0x98] sm:$0xff]  ;;  %678 = vst [vmem:[#allocation2 + $0x78] sm:$0x1] %v6946_v22 }
  0x3d   : > { %6159 = vmatprep.subr.bf16.mxu0 %v6158_v15  ;;  %6267 = vmatprep.subr.bf16.mxu1 %v6266_v39  ;;  %v314_v1 = vld [vmem:[%s7043_s22 + $0xa0] sm:$0xff]  ;;  %v315_v2 = vld [vmem:[%s7043_s22 + $0xa8] sm:$0xff]  ;;  %v316_v3 = vld [vmem:[%s7043_s22 + $0xb0] sm:$0xff]  ;;  %679 = vst [vmem:[#allocation2 + $0x80] sm:$0xff] %v6946_v22 }
  0x3e   : > { %v317_v4 = vld [vmem:[%s7043_s22 + $0xb8] sm:$0xff]  ;;  %v318_v5 = vld [vmem:[%s7043_s22 + $0xc0] sm:$0xff]  ;;  %v319_v6 = vld [vmem:[%s7043_s22 + $0xc8] sm:$0xff]  ;;  %682 = vst [vmem:[#allocation2 + $0x98] sm:$0x1] %v6946_v22 }
  0x3f   : > { %5295 = vmatmul.mubr.msk.f32.vlgmr.msra.gmra.mrb[0].mxu0 %vm341_vm0, %v295_v23  ;;  %v320_v7 = vld [vmem:[%s7043_s22 + $0xd0] sm:$0xff]  ;;  %v321_v8 = vld [vmem:[%s7043_s22 + $0xd8] sm:$0xff]  ;;  %v322_v9 = vld [vmem:[%s7043_s22 + $0xe0] sm:$0xff]  ;;  %683 = vst [vmem:[#allocation2 + $0xa0] sm:$0xff] %v6946_v22 }
  0x40   : > { %5297 = vmatprep.mubr.msk.f32.mxu0 %vm341_vm0, %v296_v26  ;;  %6161 = vmatpush3.bf16.msra.mxu0 %v6158_v15  ;;  %v323_v10 = vld [vmem:[%s7043_s22 + $0xe8] sm:$0xff]  ;;  %v324_v11 = vld [vmem:[%s7043_s22 + $0xf0] sm:$0xff]  ;;  %v325_v12 = vld [vmem:[%s7043_s22 + $0xf8] sm:$0xff]  ;;  %686 = vst [vmem:[#allocation2 + $0xb8] sm:$0x1] %v6946_v22 }
  0x41   : > { %6163 = vmatprep.subr.bf16.mxu0 %v6162_v27  ;;  %6269 = vmatpush3.bf16.msra.mxu1 %v6266_v39  ;;  %v861_v13 = vld [vmem:[#allocation3 + $0xe0] sm:$0xff]  ;;  %v862_v14 = vld [vmem:[#allocation3 + $0xe8] sm:$0xff]  ;;  %v863_v16 = vld [vmem:[#allocation3 + $0xf0] sm:$0xff]  ;;  %687 = vst [vmem:[#allocation2 + $0xc0] sm:$0xff] %v6946_v22 }
  0x42   : > { %6271 = vmatprep.subr.bf16.mxu1 %v6270_v47  ;;  %v6182_v15 = vpack.c.bf16 %v862_v14, %v861_v13  ;;  %v864_v17 = vld [vmem:[#allocation3 + $0xf8] sm:$0xff]  ;;  %v1664_v19 = vld [vmem:[#allocation3 + $0x1d0] sm:$0xff]  ;;  %690 = vst [vmem:[#allocation2 + $0xd8] sm:$0x1] %v6946_v22  ;;  %691 = vst [vmem:[#allocation2 + $0xe0] sm:$0xff] %v6946_v22 }
  0x43   : > { %5298 = vmatmul.mubr.msk.f32.gmra.mrb[2].mxu0 %vm341_vm0, %v297_v32  ;;  %v6186_v18 = vpack.c.bf16 %v864_v17, %v863_v16  ;;  %v1665_v20 = vld [vmem:[#allocation3 + $0x1d8] sm:$0xff]  ;;  %694 = vst [vmem:[#allocation2 + $0xf8] sm:$0x1] %v6946_v22  ;;  %695 = vst [vmem:[#allocation2 + $0x100] sm:$0xff] %v6946_v22  ;;  %v1666_v23 = vld [vmem:[#allocation3 + $0x1e0] sm:$0xff] }
  0x44   : > { %5300 = vmatprep.mubr.msk.f32.mxu0 %vm341_vm0, %v298_v35  ;;  %6165 = vmatpush3.bf16.msra.mxu0 %v6162_v27  ;;  %v6274_v21 = vpack.c.bf16 %v1665_v20, %v1664_v19  ;;  %698 = vst [vmem:[#allocation2 + $0x118] sm:$0x1] %v6946_v22  ;;  %699 = vst [vmem:[#allocation2 + $0x120] sm:$0xff] %v6946_v22  ;;  %v1667_v24 = vld [vmem:[#allocation3 + $0x1e8] sm:$0xff]  ;;  %v1668_v26 = vld [vmem:[#allocation3 + $0x1f0] sm:$0xff] }
  0x45   : > { %6167 = vmatprep.subr.bf16.mxu0 %v6166_v36  ;;  %6273 = vmatpush3.bf16.msra.mxu1 %v6270_v47  ;;  %702 = vst [vmem:[#allocation2 + $0x138] sm:$0x1] %v6946_v22  ;;  %703 = vst [vmem:[#allocation2 + $0x140] sm:$0xff] %v6946_v22  ;;  %v6278_v25 = vpack.c.bf16 %v1667_v24, %v1666_v23  ;;  %v1669_v27 = vld [vmem:[#allocation3 + $0x1f8] sm:$0xff]  ;;  %v1960_v29 = vld [vmem:[#allocation3 + $0x200] sm:$0xff] }
  0x46   : > { %706 = vst [vmem:[#allocation2 + $0x158] sm:$0x1] %v6946_v22  ;;  %707 = vst [vmem:[#allocation2 + $0x160] sm:$0xff] %v6946_v22  ;;  %6275 = vmatprep.subr.bf16.mxu1 %v6274_v21  ;;  %v6282_v28 = vpack.c.bf16 %v1669_v27, %v1668_v26  ;;  %v1961_v30 = vld [vmem:[#allocation3 + $0x208] sm:$0xff]  ;;  %v800_v32 = vld [vmem:[#allocation3] sm:$0xff] }
  0x47   : > { %5301 = vmatmul.mubr.msk.f32.gmra.mrb[4].mxu0 %vm341_vm0, %v299_v40  ;;  %710 = vst [vmem:[#allocation2 + $0x178] sm:$0x1] %v6946_v22  ;;  %711 = vst [vmem:[#allocation2 + $0x180] sm:$0xff] %v6946_v22  ;;  %v7133_v31 = vpack.c.bf16 %v1961_v30, %v1960_v29  ;;  %v801_v33 = vld [vmem:[#allocation3 + $0x8] sm:$0xff]  ;;  %v802_v35 = vld [vmem:[#allocation3 + $0x10] sm:$0xff] }
  0x48   : > { %5303 = vmatprep.mubr.msk.f32.mxu0 %vm341_vm0, %v300_v43  ;;  %6169 = vmatpush3.bf16.msra.mxu0 %v6166_v36  ;;  %714 = vst [vmem:[#allocation2 + $0x198] sm:$0x1] %v6946_v22  ;;  %715 = vst [vmem:[#allocation2 + $0x1a0] sm:$0xff] %v6946_v22  ;;  %v6190_v34 = vpack.c.bf16 %v801_v33, %v800_v32  ;;  %v803_v36 = vld [vmem:[#allocation3 + $0x18] sm:$0xff]  ;;  %v804_v38 = vld [vmem:[#allocation3 + $0x20] sm:$0xff] }
  0x49   : > { %6171 = vmatprep.subr.bf16.mxu0 %v6170_v44  ;;  %718 = vst [vmem:[#allocation2 + $0x1b8] sm:$0x1] %v6946_v22  ;;  %719 = vst [vmem:[#allocation2 + $0x1c0] sm:$0xff] %v6946_v22  ;;  %6277 = vmatpush3.bf16.msra.mxu1 %v6274_v21  ;;  %v6194_v37 = vpack.c.bf16 %v803_v36, %v802_v35  ;;  %v805_v39 = vld [vmem:[#allocation3 + $0x28] sm:$0xff]  ;;  %v806_v41 = vld [vmem:[#allocation3 + $0x30] sm:$0xff] }
  0x4a   : > { %722 = vst [vmem:[#allocation2 + $0x1d8] sm:$0x1] %v6946_v22  ;;  %723 = vst [vmem:[#allocation2 + $0x1e0] sm:$0xff] %v6946_v22  ;;  %6279 = vmatprep.subr.bf16.mxu1 %v6278_v25  ;;  %v6198_v40 = vpack.c.bf16 %v805_v39, %v804_v38  ;;  %v807_v42 = vld [vmem:[#allocation3 + $0x38] sm:$0xff]  ;;  %v809_v45 = vld [vmem:[#allocation3 + $0x48] sm:$0xff] }
  0x4b   : > { %5304 = vmatmul.mubr.msk.f32.gmra.mrb[6].mxu0 %vm341_vm0, %v301_v48  ;;  %726 = vst [vmem:[#allocation2 + $0x1f8] sm:$0x1] %v6946_v22  ;;  %727 = vst [vmem:[#allocation2 + $0x200] sm:$0xff] %v6946_v22  ;;  %v6202_v43 = vpack.c.bf16 %v807_v42, %v806_v41  ;;  %v810_v47 = vld [vmem:[#allocation3 + $0x50] sm:$0xff]  ;;  %v811_v48 = vld [vmem:[#allocation3 + $0x58] sm:$0xff] }
  0x4c   : > { %5306 = vmatprep.mubr.msk.f32.mxu0 %vm341_vm0, %v302_v49  ;;  %6173 = vmatpush3.bf16.msra.mxu0 %v6170_v44  ;;  %730 = vst [vmem:[#allocation2 + $0x218] sm:$0x1] %v6946_v22  ;;  %731 = vst [vmem:[#allocation2 + $0x220] sm:$0xff] %v6946_v22  ;;  %v808_v44 = vld [vmem:[#allocation3 + $0x40] sm:$0xff]  ;;  %v6210_v49 = vpack.c.bf16 %v811_v48, %v810_v47  ;;  %v813_v51 = vld [vmem:[#allocation3 + $0x68] sm:$0xff] }
  0x4d   : > { %6175 = vmatprep.subr.bf16.mxu0 %v6174_v50  ;;  %732 = vst [vmem:[#allocation2 + $0x228] sm:$0xff] %v6946_v22  ;;  %733 = vst [vmem:[#allocation2 + $0x230] sm:$0xff] %v6946_v22  ;;  %6281 = vmatpush3.bf16.msra.mxu1 %v6278_v25  ;;  %v6206_v46 = vpack.c.bf16 %v809_v45, %v808_v44  ;;  %v1964_v14 = vld [vmem:[#allocation3 + $0x220] sm:$0xff]  ;;  %v1966_v23 = vld [vmem:[#allocation3 + $0x230] sm:$0xff] }
  0x4e   : > { %734 = vst [vmem:[#allocation2 + $0x238] sm:$0x1] %v6946_v22  ;;  %6283 = vmatprep.subr.bf16.mxu1 %v6282_v28  ;;  %v1967_v24 = vld [vmem:[#allocation3 + $0x238] sm:$0xff]  ;;  %v1968_v32 = vld [vmem:[#allocation3 + $0x240] sm:$0xff]  ;;  %v1969_v33 = vld [vmem:[#allocation3 + $0x248] sm:$0xff] }
  0x4f   : > { %5307 = vmatmul.mubr.msk.f32.gmra.mrb[8].mxu0 %vm341_vm0, %v303_v53  ;;  %v814_v53 = vld [vmem:[#allocation3 + $0x70] sm:$0xff]  ;;  %v6298_v30 = vpack.c.bf16 %v1967_v24, %v1966_v23  ;;  %v6302_v39 = vpack.c.bf16 %v1969_v33, %v1968_v32  ;;  %v1971_v42 = vld [vmem:[#allocation3 + $0x258] sm:$0xff] }
  0x50   : > { %5309 = vmatprep.mubr.msk.f32.mxu0 %vm341_vm0, %v304_v54  ;;  %6177 = vmatpush3.bf16.msra.mxu0 %v6174_v50  ;;  %v812_v50 = vld [vmem:[#allocation3 + $0x60] sm:$0xff]  ;;  %v815_v54 = vld [vmem:[#allocation3 + $0x78] sm:$0xff]  ;;  %v1970_v41 = vld [vmem:[#allocation3 + $0x250] sm:$0xff] }
  0x51   : > { %6179 = vmatprep.subr.bf16.mxu0 %v6178_v55  ;;  %6285 = vmatpush3.bf16.msra.mxu1 %v6282_v28  ;;  %v6214_v52 = vpack.c.bf16 %v813_v51, %v812_v50  ;;  %v6306_v48 = vpack.c.bf16 %v1971_v42, %v1970_v41  ;;  %v1972_v50 = vld [vmem:[#allocation3 + $0x260] sm:$0xff]  ;;  %v1973_v51 = vld [vmem:[#allocation3 + $0x268] sm:$0xff] }
  0x52   : > { %6287 = vmatprep.subr.bf16.mxu1 %v7133_v31 }
  0x53   : > { %5310 = vmatmul.mubr.msk.f32.gmra.mrb[10].mxu0 %vm341_vm0, %v305_v56  ;;  %v1348_v56 = vld [vmem:[#allocation3 + $0x100] sm:$0xff] }
  0x54   : > { %5312 = vmatprep.mubr.msk.f32.mxu0 %vm341_vm0, %v306_v57  ;;  %6181 = vmatpush3.bf16.msra.mxu0 %v6178_v55  ;;  %v6218_v55 = vpack.c.bf16 %v815_v54, %v814_v53  ;;  %v1349_v57 = vld [vmem:[#allocation3 + $0x108] sm:$0xff] }
  0x55   : > { %6183 = vmatprep.subr.bf16.mxu0 %v6182_v15 }
  0x57   : > { %5313 = vmatmul.mubr.msk.f32.gmra.mrb[12].mxu0 %vm341_vm0, %v307_v58  ;;  %v7136_v58 = vpack.c.bf16 %v1349_v57, %v1348_v56  ;;  %v6310_v57 = vpack.c.bf16 %v1973_v51, %v1972_v50 }
  0x58   : > { %5315 = vmatprep.mubr.msk.f32.mxu0 %vm341_vm0, %v308_v59  ;;  %6185 = vmatpush3.bf16.msra.mxu0 %v6182_v15  ;;  %v7142_v59 = vld [vmem:[%s8767_s2] ss:$0 sm:$0xff]  ;;  %v1965_v15 = vld [vmem:[#allocation3 + $0x228] sm:$0xff] }
  0x59   : > { %6187 = vmatprep.subr.bf16.mxu0 %v6186_v18  ;;  %v6294_v21 = vpack.c.bf16 %v1965_v15, %v1964_v14  ;;  %v2266_v14 = vld [vmem:[#allocation3 + $0x280] sm:$0xff]  ;;  %v2267_v15 = vld [vmem:[#allocation3 + $0x288] sm:$0xff] }
  0x5b   : > { %5316 = vmatmul.mubr.msk.f32.gmra.mrb[14].mxu0 %vm341_vm0, %v309_v60 }
  0x5c   : > { %5318 = vmatprep.mubr.msk.f32.mxu0 %vm341_vm0, %v310_v61  ;;  %6189 = vmatpush3.bf16.msra.mxu0 %v6186_v18 }
  0x5d   : > { %6191 = vmatprep.subr.bf16.mxu0 %v6190_v34 }
  0x5f   : > { %5319 = vmatmul.mubr.msk.f32.gmra.mrb[16].mxu0 %vm341_vm0, %v311_v62 }
  0x60   : > { %5321 = vmatprep.mubr.msk.f32.mxu0 %vm341_vm0, %v312_v63 }
  0x63   : > { %5322 = vmatmul.mubr.msk.f32.gmra.mrb[18].mxu0 %vm341_vm0, %v313_v0 }
  0x64   : > { %5324 = vmatprep.mubr.msk.f32.mxu0 %vm341_vm0, %v314_v1 }
  0x67   : > { %5325 = vmatmul.mubr.msk.f32.gmra.mrb[20].mxu0 %vm341_vm0, %v315_v2 }
  0x68   : > { %5327 = vmatprep.mubr.msk.f32.mxu0 %vm341_vm0, %v316_v3 }
  0x6b   : > { %5328 = vmatmul.mubr.msk.f32.gmra.mrb[22].mxu0 %vm341_vm0, %v317_v4 }
  0x6c   : > { %5330 = vmatprep.mubr.msk.f32.mxu0 %vm341_vm0, %v318_v5  ;;  %v1962_v5 = vld [vmem:[#allocation3 + $0x210] sm:$0xff] }
  0x6f   : > { %5331 = vmatmul.mubr.msk.f32.gmra.mrb[24].mxu0 %vm341_vm0, %v319_v6  ;;  %v1963_v6 = vld [vmem:[#allocation3 + $0x218] sm:$0xff] }
  0x70   : > { %5333 = vmatprep.mubr.msk.f32.mxu0 %vm341_vm0, %v320_v7 }
  0x73   : > { %5334 = vmatmul.mubr.msk.f32.gmra.mrb[26].mxu0 %vm341_vm0, %v321_v8 }
  0x74   : > { %5336 = vmatprep.mubr.msk.f32.mxu0 %vm341_vm0, %v322_v9 }
  0x77   : > { %5337 = vmatmul.mubr.msk.f32.gmra.mrb[28].mxu0 %vm341_vm0, %v323_v10 }
  0x78   : > { %5339 = vmatprep.mubr.msk.f32.mxu0 %vm341_vm0, %v324_v11 }
  0x7b   : > { %5340 = vmatmul.mubr.msk.f32.gmra.mrb[30].mxu0 %vm341_vm0, %v325_v12  ;;  %v6290_v12 = vpack.c.bf16 %v1963_v6, %v1962_v5 }
  0x7c   : > { %5374 = vmatprep.mubr.f32.mxu0 %v6946_v22 }
  0x7f   : > { %5375 = vmatmul.mubr.f32.vlgmr.msra.gmra.mrb[32].mxu0 %v6946_v22 }
  0x80   : > { %6193 = vmatpush3.bf16.msra.mxu0 %v6190_v34 }
  0x81   : > { %6195 = vmatprep.subr.bf16.mxu0 %v6194_v37 }
  0x84   : > { %6197 = vmatpush3.bf16.msra.mxu0 %v6194_v37 }
  0x85   : > { %6199 = vmatprep.subr.bf16.mxu0 %v6198_v40 }
  0x88   : > { %6201 = vmatpush3.bf16.msra.mxu0 %v6198_v40 }
  0x89   : > { %6203 = vmatprep.subr.bf16.mxu0 %v6202_v43 }
  0x8c   : > { %6205 = vmatpush3.bf16.msra.mxu0 %v6202_v43 }
  0x8d   : > { %6207 = vmatprep.subr.bf16.mxu0 %v6206_v46 }
  0x90   : > { %6209 = vmatpush3.bf16.msra.mxu0 %v6206_v46 }
  0x91   : > { %6211 = vmatprep.subr.bf16.mxu0 %v6210_v49 }
  0x94   : > { %6213 = vmatpush3.bf16.msra.mxu0 %v6210_v49 }
  0x95   : > { %6215 = vmatprep.subr.bf16.mxu0 %v6214_v52 }
  0x98   : > { %6217 = vmatpush3.bf16.msra.mxu0 %v6214_v52 }
  0x99   : > { %6219 = vmatprep.subr.bf16.mxu0 %v6218_v55 }
  0x9c   : > { %6221 = vmatpush3.bf16.msra.mxu0 %v6218_v55 }
  0x9d   : > { %6223 = vmatprep.subr.bf16.mxu0 %v7136_v58 }
 0x112   : > { %v5296_v60 = vpop.f32.mrb[0].mxu0 }
 0x113   : > { %v7145_v61 = vadd.f32 %v5296_v60, %v7142_v59  ;;  %v504_v62 = vpop.f32.mrb[1].mxu0 }
 0x114   : > { %v7148_v63 = vadd.f32 %v7142_v59, %v504_v62  ;;  %v1974_v62 = vld [vmem:[#allocation3 + $0x270] sm:$0xff] }
 0x115   : > { %737 = vst [vmem:[#allocation2 + $0x30] sm:$0xff] %v7145_v61 }
 0x116   : > { %736 = vst [vmem:[#allocation2 + $0x28] sm:$0xff] %v7148_v63  ;;  %v5299_v0 = vpop.f32.mrb[2].mxu0  ;;  %5377 = vmatprep.mubr.f32.mxu0 %v7148_v63 }
 0x117   : > { %v7154_v1 = vadd.f32 %v5299_v0, %v7142_v59  ;;  %v514_v2 = vpop.f32.mrb[3].mxu0  ;;  %5378 = vmatmul.mubr.f32.gmra.mrb[34].mxu0 %v7145_v61  ;;  %v1975_v0 = vld [vmem:[#allocation3 + $0x278] sm:$0xff] }
 0x118   : > { %v7158_v3 = vadd.f32 %v7142_v59, %v514_v2 }
 0x119   : > { %739 = vst [vmem:[#allocation2 + $0x50] sm:$0xff] %v7154_v1 }
 0x11a   : > { %738 = vst [vmem:[#allocation2 + $0x48] sm:$0xff] %v7158_v3  ;;  %v5302_v4 = vpop.f32.mrb[4].mxu0  ;;  %5380 = vmatprep.mubr.f32.mxu0 %v7158_v3 }
 0x11b   : > { %v7164_v7 = vadd.f32 %v5302_v4, %v7142_v59  ;;  %v524_v8 = vpop.f32.mrb[5].mxu0  ;;  %5381 = vmatmul.mubr.f32.gmra.mrb[36].mxu0 %v7154_v1 }
 0x11c   : > { %v7168_v9 = vadd.f32 %v7142_v59, %v524_v8 }
 0x11d   : > { %741 = vst [vmem:[#allocation2 + $0x70] sm:$0xff] %v7164_v7  ;;  %v7171_v10 = vld [vmem:[#allocation2 + $0x27] sm:$0xff]  ;;  %v7173_v11 = vld [vmem:[#allocation2 + $0x2f] sm:$0xff] }
 0x11e   : > { %740 = vst [vmem:[#allocation2 + $0x68] sm:$0xff] %v7168_v9  ;;  %v5305_v13 = vpop.f32.mrb[6].mxu0  ;;  %5614 = vmatprep.mubr.f32.mxu1 %v7171_v10  ;;  %5383 = vmatprep.mubr.f32.mxu0 %v7168_v9 }
 0x11f   : > { %v7179_v16 = vadd.f32 %v5305_v13, %v7142_v59  ;;  %v534_v17 = vpop.f32.mrb[7].mxu0  ;;  %5615 = vmatmul.mubr.f32.vlgmr.msra.gmra.mrb[0].mxu1 %v7173_v11  ;;  %5384 = vmatmul.mubr.f32.gmra.mrb[38].mxu0 %v7164_v7 }
 0x120   : > { %v7184_v18 = vadd.f32 %v7142_v59, %v534_v17  ;;  %6289 = vmatpush3.bf16.msra.mxu1 %v7133_v31 }
 0x121   : > { %743 = vst [vmem:[#allocation2 + $0x90] sm:$0xff] %v7179_v16  ;;  %v7188_v19 = vld [vmem:[#allocation2 + $0x47] sm:$0xff]  ;;  %v7190_v20 = vld [vmem:[#allocation2 + $0x4f] sm:$0xff]  ;;  %6291 = vmatprep.subr.bf16.mxu1 %v6290_v12 }
 0x122   : > { %742 = vst [vmem:[#allocation2 + $0x88] sm:$0xff] %v7184_v18  ;;  %v5308_v22 = vpop.f32.mrb[8].mxu0  ;;  %5617 = vmatprep.mubr.f32.mxu1 %v7188_v19  ;;  %5386 = vmatprep.mubr.f32.mxu0 %v7184_v18 }
 0x123   : > { %v7196_v25 = vadd.f32 %v5308_v22, %v7142_v59  ;;  %v544_v26 = vpop.f32.mrb[9].mxu0  ;;  %5618 = vmatmul.mubr.f32.gmra.mrb[2].mxu1 %v7190_v20  ;;  %5387 = vmatmul.mubr.f32.gmra.mrb[40].mxu0 %v7179_v16 }
 0x124   : > { %v7201_v27 = vadd.f32 %v7142_v59, %v544_v26  ;;  %6293 = vmatpush3.bf16.msra.mxu1 %v6290_v12  ;;  %v6314_v12 = vpack.c.bf16 %v1975_v0, %v1974_v62  ;;  %v7288_v26 = vpack.c.bf16 %v2267_v15, %v2266_v14 }
 0x125   : > { %745 = vst [vmem:[#allocation2 + $0xb0] sm:$0xff] %v7196_v25  ;;  %v7204_v28 = vld [vmem:[#allocation2 + $0x67] sm:$0xff]  ;;  %v7206_v29 = vld [vmem:[#allocation2 + $0x6f] sm:$0xff]  ;;  %6295 = vmatprep.subr.bf16.mxu1 %v6294_v21 }
 0x126   : > { %744 = vst [vmem:[#allocation2 + $0xa8] sm:$0xff] %v7201_v27  ;;  %v5311_v31 = vpop.f32.mrb[10].mxu0  ;;  %5620 = vmatprep.mubr.f32.mxu1 %v7204_v28  ;;  %5389 = vmatprep.mubr.f32.mxu0 %v7201_v27 }
 0x127   : > { %v7212_v34 = vadd.f32 %v5311_v31, %v7142_v59  ;;  %v554_v35 = vpop.f32.mrb[11].mxu0  ;;  %5621 = vmatmul.mubr.f32.gmra.mrb[4].mxu1 %v7206_v29  ;;  %5390 = vmatmul.mubr.f32.gmra.mrb[42].mxu0 %v7196_v25 }
 0x128   : > { %v7217_v36 = vadd.f32 %v7142_v59, %v554_v35  ;;  %6297 = vmatpush3.bf16.msra.mxu1 %v6294_v21 }
 0x129   : > { %747 = vst [vmem:[#allocation2 + $0xd0] sm:$0xff] %v7212_v34  ;;  %v7220_v37 = vld [vmem:[#allocation2 + $0x87] sm:$0xff]  ;;  %v7222_v38 = vld [vmem:[#allocation2 + $0x8f] sm:$0xff]  ;;  %6299 = vmatprep.subr.bf16.mxu1 %v6298_v30 }
 0x12a   : > { %746 = vst [vmem:[#allocation2 + $0xc8] sm:$0xff] %v7217_v36  ;;  %v5314_v40 = vpop.f32.mrb[12].mxu0  ;;  %5623 = vmatprep.mubr.f32.mxu1 %v7220_v37  ;;  %5392 = vmatprep.mubr.f32.mxu0 %v7217_v36 }
 0x12b   : > { %v7228_v43 = vadd.f32 %v5314_v40, %v7142_v59  ;;  %v564_v44 = vpop.f32.mrb[13].mxu0  ;;  %5624 = vmatmul.mubr.f32.gmra.mrb[6].mxu1 %v7222_v38  ;;  %5393 = vmatmul.mubr.f32.gmra.mrb[44].mxu0 %v7212_v34 }
 0x12c   : > { %v7233_v45 = vadd.f32 %v7142_v59, %v564_v44  ;;  %6301 = vmatpush3.bf16.msra.mxu1 %v6298_v30 }
 0x12d   : > { %749 = vst [vmem:[#allocation2 + $0xf0] sm:$0xff] %v7228_v43  ;;  %v7236_v46 = vld [vmem:[#allocation2 + $0xa7] sm:$0xff]  ;;  %v7238_v47 = vld [vmem:[#allocation2 + $0xaf] sm:$0xff]  ;;  %6303 = vmatprep.subr.bf16.mxu1 %v6302_v39 }
 0x12e   : > { %748 = vst [vmem:[#allocation2 + $0xe8] sm:$0xff] %v7233_v45  ;;  %v5317_v49 = vpop.f32.mrb[14].mxu0  ;;  %5626 = vmatprep.mubr.f32.mxu1 %v7236_v46  ;;  %5395 = vmatprep.mubr.f32.mxu0 %v7233_v45 }
 0x12f   : > { %v7244_v52 = vadd.f32 %v5317_v49, %v7142_v59  ;;  %v574_v53 = vpop.f32.mrb[15].mxu0  ;;  %5627 = vmatmul.mubr.f32.gmra.mrb[8].mxu1 %v7238_v47  ;;  %5396 = vmatmul.mubr.f32.gmra.mrb[46].mxu0 %v7228_v43 }
 0x130   : > { %v7249_v54 = vadd.f32 %v7142_v59, %v574_v53  ;;  %6305 = vmatpush3.bf16.msra.mxu1 %v6302_v39 }
 0x131   : > { %751 = vst [vmem:[#allocation2 + $0x110] sm:$0xff] %v7244_v52  ;;  %v7252_v55 = vld [vmem:[#allocation2 + $0xc7] sm:$0xff]  ;;  %v7254_v56 = vld [vmem:[#allocation2 + $0xcf] sm:$0xff]  ;;  %6307 = vmatprep.subr.bf16.mxu1 %v6306_v48 }
 0x132   : > { %750 = vst [vmem:[#allocation2 + $0x108] sm:$0xff] %v7249_v54  ;;  %v5320_v60 = vpop.f32.mrb[16].mxu0  ;;  %5629 = vmatprep.mubr.f32.mxu1 %v7252_v55  ;;  %5398 = vmatprep.mubr.f32.mxu0 %v7249_v54 }
 0x133   : > { %v7260_v2 = vadd.f32 %v5320_v60, %v7142_v59  ;;  %v584_v4 = vpop.f32.mrb[17].mxu0  ;;  %5630 = vmatmul.mubr.f32.gmra.mrb[10].mxu1 %v7254_v56  ;;  %5399 = vmatmul.mubr.f32.gmra.mrb[48].mxu0 %v7244_v52 }
 0x134   : > { %v7265_v5 = vadd.f32 %v7142_v59, %v584_v4  ;;  %6309 = vmatpush3.bf16.msra.mxu1 %v6306_v48 }
 0x135   : > { %753 = vst [vmem:[#allocation2 + $0x130] sm:$0xff] %v7260_v2  ;;  %v7268_v6 = vld [vmem:[#allocation2 + $0xe7] sm:$0xff]  ;;  %v7270_v8 = vld [vmem:[#allocation2 + $0xef] sm:$0xff]  ;;  %6311 = vmatprep.subr.bf16.mxu1 %v6310_v57 }
 0x136   : > { %752 = vst [vmem:[#allocation2 + $0x128] sm:$0xff] %v7265_v5  ;;  %v5323_v13 = vpop.f32.mrb[18].mxu0  ;;  %5632 = vmatprep.mubr.f32.mxu1 %v7268_v6  ;;  %5401 = vmatprep.mubr.f32.mxu0 %v7265_v5 }
 0x137   : > { %v7276_v17 = vadd.f32 %v5323_v13, %v7142_v59  ;;  %v594_v21 = vpop.f32.mrb[19].mxu0  ;;  %5633 = vmatmul.mubr.f32.gmra.mrb[12].mxu1 %v7270_v8  ;;  %5402 = vmatmul.mubr.f32.gmra.mrb[50].mxu0 %v7260_v2 }
 0x138   : > { %v7281_v22 = vadd.f32 %v7142_v59, %v594_v21  ;;  %6313 = vmatpush3.bf16.msra.mxu1 %v6310_v57 }
 0x139   : > { %755 = vst [vmem:[#allocation2 + $0x150] sm:$0xff] %v7276_v17  ;;  %v7284_v23 = vld [vmem:[#allocation2 + $0x107] sm:$0xff]  ;;  %v7286_v24 = vld [vmem:[#allocation2 + $0x10f] sm:$0xff]  ;;  %6315 = vmatprep.subr.bf16.mxu1 %v6314_v12 }
 0x13a   : > { %754 = vst [vmem:[#allocation2 + $0x148] sm:$0xff] %v7281_v22  ;;  %v5326_v30 = vpop.f32.mrb[20].mxu0  ;;  %5635 = vmatprep.mubr.f32.mxu1 %v7284_v23  ;;  %5404 = vmatprep.mubr.f32.mxu0 %v7281_v22 }
 0x13b   : > { %v7294_v31 = vadd.f32 %v5326_v30, %v7142_v59  ;;  %v604_v32 = vpop.f32.mrb[21].mxu0  ;;  %5636 = vmatmul.mubr.f32.gmra.mrb[14].mxu1 %v7286_v24  ;;  %5405 = vmatmul.mubr.f32.gmra.mrb[52].mxu0 %v7276_v17 }
 0x13c   : > { %v7299_v33 = vadd.f32 %v7142_v59, %v604_v32  ;;  %6317 = vmatpush3.bf16.msra.mxu1 %v6314_v12 }
 0x13d   : > { %757 = vst [vmem:[#allocation2 + $0x170] sm:$0xff] %v7294_v31  ;;  %v7302_v35 = vld [vmem:[#allocation2 + $0x127] sm:$0xff]  ;;  %v7304_v39 = vld [vmem:[#allocation2 + $0x12f] sm:$0xff]  ;;  %6319 = vmatprep.subr.bf16.mxu1 %v7288_v26 }
 0x13e   : > { %756 = vst [vmem:[#allocation2 + $0x168] sm:$0xff] %v7299_v33  ;;  %v5329_v40 = vpop.f32.mrb[22].mxu0  ;;  %5638 = vmatprep.mubr.f32.mxu1 %v7302_v35  ;;  %5407 = vmatprep.mubr.f32.mxu0 %v7299_v33 }
 0x13f   : > { %v7311_v41 = vadd.f32 %v5329_v40, %v7142_v59  ;;  %v614_v42 = vpop.f32.mrb[23].mxu0  ;;  %5639 = vmatmul.mubr.f32.gmra.mrb[16].mxu1 %v7304_v39  ;;  %5408 = vmatmul.mubr.f32.gmra.mrb[54].mxu0 %v7294_v31 }
 0x140   : > { %v7316_v44 = vadd.f32 %v7142_v59, %v614_v42 }
 0x141   : > { %8842 = vst [vmem:[#allocation6_spill] sm:$0xff] %v7311_v41  ;;  %759 = vst [vmem:[#allocation2 + $0x190] sm:$0xff] %v7311_v41  ;;  %v7319_v48 = vld [vmem:[#allocation2 + $0x147] sm:$0xff]  ;;  %v7321_v49 = vld [vmem:[#allocation2 + $0x14f] sm:$0xff] }
 0x142   : > { %8843 = vst [vmem:[#allocation7_spill] sm:$0xff] %v7316_v44  ;;  %758 = vst [vmem:[#allocation2 + $0x188] sm:$0xff] %v7316_v44  ;;  %v5332_v50 = vpop.f32.mrb[24].mxu0  ;;  %5641 = vmatprep.mubr.f32.mxu1 %v7319_v48  ;;  %5410 = vmatprep.mubr.f32.mxu0 %v7316_v44  ;;  %v1353_v44 = vld [vmem:[#allocation3 + $0x128] sm:$0xff] }
 0x143   : > { %v7327_v51 = vadd.f32 %v5332_v50, %v7142_v59  ;;  %v624_v53 = vpop.f32.mrb[25].mxu0  ;;  %5642 = vmatmul.mubr.f32.gmra.mrb[18].mxu1 %v7321_v49  ;;  %5411 = vmatmul.mubr.f32.gmra.mrb[56].mxu0 %v7311_v41 }
 0x144   : > { %v7332_v57 = vadd.f32 %v7142_v59, %v624_v53  ;;  %v768_v53 = vld [vmem:[#allocation2 + $0x7] sm:$0xff] }
 0x145   : > { %8844 = vst [vmem:[#allocation8_spill] sm:$0xff] %v7327_v51  ;;  %761 = vst [vmem:[#allocation2 + $0x1b0] sm:$0xff] %v7327_v51  ;;  %v7335_v60 = vld [vmem:[#allocation2 + $0x167] sm:$0xff]  ;;  %v7337_v62 = vld [vmem:[#allocation2 + $0x16f] sm:$0xff] }
 0x146   : > { %8845 = vst [vmem:[#allocation9_spill] sm:$0xff] %v7332_v57  ;;  %760 = vst [vmem:[#allocation2 + $0x1a8] sm:$0xff] %v7332_v57  ;;  %v5335_v0 = vpop.f32.mrb[26].mxu0  ;;  %5644 = vmatprep.mubr.f32.mxu1 %v7335_v60  ;;  %5413 = vmatprep.mubr.f32.mxu0 %v7332_v57 }
 0x147   : > { %v7343_v4 = vadd.f32 %v5335_v0, %v7142_v59  ;;  %v634_v12 = vpop.f32.mrb[27].mxu0  ;;  %5645 = vmatmul.mubr.f32.gmra.mrb[20].mxu1 %v7337_v62  ;;  %5414 = vmatmul.mubr.f32.gmra.mrb[58].mxu0 %v7327_v51  ;;  %v769_v51 = vld [vmem:[#allocation2 + $0xf] sm:$0xff] }
 0x148   : > { %v7348_v13 = vadd.f32 %v7142_v59, %v634_v12  ;;  %v1350_v12 = vld [vmem:[#allocation3 + $0x110] sm:$0xff] }
 0x149   : > { %8846 = vst [vmem:[#allocation10_spill] sm:$0xff] %v7343_v4  ;;  %763 = vst [vmem:[#allocation2 + $0x1d0] sm:$0xff] %v7343_v4  ;;  %v7351_v14 = vld [vmem:[#allocation2 + $0x187] sm:$0xff]  ;;  %v7353_v15 = vld [vmem:[#allocation2 + $0x18f] sm:$0xff] }
 0x14a   : > { %8847 = vst [vmem:[#allocation11_spill] sm:$0xff] %v7348_v13  ;;  %762 = vst [vmem:[#allocation2 + $0x1c8] sm:$0xff] %v7348_v13  ;;  %v5338_v21 = vpop.f32.mrb[28].mxu0  ;;  %5647 = vmatprep.mubr.f32.mxu1 %v7351_v14  ;;  %5416 = vmatprep.mubr.f32.mxu0 %v7348_v13 }
 0x14b   : > { %v7359_v30 = vadd.f32 %v5338_v21, %v7142_v59  ;;  %v644_v32 = vpop.f32.mrb[29].mxu0  ;;  %5648 = vmatmul.mubr.f32.gmra.mrb[22].mxu1 %v7353_v15  ;;  %5417 = vmatmul.mubr.f32.gmra.mrb[60].mxu0 %v7343_v4  ;;  %v1351_v21 = vld [vmem:[#allocation3 + $0x118] sm:$0xff] }
 0x14c   : > { %v7364_v40 = vadd.f32 %v7142_v59, %v644_v32  ;;  %v6226_v41 = vpack.c.bf16 %v1351_v21, %v1350_v12  ;;  %v1354_v12 = vld [vmem:[#allocation3 + $0x130] sm:$0xff]  ;;  %v1355_v21 = vld [vmem:[#allocation3 + $0x138] sm:$0xff] }
 0x14d   : > { %765 = vst [vmem:[#allocation2 + $0x1f0] sm:$0xff] %v7359_v30  ;;  %v7367_v42 = vld [vmem:[#allocation2 + $0x1a7] sm:$0xff]  ;;  %v7369_v50 = vld [vmem:[#allocation2 + $0x1af] sm:$0xff] }
 0x14e   : > { %8848 = vst [vmem:[#allocation12_spill] sm:$0xff] %v7364_v40  ;;  %764 = vst [vmem:[#allocation2 + $0x1e8] sm:$0xff] %v7364_v40  ;;  %v5341_v0 = vpop.f32.mrb[30].mxu0  ;;  %5650 = vmatprep.mubr.f32.mxu1 %v7367_v42  ;;  %5419 = vmatprep.mubr.f32.mxu0 %v7364_v40 }
 0x14f   : > { %v7375_v4 = vadd.f32 %v5341_v0, %v7142_v59  ;;  %v654_v32 = vpop.f32.mrb[31].mxu0  ;;  %5651 = vmatmul.mubr.f32.gmra.mrb[24].mxu1 %v7369_v50  ;;  %5420 = vmatmul.mubr.f32.gmra.mrb[62].mxu0 %v7359_v30  ;;  %v1352_v0 = vld [vmem:[#allocation3 + $0x120] sm:$0xff] }
 0x150   : > { %v7380_v13 = vadd.f32 %v7142_v59, %v654_v32  ;;  %5454 = vmatprep.mubr.f32.mxu0 %v768_v53  ;;  %v6230_v32 = vpack.c.bf16 %v1353_v44, %v1352_v0  ;;  %v2270_v44 = vld [vmem:[#allocation3 + $0x2a0] sm:$0xff]  ;;  %v2271_v0 = vld [vmem:[#allocation3 + $0x2a8] sm:$0xff] }
 0x151   : > { %8849 = vst [vmem:[#allocation13_spill] sm:$0xff] %v7375_v4  ;;  %767 = vst [vmem:[#allocation2 + $0x210] sm:$0xff] %v7375_v4  ;;  %v7383_v57 = vld [vmem:[#allocation2 + $0x1c7] sm:$0xff]  ;;  %v7385_v40 = vld [vmem:[#allocation2 + $0x1cf] sm:$0xff] }
 0x152   : > { %8850 = vst [vmem:[#allocation14_spill] sm:$0xff] %v7380_v13  ;;  %766 = vst [vmem:[#allocation2 + $0x208] sm:$0xff] %v7380_v13  ;;  %5653 = vmatprep.mubr.f32.mxu1 %v7383_v57  ;;  %v2269_v4 = vld [vmem:[#allocation3 + $0x298] sm:$0xff]  ;;  %v6234_v13 = vpack.c.bf16 %v1355_v21, %v1354_v12  ;;  %v3185_v12 = vld [vmem:[#allocation3 + $0x400] sm:$0xff] }
 0x153   : > { %5654 = vmatmul.mubr.f32.gmra.mrb[26].mxu1 %v7385_v40  ;;  %5455 = vmatmul.mubr.f32.vlgmr.msra.gmra.mrb[32].mxu0 %v769_v51  ;;  %v3186_v21 = vld [vmem:[#allocation3 + $0x408] sm:$0xff] }
 0x154   : > { %5457 = vmatprep.mubr.f32.mxu0 %v7171_v10  ;;  %6225 = vmatpush3.bf16.msra.mxu0 %v7136_v58  ;;  %v2268_v58 = vld [vmem:[#allocation3 + $0x290] sm:$0xff] }
 0x155   : > { %v7392_v59 = vld [vmem:[#allocation2 + $0x1e7] sm:$0xff]  ;;  %v7394_v53 = vld [vmem:[#allocation2 + $0x1ef] sm:$0xff]  ;;  %6227 = vmatprep.subr.bf16.mxu0 %v6226_v41 }
 0x156   : > { %5656 = vmatprep.mubr.f32.mxu1 %v7392_v59 }
 0x157   : > { %5657 = vmatmul.mubr.f32.gmra.mrb[28].mxu1 %v7394_v53  ;;  %5458 = vmatmul.mubr.f32.gmra.mrb[34].mxu0 %v7173_v11  ;;  %v6322_v11 = vpack.c.bf16 %v2269_v4, %v2268_v58  ;;  %v7482_v58 = vld [vmem:[#allocation2 + $0x69] sm:$0xff] }
 0x158   : > { %5460 = vmatprep.mubr.f32.mxu0 %v7188_v19  ;;  %6229 = vmatpush3.bf16.msra.mxu0 %v6226_v41  ;;  %v1356_v19 = vld [vmem:[#allocation3 + $0x140] sm:$0xff]  ;;  %v1357_v41 = vld [vmem:[#allocation3 + $0x148] sm:$0xff] }
 0x159   : > { %v1651_v10 = vld [vmem:[#allocation2 + $0x207] sm:$0xff]  ;;  %v1652_v51 = vld [vmem:[#allocation2 + $0x20f] sm:$0xff]  ;;  %6231 = vmatprep.subr.bf16.mxu0 %v6230_v32  ;;  %v6238_v4 = vpack.c.bf16 %v1357_v41, %v1356_v19 }
 0x15a   : > { %5659 = vmatprep.mubr.f32.mxu1 %v1651_v10  ;;  %v2574_v10 = vld [vmem:[#allocation3 + $0x308] sm:$0xff]  ;;  %v3193_v41 = vld [vmem:[#allocation3 + $0x440] sm:$0xff] }
 0x15b   : > { %5660 = vmatmul.mubr.f32.gmra.mrb[30].mxu1 %v1652_v51  ;;  %5461 = vmatmul.mubr.f32.gmra.mrb[36].mxu0 %v7190_v20  ;;  %v2272_v20 = vld [vmem:[#allocation3 + $0x2b0] sm:$0xff]  ;;  %v2578_v19 = vld [vmem:[#allocation3 + $0x328] sm:$0xff] }
 0x15c   : > { %5694 = vmatprep.mubr.f32.mxu1 %v7148_v63  ;;  %5463 = vmatprep.mubr.f32.mxu0 %v7204_v28  ;;  %v6326_v63 = vpack.c.bf16 %v2271_v0, %v2270_v44  ;;  %v2273_v28 = vld [vmem:[#allocation3 + $0x2b8] sm:$0xff]  ;;  %v2577_v0 = vld [vmem:[#allocation3 + $0x320] sm:$0xff] }
 0x15d   : > { %6233 = vmatpush3.bf16.msra.mxu0 %v6230_v32  ;;  %v1363_v32 = vld [vmem:[#allocation3 + $0x178] sm:$0xff] }
 0x15e   : > { %6235 = vmatprep.subr.bf16.mxu0 %v6234_v13  ;;  %v7486_v44 = vld [vmem:[#allocation2 + $0x71] sm:$0xff] }
 0x15f   : > { %5695 = vmatmul.mubr.f32.vlgmr.msra.gmra.mrb[0].mxu1 %v7145_v61  ;;  %5464 = vmatmul.mubr.f32.gmra.mrb[38].mxu0 %v7206_v29  ;;  %v6330_v61 = vpack.c.bf16 %v2273_v28, %v2272_v20  ;;  %v1359_v29 = vld [vmem:[#allocation3 + $0x158] sm:$0xff]  ;;  %v7492_v20 = vld [vmem:[#allocation2 + $0x89] sm:$0xff]  ;;  %v6358_v28 = vpack.c.bf16 %v2578_v19, %v2577_v0 }
 0x160   : > { %6321 = vmatpush3.bf16.msra.mxu1 %v7288_v26  ;;  %5697 = vmatprep.mubr.f32.mxu1 %v7158_v3  ;;  %v1358_v3 = vld [vmem:[#allocation3 + $0x150] sm:$0xff]  ;;  %v2275_v26 = vld [vmem:[#allocation3 + $0x2c8] sm:$0xff] }
 0x161   : > { %6323 = vmatprep.subr.bf16.mxu1 %v6322_v11  ;;  %5466 = vmatprep.mubr.f32.mxu0 %v7220_v37  ;;  %v2274_v37 = vld [vmem:[#allocation3 + $0x2c0] sm:$0xff]  ;;  %v7600_v0 = vld [vmem:[#allocation2 + $0x1f1] sm:$0xff]  ;;  %v7611_v19 = vld [vmem:[#allocation2 + $0x209] sm:$0xff] }
 0x162   : > { %6237 = vmatpush3.bf16.msra.mxu0 %v6234_v13  ;;  %v2277_v13 = vld [vmem:[#allocation3 + $0x2d8] sm:$0xff] }
 0x163   : > { %5698 = vmatmul.mubr.f32.gmra.mrb[2].mxu1 %v7154_v1  ;;  %5467 = vmatmul.mubr.f32.gmra.mrb[40].mxu0 %v7222_v38  ;;  %v6242_v1 = vpack.c.bf16 %v1359_v29, %v1358_v3  ;;  %v1360_v38 = vld [vmem:[#allocation3 + $0x160] sm:$0xff]  ;;  %v2580_v3 = vld [vmem:[#allocation3 + $0x338] sm:$0xff] }
 0x164   : > { %5700 = vmatprep.mubr.f32.mxu1 %v7168_v9  ;;  %6325 = vmatpush3.bf16.msra.mxu1 %v6322_v11  ;;  %v6334_v9 = vpack.c.bf16 %v2275_v26, %v2274_v37  ;;  %v7503_v37 = vld [vmem:[#allocation2 + $0xa9] sm:$0xff] }
 0x165   : > { %5469 = vmatprep.mubr.f32.mxu0 %v7236_v46  ;;  %6327 = vmatprep.subr.bf16.mxu1 %v6326_v63  ;;  %v1361_v46 = vld [vmem:[#allocation3 + $0x168] sm:$0xff] }
 0x166   : > { %6239 = vmatprep.subr.bf16.mxu0 %v6238_v4 }
 0x167   : > { %5701 = vmatmul.mubr.f32.gmra.mrb[4].mxu1 %v7164_v7  ;;  %5470 = vmatmul.mubr.f32.gmra.mrb[42].mxu0 %v7238_v47  ;;  %v2276_v7 = vld [vmem:[#allocation3 + $0x2d0] sm:$0xff] }
 0x168   : > { %5703 = vmatprep.mubr.f32.mxu1 %v7184_v18  ;;  %6329 = vmatpush3.bf16.msra.mxu1 %v6326_v63  ;;  %v6246_v18 = vpack.c.bf16 %v1361_v46, %v1360_v38  ;;  %v6338_v47 = vpack.c.bf16 %v2277_v13, %v2276_v7  ;;  %v3194_v63 = vld [vmem:[#allocation3 + $0x448] sm:$0xff]  ;;  %v3196_v38 = vld [vmem:[#allocation3 + $0x458] sm:$0xff]  ;;  %v2581_v46 = vld [vmem:[#allocation3 + $0x340] sm:$0xff] }
 0x169   : > { %5472 = vmatprep.mubr.f32.mxu0 %v7252_v55  ;;  %6331 = vmatprep.subr.bf16.mxu1 %v6330_v61  ;;  %v1362_v55 = vld [vmem:[#allocation3 + $0x170] sm:$0xff]  ;;  %v7498_v29 = vpack.c.bf16 %v3194_v63, %v3193_v41  ;;  %v2582_v7 = vld [vmem:[#allocation3 + $0x348] sm:$0xff]  ;;  %v2882_v63 = vld [vmem:[#allocation3 + $0x398] sm:$0xff] }
 0x16a   : > { %6241 = vmatpush3.bf16.msra.mxu0 %v6238_v4  ;;  %v7495_v4 = vld [vmem:[#allocation2 + $0x91] sm:$0xff]  ;;  %v7512_v13 = vld [vmem:[#allocation2 + $0xc9] sm:$0xff] }
 0x16b   : > { %5704 = vmatmul.mubr.f32.gmra.mrb[6].mxu1 %v7179_v16  ;;  %5473 = vmatmul.mubr.f32.gmra.mrb[44].mxu0 %v7254_v56  ;;  %v2278_v16 = vld [vmem:[#allocation3 + $0x2e0] sm:$0xff]  ;;  %v2279_v56 = vld [vmem:[#allocation3 + $0x2e8] sm:$0xff]  ;;  %v7616_v41 = vld [vmem:[#allocation2 + $0x211] sm:$0xff] }
 0x16c   : > { %5706 = vmatprep.mubr.f32.mxu1 %v7201_v27  ;;  %5475 = vmatprep.mubr.f32.mxu0 %v7268_v6  ;;  %v6250_v27 = vpack.c.bf16 %v1363_v32, %v1362_v55  ;;  %v6342_v6 = vpack.c.bf16 %v2279_v56, %v2278_v16  ;;  %v6366_v55 = vpack.c.bf16 %v2582_v7, %v2581_v46  ;;  %v3197_v32 = vld [vmem:[#allocation3 + $0x460] sm:$0xff]  ;;  %v3198_v16 = vld [vmem:[#allocation3 + $0x468] sm:$0xff] }
 0x16d   : > { %6333 = vmatpush3.bf16.msra.mxu1 %v6330_v61  ;;  %6243 = vmatprep.subr.bf16.mxu0 %v6242_v1  ;;  %v2579_v61 = vld [vmem:[#allocation3 + $0x330] sm:$0xff]  ;;  %v2546_v46 = vld [vmem:[#allocation2 + $0xa7] sm:$0xff] }
 0x16e   : > { %6335 = vmatprep.subr.bf16.mxu1 %v6334_v9  ;;  %6245 = vmatpush3.bf16.msra.mxu0 %v6242_v1  ;;  %v6362_v26 = vpack.c.bf16 %v2580_v3, %v2579_v61  ;;  %v7506_v1 = vld [vmem:[#allocation2 + $0xb1] sm:$0xff]  ;;  %v7522_v56 = vld [vmem:[#allocation2 + $0xe9] sm:$0xff]  ;;  %v2883_v61 = vld [vmem:[#allocation3 + $0x3a0] sm:$0xff] }
 0x16f   : > { %5707 = vmatmul.mubr.f32.gmra.mrb[8].mxu1 %v7196_v25  ;;  %5476 = vmatmul.mubr.f32.gmra.mrb[46].mxu0 %v7270_v8  ;;  %v2280_v25 = vld [vmem:[#allocation3 + $0x2f0] sm:$0xff]  ;;  %v2281_v8 = vld [vmem:[#allocation3 + $0x2f8] sm:$0xff]  ;;  %v2542_v3 = vld [vmem:[#allocation2 + $0x67] sm:$0xff] }
 0x170   : > { %5709 = vmatprep.mubr.f32.mxu1 %v7217_v36  ;;  %5478 = vmatprep.mubr.f32.mxu0 %v7284_v23  ;;  %v7428_v36 = vpack.c.bf16 %v3186_v21, %v3185_v12  ;;  %v6346_v23 = vpack.c.bf16 %v2281_v8, %v2280_v25  ;;  %v7527_v12 = vpack.c.bf16 %v3198_v16, %v3197_v32  ;;  %v7529_v21 = vld [vmem:[#allocation2 + $0xf1] sm:$0xff]  ;;  %v2887_v7 = vld [vmem:[#allocation3 + $0x3c0] sm:$0xff] }
 0x171   : > { %6337 = vmatpush3.bf16.msra.mxu1 %v6334_v9  ;;  %6247 = vmatprep.subr.bf16.mxu0 %v6246_v18  ;;  %v3195_v9 = vld [vmem:[#allocation3 + $0x450] sm:$0xff]  ;;  %v2548_v32 = vld [vmem:[#allocation2 + $0xc7] sm:$0xff] }
 0x172   : > { %6339 = vmatprep.subr.bf16.mxu1 %v6338_v47  ;;  %6249 = vmatpush3.bf16.msra.mxu0 %v6246_v18  ;;  %v7515_v18 = vpack.c.bf16 %v3196_v38, %v3195_v9  ;;  %v3199_v8 = vld [vmem:[#allocation3 + $0x470] sm:$0xff]  ;;  %v2544_v38 = vld [vmem:[#allocation2 + $0x87] sm:$0xff] }
 0x173   : > { %5710 = vmatmul.mubr.f32.gmra.mrb[10].mxu1 %v7212_v34  ;;  %5479 = vmatmul.mubr.f32.gmra.mrb[48].mxu0 %v7286_v24  ;;  %v2573_v34 = vld [vmem:[#allocation3 + $0x300] sm:$0xff]  ;;  %v8855_v24 = vld [vmem:[#allocation11_spill] sm:$0xff]  ;;  %v2885_v9 = vld [vmem:[#allocation3 + $0x3b0] sm:$0xff] }
 0x174   : > { %5712 = vmatprep.mubr.f32.mxu1 %v7233_v45  ;;  %5481 = vmatprep.mubr.f32.mxu0 %v7302_v35  ;;  %v7435_v45 = vpack.c.bf16 %v2574_v10, %v2573_v34  ;;  %v8856_v35 = vld [vmem:[#allocation10_spill] sm:$0xff]  ;;  %v7534_v34 = vld [vmem:[#allocation2 + $0x109] sm:$0xff] }
 0x175   : > { %6341 = vmatpush3.bf16.msra.mxu1 %v6338_v47  ;;  %6251 = vmatprep.subr.bf16.mxu0 %v6250_v27  ;;  %v7517_v47 = vld [vmem:[#allocation2 + $0xd1] sm:$0xff]  ;;  %v2585_v10 = vld [vmem:[#allocation3 + $0x360] sm:$0xff] }
 0x176   : > { %6343 = vmatprep.subr.bf16.mxu1 %v6342_v6  ;;  %6253 = vmatpush3.bf16.msra.mxu0 %v6250_v27  ;;  %v2583_v27 = vld [vmem:[#allocation3 + $0x350] sm:$0xff] }
 0x177   : > { %5713 = vmatmul.mubr.f32.gmra.mrb[12].mxu1 %v7228_v43  ;;  %5482 = vmatmul.mubr.f32.gmra.mrb[50].mxu0 %v7304_v39  ;;  %v8851_v43 = vld [vmem:[#allocation7_spill] sm:$0xff]  ;;  %v2889_v16 = vld [vmem:[#allocation3 + $0x3d0] sm:$0xff] }
 0x178   : > { %5715 = vmatprep.mubr.f32.mxu1 %v7249_v54  ;;  %5484 = vmatprep.mubr.f32.mxu0 %v7319_v48  ;;  %v8853_v54 = vld [vmem:[#allocation9_spill] sm:$0xff]  ;;  %v1317_v39 = vld [vmem:[#allocation2 + $0x29] sm:$0xff]  ;;  %v3189_v48 = vld [vmem:[#allocation3 + $0x420] sm:$0xff] }
 0x179   : > { %6345 = vmatpush3.bf16.msra.mxu1 %v6342_v6  ;;  %6415 = vmatprep.subr.bf16.mxu0 %v7428_v36  ;;  %v2584_v6 = vld [vmem:[#allocation3 + $0x358] sm:$0xff] }
 0x17a   : > { %6347 = vmatprep.subr.bf16.mxu1 %v6346_v23  ;;  %v6370_v25 = vpack.c.bf16 %v2584_v6, %v2583_v27  ;;  %v2549_v27 = vld [vmem:[#allocation2 + $0xcf] sm:$0xff] }
 0x17b   : > { %5716 = vmatmul.mubr.f32.gmra.mrb[14].mxu1 %v7244_v52  ;;  %5485 = vmatmul.mubr.f32.gmra.mrb[52].mxu0 %v7321_v49  ;;  %v8852_v52 = vld [vmem:[#allocation6_spill] sm:$0xff]  ;;  %v3190_v49 = vld [vmem:[#allocation3 + $0x428] sm:$0xff] }
 0x17c   : > { %5718 = vmatprep.mubr.f32.mxu1 %v7265_v5  ;;  %5487 = vmatprep.mubr.f32.mxu0 %v7335_v60  ;;  %v8854_v5 = vld [vmem:[#allocation8_spill] sm:$0xff] }
 0x17d   : > { %6349 = vmatpush3.bf16.msra.mxu1 %v6346_v23  ;;  %v1318_v60 = vld [vmem:[#allocation2 + $0x31] sm:$0xff] }
 0x17e   : > { %6351 = vmatprep.subr.bf16.mxu1 %v7435_v45  ;;  %v3200_v23 = vld [vmem:[#allocation3 + $0x478] sm:$0xff] }
 0x17f   : > { %5719 = vmatmul.mubr.f32.gmra.mrb[16].mxu1 %v7260_v2  ;;  %5488 = vmatmul.mubr.f32.gmra.mrb[54].mxu0 %v7337_v62  ;;  %v1315_v2 = vld [vmem:[#allocation2 + $0x9] sm:$0xff]  ;;  %v7467_v62 = vpack.c.bf16 %v3190_v49, %v3189_v48  ;;  %v7560_v48 = vld [vmem:[#allocation2 + $0x151] sm:$0xff] }
 0x180   : > { %5721 = vmatprep.mubr.f32.mxu1 %v7281_v22  ;;  %5490 = vmatprep.mubr.f32.mxu0 %v7351_v14  ;;  %v3188_v22 = vld [vmem:[#allocation3 + $0x418] sm:$0xff]  ;;  %v7470_v14 = vld [vmem:[#allocation2 + $0x49] sm:$0xff] }
 0x183   : > { %5722 = vmatmul.mubr.f32.gmra.mrb[18].mxu1 %v7276_v17  ;;  %5491 = vmatmul.mubr.f32.gmra.mrb[56].mxu0 %v7353_v15  ;;  %v3187_v17 = vld [vmem:[#allocation3 + $0x410] sm:$0xff] }
 0x184   : > { %5724 = vmatprep.mubr.f32.mxu1 %v7299_v33  ;;  %5493 = vmatprep.mubr.f32.mxu0 %v7367_v42  ;;  %v7461_v33 = vpack.c.bf16 %v3188_v22, %v3187_v17  ;;  %v3191_v15 = vld [vmem:[#allocation3 + $0x430] sm:$0xff]  ;;  %v8858_v42 = vld [vmem:[#allocation14_spill] sm:$0xff]  ;;  %v2588_v17 = vld [vmem:[#allocation3 + $0x378] sm:$0xff] }
 0x185   : > { %v7551_v22 = vld [vmem:[#allocation2 + $0x131] sm:$0xff] }
 0x187   : > { %5725 = vmatmul.mubr.f32.gmra.mrb[20].mxu1 %v7294_v31  ;;  %5494 = vmatmul.mubr.f32.gmra.mrb[58].mxu0 %v7369_v50  ;;  %v1316_v31 = vld [vmem:[#allocation2 + $0x11] sm:$0xff] }
 0x188   : > { %5727 = vmatprep.mubr.f32.mxu1 %v8851_v43  ;;  %5496 = vmatprep.mubr.f32.mxu0 %v7383_v57  ;;  %v8857_v57 = vld [vmem:[#allocation12_spill] sm:$0xff]  ;;  %v7539_v43 = vpack.c.bf16 %v3200_v23, %v3199_v8  ;;  %v2892_v8 = vld [vmem:[#allocation3 + $0x3e8] sm:$0xff] }
 0x189   : > { %v7475_v50 = vld [vmem:[#allocation2 + $0x51] sm:$0xff] }
 0x18a   : > { %v2551_v23 = vld [vmem:[#allocation2 + $0xef] sm:$0xff] }
 0x18b   : > { %5728 = vmatmul.mubr.f32.gmra.mrb[22].mxu1 %v8852_v52  ;;  %5497 = vmatmul.mubr.f32.gmra.mrb[60].mxu0 %v7385_v40  ;;  %v3192_v40 = vld [vmem:[#allocation3 + $0x438] sm:$0xff] }
 0x18c   : > { %5730 = vmatprep.mubr.f32.mxu1 %v8853_v54  ;;  %5499 = vmatprep.mubr.f32.mxu0 %v7392_v59  ;;  %v2575_v59 = vld [vmem:[#allocation3 + $0x310] sm:$0xff]  ;;  %v7478_v51 = vpack.c.bf16 %v3192_v40, %v3191_v15 }
 0x18d   : > { %v7541_v52 = vld [vmem:[#allocation2 + $0x111] sm:$0xff]  ;;  %v7572_v15 = vld [vmem:[#allocation2 + $0x189] sm:$0xff] }
 0x18e   : > { %v7576_v40 = vld [vmem:[#allocation2 + $0x191] sm:$0xff] }
 0x18f   : > { %5731 = vmatmul.mubr.f32.gmra.mrb[24].mxu1 %v8854_v5  ;;  %5500 = vmatmul.mubr.f32.gmra.mrb[62].mxu0 %v7394_v53  ;;  %v2576_v53 = vld [vmem:[#allocation3 + $0x318] sm:$0xff]  ;;  %v2587_v5 = vld [vmem:[#allocation3 + $0x370] sm:$0xff] }
 0x190   : > { %5733 = vmatprep.mubr.f32.mxu1 %v8855_v24  ;;  %5534 = vmatprep.mubr.f32.mxu0 %v1315_v2  ;;  %v6354_v11 = vpack.c.bf16 %v2576_v53, %v2575_v59  ;;  %v7546_v2 = vld [vmem:[#allocation2 + $0x129] sm:$0xff]  ;;  %v6378_v24 = vpack.c.bf16 %v2588_v17, %v2587_v5  ;;  %v7584_v59 = vld [vmem:[#allocation2 + $0x1b1] sm:$0xff] }
 0x191   : > { %v7588_v53 = vld [vmem:[#allocation2 + $0x1c9] sm:$0xff] }
 0x192   : > { %v2554_v5 = vld [vmem:[#allocation2 + $0x127] sm:$0xff]  ;;  %v2555_v17 = vld [vmem:[#allocation2 + $0x12f] sm:$0xff] }
 0x193   : > { %5734 = vmatmul.mubr.f32.gmra.mrb[26].mxu1 %v8856_v35  ;;  %5535 = vmatmul.mubr.f32.vlgmr.msra.gmra.mrb[32].mxu0 %v1316_v31  ;;  %v7556_v31 = vld [vmem:[#allocation2 + $0x149] sm:$0xff]  ;;  %v2879_v35 = vld [vmem:[#allocation3 + $0x380] sm:$0xff] }
 0x194   : > { %5736 = vmatprep.mubr.f32.mxu1 %v8857_v57  ;;  %5537 = vmatprep.mubr.f32.mxu0 %v1317_v39  ;;  %v7564_v57 = vld [vmem:[#allocation2 + $0x169] sm:$0xff] }
 0x195   : > { %6417 = vmatpush3.bf16.msra.mxu0 %v7428_v36 }
 0x196   : > { %6419 = vmatprep.subr.bf16.mxu0 %v7461_v33 }
 0x197   : > { %5737 = vmatmul.mubr.f32.gmra.mrb[28].mxu1 %v7359_v30  ;;  %5538 = vmatmul.mubr.f32.gmra.mrb[34].mxu0 %v1318_v60  ;;  %v8859_v30 = vld [vmem:[#allocation13_spill] sm:$0xff] }
 0x198   : > { %5739 = vmatprep.mubr.f32.mxu1 %v8858_v42  ;;  %5540 = vmatprep.mubr.f32.mxu0 %v7470_v14  ;;  %v7580_v42 = vld [vmem:[#allocation2 + $0x1a9] sm:$0xff] }
 0x199   : > { %6421 = vmatpush3.bf16.msra.mxu0 %v7461_v33 }
 0x19a   : > { %6423 = vmatprep.subr.bf16.mxu0 %v7467_v62 }
 0x19b   : > { %5740 = vmatmul.mubr.f32.gmra.mrb[30].mxu1 %v8859_v30  ;;  %5541 = vmatmul.mubr.f32.gmra.mrb[36].mxu0 %v7475_v50  ;;  %v7592_v30 = vld [vmem:[#allocation2 + $0x1d1] sm:$0xff] }
 0x19c   : > { %5774 = vmatprep.mubr.f32.mxu1 %v1317_v39  ;;  %5543 = vmatprep.mubr.f32.mxu0 %v7482_v58  ;;  %v2880_v39 = vld [vmem:[#allocation3 + $0x388] sm:$0xff] }
 0x19d   : > { %6425 = vmatpush3.bf16.msra.mxu0 %v7467_v62  ;;  %v6382_v49 = vpack.c.bf16 %v2880_v39, %v2879_v35  ;;  %v2559_v35 = vld [vmem:[#allocation2 + $0x16f] sm:$0xff]  ;;  %v2560_v39 = vld [vmem:[#allocation2 + $0x187] sm:$0xff] }
 0x19e   : > { %6427 = vmatprep.subr.bf16.mxu0 %v7478_v51 }
 0x19f   : > { %5775 = vmatmul.mubr.f32.vlgmr.msra.gmra.mrb[0].mxu1 %v1318_v60  ;;  %5544 = vmatmul.mubr.f32.gmra.mrb[38].mxu0 %v7486_v44  ;;  %v7568_v60 = vld [vmem:[#allocation2 + $0x171] sm:$0xff] }
 0x1a0   : > { %6353 = vmatpush3.bf16.msra.mxu1 %v7435_v45  ;;  %5777 = vmatprep.mubr.f32.mxu1 %v7470_v14  ;;  %v2586_v45 = vld [vmem:[#allocation3 + $0x368] sm:$0xff] }
 0x1a1   : > { %6355 = vmatprep.subr.bf16.mxu1 %v6354_v11  ;;  %5546 = vmatprep.mubr.f32.mxu0 %v7492_v20  ;;  %v6374_v54 = vpack.c.bf16 %v2586_v45, %v2585_v10  ;;  %v2552_v10 = vld [vmem:[#allocation2 + $0x107] sm:$0xff]  ;;  %v2893_v45 = vld [vmem:[#allocation3 + $0x3f0] sm:$0xff] }
 0x1a2   : > { %6429 = vmatpush3.bf16.msra.mxu0 %v7478_v51 }
 0x1a3   : > { %5778 = vmatmul.mubr.f32.gmra.mrb[2].mxu1 %v7475_v50  ;;  %5547 = vmatmul.mubr.f32.gmra.mrb[40].mxu0 %v7495_v4 }
 0x1a4   : > { %5780 = vmatprep.mubr.f32.mxu1 %v7482_v58  ;;  %6357 = vmatpush3.bf16.msra.mxu1 %v6354_v11  ;;  %v7596_v11 = vld [vmem:[#allocation2 + $0x1e9] sm:$0xff] }
 0x1a5   : > { %5549 = vmatprep.mubr.f32.mxu0 %v7503_v37  ;;  %6359 = vmatprep.subr.bf16.mxu1 %v6358_v28 }
 0x1a6   : > { %6431 = vmatprep.subr.bf16.mxu0 %v7498_v29 }
 0x1a7   : > { %5781 = vmatmul.mubr.f32.gmra.mrb[4].mxu1 %v7486_v44  ;;  %5550 = vmatmul.mubr.f32.gmra.mrb[42].mxu0 %v7506_v1 }
 0x1a8   : > { %5783 = vmatprep.mubr.f32.mxu1 %v7492_v20  ;;  %6361 = vmatpush3.bf16.msra.mxu1 %v6358_v28  ;;  %v2541_v28 = vld [vmem:[#allocation2 + $0x4f] sm:$0xff] }
 0x1a9   : > { %5552 = vmatprep.mubr.f32.mxu0 %v7512_v13  ;;  %6363 = vmatprep.subr.bf16.mxu1 %v6362_v26 }
 0x1aa   : > { %6433 = vmatpush3.bf16.msra.mxu0 %v7498_v29 }
 0x1ab   : > { %5784 = vmatmul.mubr.f32.gmra.mrb[6].mxu1 %v7495_v4  ;;  %5553 = vmatmul.mubr.f32.gmra.mrb[44].mxu0 %v7517_v47 }
 0x1ac   : > { %5786 = vmatprep.mubr.f32.mxu1 %v7503_v37  ;;  %5555 = vmatprep.mubr.f32.mxu0 %v7522_v56 }
 0x1ad   : > { %6365 = vmatpush3.bf16.msra.mxu1 %v6362_v26  ;;  %6435 = vmatprep.subr.bf16.mxu0 %v7515_v18  ;;  %v2543_v26 = vld [vmem:[#allocation2 + $0x6f] sm:$0xff] }
 0x1ae   : > { %6367 = vmatprep.subr.bf16.mxu1 %v6366_v55  ;;  %6437 = vmatpush3.bf16.msra.mxu0 %v7515_v18 }
 0x1af   : > { %5787 = vmatmul.mubr.f32.gmra.mrb[8].mxu1 %v7506_v1  ;;  %5556 = vmatmul.mubr.f32.gmra.mrb[46].mxu0 %v7529_v21 }
 0x1b0   : > { %5789 = vmatprep.mubr.f32.mxu1 %v7512_v13  ;;  %5558 = vmatprep.mubr.f32.mxu0 %v7534_v34 }
 0x1b1   : > { %6369 = vmatpush3.bf16.msra.mxu1 %v6366_v55  ;;  %6439 = vmatprep.subr.bf16.mxu0 %v7527_v12  ;;  %v2547_v55 = vld [vmem:[#allocation2 + $0xaf] sm:$0xff] }
 0x1b2   : > { %6371 = vmatprep.subr.bf16.mxu1 %v6370_v25  ;;  %6441 = vmatpush3.bf16.msra.mxu0 %v7527_v12 }
 0x1b3   : > { %5790 = vmatmul.mubr.f32.gmra.mrb[10].mxu1 %v7517_v47  ;;  %5559 = vmatmul.mubr.f32.gmra.mrb[48].mxu0 %v7541_v52 }
 0x1b4   : > { %5792 = vmatprep.mubr.f32.mxu1 %v7522_v56  ;;  %5561 = vmatprep.mubr.f32.mxu0 %v7546_v2 }
 0x1b5   : > { %6373 = vmatpush3.bf16.msra.mxu1 %v6370_v25  ;;  %6443 = vmatprep.subr.bf16.mxu0 %v7539_v43  ;;  %v2891_v25 = vld [vmem:[#allocation3 + $0x3e0] sm:$0xff] }
 0x1b6   : > { %6375 = vmatprep.subr.bf16.mxu1 %v6374_v54  ;;  %6445 = vmatpush3.bf16.msra.mxu0 %v7539_v43 }
 0x1b7   : > { %5793 = vmatmul.mubr.f32.gmra.mrb[12].mxu1 %v7529_v21  ;;  %5562 = vmatmul.mubr.f32.gmra.mrb[50].mxu0 %v7551_v22 }
 0x1b8   : > { %5795 = vmatprep.mubr.f32.mxu1 %v7534_v34  ;;  %5564 = vmatprep.mubr.f32.mxu0 %v7556_v31 }
 0x1b9   : > { %6377 = vmatpush3.bf16.msra.mxu1 %v6374_v54  ;;  %v2553_v54 = vld [vmem:[#allocation2 + $0x10f] sm:$0xff] }
 0x1ba   : > { %6379 = vmatprep.subr.bf16.mxu1 %v6378_v24 }
 0x1bb   : > { %5796 = vmatmul.mubr.f32.gmra.mrb[14].mxu1 %v7541_v52  ;;  %5565 = vmatmul.mubr.f32.gmra.mrb[52].mxu0 %v7560_v48 }
 0x1bc   : > { %5798 = vmatprep.mubr.f32.mxu1 %v7546_v2  ;;  %5567 = vmatprep.mubr.f32.mxu0 %v7564_v57 }
 0x1bd   : > { %6381 = vmatpush3.bf16.msra.mxu1 %v6378_v24  ;;  %v2557_v24 = vld [vmem:[#allocation2 + $0x14f] sm:$0xff] }
 0x1be   : > { %6383 = vmatprep.subr.bf16.mxu1 %v6382_v49 }
 0x1bf   : > { %5799 = vmatmul.mubr.f32.gmra.mrb[16].mxu1 %v7551_v22  ;;  %5568 = vmatmul.mubr.f32.gmra.mrb[54].mxu0 %v7568_v60 }
 0x1c0   : > { %5801 = vmatprep.mubr.f32.mxu1 %v7556_v31  ;;  %5570 = vmatprep.mubr.f32.mxu0 %v7572_v15 }
 0x1c3   : > { %5802 = vmatmul.mubr.f32.gmra.mrb[18].mxu1 %v7560_v48  ;;  %5571 = vmatmul.mubr.f32.gmra.mrb[56].mxu0 %v7576_v40 }
 0x1c4   : > { %5804 = vmatprep.mubr.f32.mxu1 %v7564_v57  ;;  %5573 = vmatprep.mubr.f32.mxu0 %v7580_v42 }
 0x1c7   : > { %5805 = vmatmul.mubr.f32.gmra.mrb[20].mxu1 %v7568_v60  ;;  %5574 = vmatmul.mubr.f32.gmra.mrb[58].mxu0 %v7584_v59 }
 0x1c8   : > { %5807 = vmatprep.mubr.f32.mxu1 %v7572_v15  ;;  %5576 = vmatprep.mubr.f32.mxu0 %v7588_v53 }
 0x1cb   : > { %5808 = vmatmul.mubr.f32.gmra.mrb[22].mxu1 %v7576_v40  ;;  %5577 = vmatmul.mubr.f32.gmra.mrb[60].mxu0 %v7592_v30 }
 0x1cc   : > { %5810 = vmatprep.mubr.f32.mxu1 %v7580_v42  ;;  %5579 = vmatprep.mubr.f32.mxu0 %v7596_v11 }
 0x1cf   : > { %5811 = vmatmul.mubr.f32.gmra.mrb[24].mxu1 %v7584_v59  ;;  %5580 = vmatmul.mubr.f32.gmra.mrb[62].mxu0 %v7600_v0 }
 0x1d0   : > { %5813 = vmatprep.mubr.f32.mxu1 %v7588_v53  ;;  %6014 = vmatprep.mubr.f32.mxu0 %v7470_v14  ;;  %v2881_v14 = vld [vmem:[#allocation3 + $0x390] sm:$0xff] }
 0x1d3   : > { %5814 = vmatmul.mubr.f32.gmra.mrb[26].mxu1 %v7592_v30  ;;  %6015 = vmatmul.mubr.f32.vlgmr.msra.gmra.mrb[64].mxu0 %v7475_v50  ;;  %v2540_v50 = vld [vmem:[#allocation2 + $0x47] sm:$0xff] }
 0x1d4   : > { %5816 = vmatprep.mubr.f32.mxu1 %v7596_v11  ;;  %6017 = vmatprep.mubr.f32.mxu0 %v7482_v58  ;;  %v6386_v58 = vpack.c.bf16 %v2882_v63, %v2881_v14  ;;  %v2565_v14 = vld [vmem:[#allocation2 + $0x1cf] sm:$0xff]  ;;  %v2566_v63 = vld [vmem:[#allocation2 + $0x1e7] sm:$0xff] }
 0x1d7   : > { %5817 = vmatmul.mubr.f32.gmra.mrb[28].mxu1 %v7600_v0  ;;  %6018 = vmatmul.mubr.f32.gmra.mrb[66].mxu0 %v7486_v44  ;;  %v2884_v44 = vld [vmem:[#allocation3 + $0x3a8] sm:$0xff] }
 0x1d8   : > { %5819 = vmatprep.mubr.f32.mxu1 %v7611_v19  ;;  %6020 = vmatprep.mubr.f32.mxu0 %v7492_v20  ;;  %v6390_v20 = vpack.c.bf16 %v2884_v44, %v2883_v61  ;;  %v2569_v61 = vld [vmem:[#allocation2 + $0x20f] sm:$0xff] }
 0x1d9   : > { %v2571_v44 = vld [vmem:[#allocation2 + $0x22f] sm:$0xff] }
 0x1db   : > { %5820 = vmatmul.mubr.f32.gmra.mrb[30].mxu1 %v7616_v41  ;;  %6021 = vmatmul.mubr.f32.gmra.mrb[68].mxu0 %v7495_v4  ;;  %v2886_v4 = vld [vmem:[#allocation3 + $0x3b8] sm:$0xff] }
 0x1dc   : > { %5854 = vmatprep.mubr.f32.mxu1 %v2540_v50  ;;  %6023 = vmatprep.mubr.f32.mxu0 %v7503_v37  ;;  %v6394_v37 = vpack.c.bf16 %v2886_v4, %v2885_v9  ;;  %v2567_v50 = vld [vmem:[#allocation2 + $0x1ef] sm:$0xff] }
 0x1dd   : > { %v2849_v9 = vld [vmem:[#allocation2 + $0x70] sm:$0xff]  ;;  %v2850_v4 = vld [vmem:[#allocation2 + $0x88] sm:$0xff] }
 0x1df   : > { %5855 = vmatmul.mubr.f32.vlgmr.msra.gmra.mrb[0].mxu1 %v2541_v28  ;;  %6024 = vmatmul.mubr.f32.gmra.mrb[70].mxu0 %v7506_v1  ;;  %v2545_v1 = vld [vmem:[#allocation2 + $0x8f] sm:$0xff]  ;;  %v2570_v28 = vld [vmem:[#allocation2 + $0x227] sm:$0xff] }
 0x1e0   : > { %6385 = vmatpush3.bf16.msra.mxu1 %v6382_v49  ;;  %5857 = vmatprep.mubr.f32.mxu1 %v2542_v3  ;;  %v2562_v49 = vld [vmem:[#allocation2 + $0x1a7] sm:$0xff] }
 0x1e1   : > { %6387 = vmatprep.subr.bf16.mxu1 %v6386_v58  ;;  %6026 = vmatprep.mubr.f32.mxu0 %v7512_v13  ;;  %v2888_v13 = vld [vmem:[#allocation3 + $0x3c8] sm:$0xff] }
 0x1e2   : > { %v2846_v3 = vld [vmem:[#allocation2 + $0x48] sm:$0xff] }
 0x1e3   : > { %5858 = vmatmul.mubr.f32.gmra.mrb[2].mxu1 %v2543_v26  ;;  %6027 = vmatmul.mubr.f32.gmra.mrb[72].mxu0 %v7517_v47  ;;  %v6398_v47 = vpack.c.bf16 %v2888_v13, %v2887_v7  ;;  %v2848_v26 = vld [vmem:[#allocation2 + $0x68] sm:$0xff]  ;;  %v2857_v7 = vld [vmem:[#allocation2 + $0xf0] sm:$0xff] }
 0x1e4   : > { %5860 = vmatprep.mubr.f32.mxu1 %v2544_v38  ;;  %6389 = vmatpush3.bf16.msra.mxu1 %v6386_v58  ;;  %v2568_v58 = vld [vmem:[#allocation2 + $0x207] sm:$0xff]  ;;  %v2851_v38 = vld [vmem:[#allocation2 + $0x90] sm:$0xff] }
 0x1e5   : > { %6029 = vmatprep.mubr.f32.mxu0 %v7522_v56  ;;  %6391 = vmatprep.subr.bf16.mxu1 %v6390_v20  ;;  %v2890_v56 = vld [vmem:[#allocation3 + $0x3d8] sm:$0xff]  ;;  %v2859_v13 = vld [vmem:[#allocation2 + $0x110] sm:$0xff] }
 0x1e6   : > { %v6402_v6 = vpack.c.bf16 %v2890_v56, %v2889_v16  ;;  %v2866_v16 = vld [vmem:[#allocation2 + $0x188] sm:$0xff]  ;;  %v2867_v56 = vld [vmem:[#allocation2 + $0x190] sm:$0xff] }
 0x1e7   : > { %5861 = vmatmul.mubr.f32.gmra.mrb[4].mxu1 %v2545_v1  ;;  %6030 = vmatmul.mubr.f32.gmra.mrb[74].mxu0 %v7529_v21  ;;  %v2550_v21 = vld [vmem:[#allocation2 + $0xe7] sm:$0xff] }
 0x1e8   : > { %5863 = vmatprep.mubr.f32.mxu1 %v2546_v46  ;;  %6393 = vmatpush3.bf16.msra.mxu1 %v6390_v20  ;;  %v2847_v20 = vld [vmem:[#allocation2 + $0x50] sm:$0xff]  ;;  %v2854_v1 = vld [vmem:[#allocation2 + $0xc8] sm:$0xff] }
 0x1e9   : > { %6032 = vmatprep.mubr.f32.mxu0 %v7534_v34  ;;  %6395 = vmatprep.subr.bf16.mxu1 %v6394_v37  ;;  %v6406_v34 = vpack.c.bf16 %v2892_v8, %v2891_v25  ;;  %v2855_v46 = vld [vmem:[#allocation2 + $0xd0] sm:$0xff]  ;;  %v2872_v25 = vld [vmem:[#allocation2 + $0x1e8] sm:$0xff] }
 0x1ea   : > { %v2874_v8 = vld [vmem:[#allocation2 + $0x208] sm:$0xff] }
 0x1eb   : > { %5864 = vmatmul.mubr.f32.gmra.mrb[6].mxu1 %v2547_v55  ;;  %6033 = vmatmul.mubr.f32.gmra.mrb[76].mxu0 %v7541_v52  ;;  %v2894_v52 = vld [vmem:[#allocation3 + $0x3f8] sm:$0xff]  ;;  %v2861_v55 = vld [vmem:[#allocation2 + $0x130] sm:$0xff] }
 0x1ec   : > { %5866 = vmatprep.mubr.f32.mxu1 %v2548_v32  ;;  %6035 = vmatprep.mubr.f32.mxu0 %v7546_v2  ;;  %v6410_v2 = vpack.c.bf16 %v2894_v52, %v2893_v45  ;;  %v2864_v32 = vld [vmem:[#allocation2 + $0x168] sm:$0xff] }
 0x1ed   : > { %6397 = vmatpush3.bf16.msra.mxu1 %v6394_v37  ;;  %v2852_v37 = vld [vmem:[#allocation2 + $0xa8] sm:$0xff] }
 0x1ee   : > { %6399 = vmatprep.subr.bf16.mxu1 %v6398_v47 }
 0x1ef   : > { %5867 = vmatmul.mubr.f32.gmra.mrb[8].mxu1 %v2549_v27  ;;  %6036 = vmatmul.mubr.f32.gmra.mrb[78].mxu0 %v7551_v22  ;;  %v2556_v22 = vld [vmem:[#allocation2 + $0x147] sm:$0xff] }
 0x1f0   : > { %5869 = vmatprep.mubr.f32.mxu1 %v2550_v21  ;;  %6038 = vmatprep.mubr.f32.mxu0 %v7556_v31  ;;  %v2558_v31 = vld [vmem:[#allocation2 + $0x167] sm:$0xff]  ;;  %v2871_v21 = vld [vmem:[#allocation2 + $0x1d0] sm:$0xff] }
 0x1f1   : > { %6401 = vmatpush3.bf16.msra.mxu1 %v6398_v47  ;;  %v2863_v47 = vld [vmem:[#allocation2 + $0x150] sm:$0xff]  ;;  %v2868_v27 = vld [vmem:[#allocation2 + $0x1a8] sm:$0xff] }
 0x1f2   : > { %6403 = vmatprep.subr.bf16.mxu1 %v6402_v6 }
 0x1f3   : > { %5870 = vmatmul.mubr.f32.gmra.mrb[10].mxu1 %v2551_v23  ;;  %6039 = vmatmul.mubr.f32.gmra.mrb[80].mxu0 %v7560_v48  ;;  %v2561_v48 = vld [vmem:[#allocation2 + $0x18f] sm:$0xff] }
 0x1f4   : > { %5872 = vmatprep.mubr.f32.mxu1 %v2552_v10  ;;  %6041 = vmatprep.mubr.f32.mxu0 %v7564_v57  ;;  %v2563_v57 = vld [vmem:[#allocation2 + $0x1af] sm:$0xff] }
 0x1f5   : > { %6405 = vmatpush3.bf16.msra.mxu1 %v6402_v6  ;;  %v2870_v6 = vld [vmem:[#allocation2 + $0x1c8] sm:$0xff]  ;;  %v2875_v23 = vld [vmem:[#allocation2 + $0x210] sm:$0xff] }
 0x1f6   : > { %6407 = vmatprep.subr.bf16.mxu1 %v6406_v34 }
 0x1f7   : > { %5873 = vmatmul.mubr.f32.gmra.mrb[12].mxu1 %v2553_v54  ;;  %6042 = vmatmul.mubr.f32.gmra.mrb[82].mxu0 %v7568_v60  ;;  %v2564_v60 = vld [vmem:[#allocation2 + $0x1c7] sm:$0xff] }
 0x1f8   : > { %5875 = vmatprep.mubr.f32.mxu1 %v2554_v5 }
 0x1f9   : > { %6409 = vmatpush3.bf16.msra.mxu1 %v6406_v34  ;;  %v6901_v34 = vld [vmem:[#allocation2] sm:$0xff] }
 0x1fa   : > { %6411 = vmatprep.subr.bf16.mxu1 %v6410_v2 }
 0x1fb   : > { %5876 = vmatmul.mubr.f32.gmra.mrb[14].mxu1 %v2555_v17 }
 0x1fc   : > { %5878 = vmatprep.mubr.f32.mxu1 %v2556_v22 }
 0x1fd   : > { %6413 = vmatpush3.bf16.msra.mxu1 %v6410_v2 }
 0x1fe   : > { %6478 = vmatprep.subr.bf16.mxu1 %v7428_v36 }
 0x1ff   : > { %5879 = vmatmul.mubr.f32.gmra.mrb[16].mxu1 %v2557_v24 }
 0x200   : > { %5881 = vmatprep.mubr.f32.mxu1 %v2558_v31 }
 0x203   : > { %5882 = vmatmul.mubr.f32.gmra.mrb[18].mxu1 %v2559_v35 }
 0x204   : > { %5884 = vmatprep.mubr.f32.mxu1 %v2560_v39 }
 0x207   : > { %5885 = vmatmul.mubr.f32.gmra.mrb[20].mxu1 %v2561_v48 }
 0x208   : > { %5887 = vmatprep.mubr.f32.mxu1 %v2562_v49 }
 0x20b   : > { %5888 = vmatmul.mubr.f32.gmra.mrb[22].mxu1 %v2563_v57 }
 0x20c   : > { %5890 = vmatprep.mubr.f32.mxu1 %v2564_v60 }
 0x20f   : > { %5891 = vmatmul.mubr.f32.gmra.mrb[24].mxu1 %v2565_v14 }
 0x210   : > { %5893 = vmatprep.mubr.f32.mxu1 %v2566_v63  ;;  %v4361_v63 = vld [vmem:[%s8770_s5] sm:$0xff] }
 0x213   : > { %5894 = vmatmul.mubr.f32.gmra.mrb[26].mxu1 %v2567_v50  ;;  %v4362_v50 = vld [vmem:[%s8770_s5 + $0x8] sm:$0xff] }
 0x214   : > { %5896 = vmatprep.mubr.f32.mxu1 %v2568_v58 }
 0x217   : > { %5897 = vmatmul.mubr.f32.gmra.mrb[28].mxu1 %v2569_v61 }
 0x218   : > { %5899 = vmatprep.mubr.f32.mxu1 %v2570_v28  ;;  %v6446_v28 = vpack.c.bf16 %v4362_v50, %v4361_v63  ;;  %v4376_v63 = vld [vmem:[%s8770_s5 + $0x78] sm:$0xff] }
 0x21a   : > { %6447 = vmatprep.subr.bf16.mxu0 %v6446_v28 }
 0x21b   : > { %5900 = vmatmul.mubr.f32.gmra.mrb[30].mxu1 %v2571_v44  ;;  %6449 = vmatpush3.bf16.msra.mxu0 %v6446_v28  ;;  %v4363_v44 = vld [vmem:[%s8770_s5 + $0x10] sm:$0xff] }
 0x21c   : > { %5934 = vmatprep.mubr.f32.mxu1 %v2846_v3  ;;  %v4364_v3 = vld [vmem:[%s8770_s5 + $0x18] sm:$0xff] }
 0x21f   : > { %5935 = vmatmul.mubr.f32.vlgmr.msra.gmra.mrb[0].mxu1 %v2847_v20 }
 0x220   : > { %6486 = vmatpush3.bf16.msra.mxu1 %v7428_v36  ;;  %5937 = vmatprep.mubr.f32.mxu1 %v2848_v26  ;;  %v2853_v36 = vld [vmem:[#allocation2 + $0xb0] sm:$0xff]  ;;  %v6450_v26 = vpack.c.bf16 %v4364_v3, %v4363_v44 }
 0x221   : > { %6479 = vmatprep.subr.bf16.mxu1 %v7461_v33 }
 0x222   : > { %6451 = vmatprep.subr.bf16.mxu0 %v6450_v26 }
 0x223   : > { %5938 = vmatmul.mubr.f32.gmra.mrb[2].mxu1 %v2849_v9  ;;  %6453 = vmatpush3.bf16.msra.mxu0 %v6450_v26 }
 0x224   : > { %5940 = vmatprep.mubr.f32.mxu1 %v2850_v4  ;;  %6487 = vmatpush3.bf16.msra.mxu1 %v7461_v33  ;;  %v2856_v33 = vld [vmem:[#allocation2 + $0xe8] sm:$0xff] }
 0x225   : > { %6480 = vmatprep.subr.bf16.mxu1 %v7467_v62 }
 0x227   : > { %5941 = vmatmul.mubr.f32.gmra.mrb[4].mxu1 %v2851_v38  ;;  %v4365_v38 = vld [vmem:[%s8770_s5 + $0x20] sm:$0xff] }
 0x228   : > { %5943 = vmatprep.mubr.f32.mxu1 %v2852_v37  ;;  %6488 = vmatpush3.bf16.msra.mxu1 %v7467_v62  ;;  %v2858_v62 = vld [vmem:[#allocation2 + $0x108] sm:$0xff] }
 0x229   : > { %6481 = vmatprep.subr.bf16.mxu1 %v7478_v51  ;;  %v4366_v37 = vld [vmem:[%s8770_s5 + $0x28] sm:$0xff] }
 0x22b   : > { %5944 = vmatmul.mubr.f32.gmra.mrb[6].mxu1 %v2853_v36 }
 0x22c   : > { %5946 = vmatprep.mubr.f32.mxu1 %v2854_v1  ;;  %6489 = vmatpush3.bf16.msra.mxu1 %v7478_v51  ;;  %v2860_v51 = vld [vmem:[#allocation2 + $0x128] sm:$0xff]  ;;  %v6454_v1 = vpack.c.bf16 %v4366_v37, %v4365_v38 }
 0x22d   : > { %6482 = vmatprep.subr.bf16.mxu1 %v7498_v29 }
 0x22e   : > { %6455 = vmatprep.subr.bf16.mxu0 %v6454_v1 }
 0x22f   : > { %5947 = vmatmul.mubr.f32.gmra.mrb[8].mxu1 %v2855_v46  ;;  %6457 = vmatpush3.bf16.msra.mxu0 %v6454_v1 }
 0x230   : > { %5949 = vmatprep.mubr.f32.mxu1 %v2856_v33  ;;  %6490 = vmatpush3.bf16.msra.mxu1 %v7498_v29  ;;  %v2862_v29 = vld [vmem:[#allocation2 + $0x148] sm:$0xff] }
 0x231   : > { %6483 = vmatprep.subr.bf16.mxu1 %v7515_v18 }
 0x233   : > { %5950 = vmatmul.mubr.f32.gmra.mrb[10].mxu1 %v2857_v7 }
 0x234   : > { %5952 = vmatprep.mubr.f32.mxu1 %v2858_v62  ;;  %6491 = vmatpush3.bf16.msra.mxu1 %v7515_v18  ;;  %v2865_v18 = vld [vmem:[#allocation2 + $0x170] sm:$0xff] }
 0x235   : > { %6484 = vmatprep.subr.bf16.mxu1 %v7527_v12  ;;  %v4367_v62 = vld [vmem:[%s8770_s5 + $0x30] sm:$0xff] }
 0x237   : > { %5953 = vmatmul.mubr.f32.gmra.mrb[12].mxu1 %v2859_v13  ;;  %v4368_v13 = vld [vmem:[%s8770_s5 + $0x38] sm:$0xff] }
 0x238   : > { %5955 = vmatprep.mubr.f32.mxu1 %v2860_v51  ;;  %6492 = vmatpush3.bf16.msra.mxu1 %v7527_v12  ;;  %v2869_v12 = vld [vmem:[#allocation2 + $0x1b0] sm:$0xff]  ;;  %v6458_v51 = vpack.c.bf16 %v4368_v13, %v4367_v62 }
 0x239   : > { %6485 = vmatprep.subr.bf16.mxu1 %v7539_v43 }
 0x23a   : > { %6459 = vmatprep.subr.bf16.mxu0 %v6458_v51 }
 0x23b   : > { %5956 = vmatmul.mubr.f32.gmra.mrb[14].mxu1 %v2861_v55  ;;  %6461 = vmatpush3.bf16.msra.mxu0 %v6458_v51 }
 0x23c   : > { %5958 = vmatprep.mubr.f32.mxu1 %v2862_v29  ;;  %6493 = vmatpush3.bf16.msra.mxu1 %v7539_v43  ;;  %v2873_v43 = vld [vmem:[#allocation2 + $0x1f0] sm:$0xff] }
 0x23f   : > { %5959 = vmatmul.mubr.f32.gmra.mrb[16].mxu1 %v2863_v47  ;;  %v4369_v47 = vld [vmem:[%s8770_s5 + $0x40] sm:$0xff] }
 0x240   : > { %5961 = vmatprep.mubr.f32.mxu1 %v2864_v32  ;;  %v4370_v32 = vld [vmem:[%s8770_s5 + $0x48] sm:$0xff] }
 0x243   : > { %5962 = vmatmul.mubr.f32.gmra.mrb[18].mxu1 %v2865_v18 }
 0x244   : > { %5964 = vmatprep.mubr.f32.mxu1 %v2866_v16  ;;  %v6462_v16 = vpack.c.bf16 %v4370_v32, %v4369_v47 }
 0x246   : > { %6463 = vmatprep.subr.bf16.mxu0 %v6462_v16 }
 0x247   : > { %5965 = vmatmul.mubr.f32.gmra.mrb[20].mxu1 %v2867_v56  ;;  %6465 = vmatpush3.bf16.msra.mxu0 %v6462_v16 }
 0x248   : > { %5967 = vmatprep.mubr.f32.mxu1 %v2868_v27  ;;  %v4371_v27 = vld [vmem:[%s8770_s5 + $0x50] sm:$0xff] }
 0x24b   : > { %5968 = vmatmul.mubr.f32.gmra.mrb[22].mxu1 %v2869_v12  ;;  %v4372_v12 = vld [vmem:[%s8770_s5 + $0x58] sm:$0xff] }
 0x24c   : > { %5970 = vmatprep.mubr.f32.mxu1 %v2870_v6 }
 0x24f   : > { %5971 = vmatmul.mubr.f32.gmra.mrb[24].mxu1 %v2871_v21  ;;  %v6466_v21 = vpack.c.bf16 %v4372_v12, %v4371_v27  ;;  %v7804_v27 = vld [vmem:[%s8769_s4] ss:$0 sm:$0xff] }
 0x250   : > { %5973 = vmatprep.mubr.f32.mxu1 %v2872_v25 }
 0x251   : > { %6467 = vmatprep.subr.bf16.mxu0 %v6466_v21 }
 0x252   : > { %6469 = vmatpush3.bf16.msra.mxu0 %v6466_v21 }
 0x253   : > { %5974 = vmatmul.mubr.f32.gmra.mrb[26].mxu1 %v2873_v43  ;;  %v4373_v43 = vld [vmem:[%s8770_s5 + $0x60] sm:$0xff] }
 0x254   : > { %5976 = vmatprep.mubr.f32.mxu1 %v2874_v8  ;;  %v4374_v8 = vld [vmem:[%s8770_s5 + $0x68] sm:$0xff] }
 0x257   : > { %5977 = vmatmul.mubr.f32.gmra.mrb[28].mxu1 %v2875_v23 }
 0x258   : > { %5979 = vmatprep.mubr.f32.mxu1 %v6901_v34 }
 0x25b   : > { %5980 = vmatmul.mubr.f32.gmra.mrb[30].mxu1 %v6901_v34  ;;  %v6470_v34 = vpack.c.bf16 %v4374_v8, %v4373_v43 }
 0x25c   : > { %6044 = vmatprep.mubr.f32.mxu1 %v7572_v15 }
 0x25d   : > { %6471 = vmatprep.subr.bf16.mxu0 %v6470_v34 }
 0x25e   : > { %6473 = vmatpush3.bf16.msra.mxu0 %v6470_v34 }
 0x25f   : > { %6045 = vmatmul.mubr.f32.vlgmr.msra.gmra.mrb[20].mxu1 %v7576_v40  ;;  %v3182_v40 = vld [vmem:[#allocation2 + $0x229] sm:$0xff] }
 0x260   : > { %6047 = vmatprep.mubr.f32.mxu1 %v7580_v42 }
 0x263   : > { %6048 = vmatmul.mubr.f32.gmra.mrb[22].mxu1 %v7584_v59 }
 0x264   : > { %6050 = vmatprep.mubr.f32.mxu1 %v7588_v53  ;;  %v3183_v53 = vld [vmem:[#allocation2 + $0x231] sm:$0xff] }
 0x266   : > { %v7655_v10 = vpop.f32.mrb[32].mxu0 }
 0x267   : > { %6051 = vmatmul.mubr.f32.gmra.mrb[24].mxu1 %v7592_v30  ;;  %v7658_v45 = vpop.f32.mrb[33].mxu0 }
 0x268   : > { %6053 = vmatprep.mubr.f32.mxu1 %v7596_v11 }
 0x26a   : > { %v7661_v52 = vpop.f32.mrb[34].mxu0 }
 0x26b   : > { %6054 = vmatmul.mubr.f32.gmra.mrb[26].mxu1 %v7600_v0  ;;  %v7664_v15 = vpop.f32.mrb[35].mxu0 }
 0x26c   : > { %6056 = vmatprep.mubr.f32.mxu1 %v7611_v19 }
 0x26e   : > { %v7667_v42 = vpop.f32.mrb[36].mxu0 }
 0x26f   : > { %6057 = vmatmul.mubr.f32.gmra.mrb[28].mxu1 %v7616_v41  ;;  %v7670_v59 = vpop.f32.mrb[37].mxu0 }
 0x270   : > { %6059 = vmatprep.mubr.f32.mxu1 %v3182_v40 }
 0x272   : > { %v7672_v30 = vpop.f32.mrb[38].mxu0 }
 0x273   : > { %6060 = vmatmul.mubr.f32.gmra.mrb[30].mxu1 %v3183_v53  ;;  %v7674_v11 = vpop.f32.mrb[39].mxu0  ;;  %v4375_v53 = vld [vmem:[%s8770_s5 + $0x70] sm:$0xff] }
 0x274   : > { %v6474_v28 = vpack.c.bf16 %v4376_v63, %v4375_v53 }
 0x276   : > { %v7676_v54 = vpop.f32.mrb[40].mxu0  ;;  %6475 = vmatprep.subr.bf16.mxu0 %v6474_v28 }
 0x277   : > { %v7678_v0 = vpop.f32.mrb[41].mxu0  ;;  %6477 = vmatpush3.bf16.msra.mxu0 %v6474_v28 }
 0x27a   : > { %v7680_v2 = vpop.f32.mrb[42].mxu0 }
 0x27b   : > { %v7682_v19 = vpop.f32.mrb[43].mxu0 }
 0x27e   : > { %v7684_v5 = vpop.f32.mrb[44].mxu0 }
 0x27f   : > { %v7686_v41 = vpop.f32.mrb[45].mxu0 }
 0x282   : > { %v7688_v17 = vpop.f32.mrb[46].mxu0 }
 0x283   : > { %v7690_v22 = vpop.f32.mrb[47].mxu0 }
 0x286   : > { %v7692_v24 = vpop.f32.mrb[48].mxu0 }
 0x287   : > { %v7694_v31 = vpop.f32.mrb[49].mxu0 }
 0x28a   : > { %v7696_v35 = vpop.f32.mrb[50].mxu0 }
 0x28b   : > { %v7698_v39 = vpop.f32.mrb[51].mxu0 }
 0x28e   : > { %v7700_v48 = vpop.f32.mrb[52].mxu0 }
 0x28f   : > { %v7702_v49 = vpop.f32.mrb[53].mxu0 }
 0x292   : > { %v7704_v57 = vpop.f32.mrb[54].mxu0 }
 0x293   : > { %8860 = vst [vmem:[#allocation7_spill] sm:$0xff] %v7704_v57  ;;  %v7706_v60 = vpop.f32.mrb[55].mxu0 }
 0x294   : > { %8861 = vst [vmem:[#allocation6_spill] sm:$0xff] %v7706_v60 }
 0x296   : > { %v7708_v14 = vpop.f32.mrb[56].mxu0 }
 0x297   : > { %8862 = vst [vmem:[#allocation9_spill] sm:$0xff] %v7708_v14  ;;  %v7716_v58 = vpop.f32.mrb[57].mxu0 }
 0x298   : > { %8863 = vst [vmem:[#allocation8_spill] sm:$0xff] %v7716_v58 }
 0x29a   : > { %v7718_v61 = vpop.f32.mrb[58].mxu0 }
 0x29b   : > { %8864 = vst [vmem:[#allocation11_spill] sm:$0xff] %v7718_v61  ;;  %v7726_v20 = vpop.f32.mrb[59].mxu0 }
 0x29c   : > { %8865 = vst [vmem:[#allocation10_spill] sm:$0xff] %v7726_v20 }
 0x29e   : > { %v7728_v9 = vpop.f32.mrb[60].mxu0 }
 0x29f   : > { %8866 = vst [vmem:[#allocation12_spill] sm:$0xff] %v7728_v9  ;;  %v7730_v4 = vpop.f32.mrb[61].mxu0 }
 0x2a0   : > { %8867 = vst [vmem:[#allocation14_spill] sm:$0xff] %v7730_v4 }
 0x2a2   : > { %v7738_v36 = vpop.f32.mrb[62].mxu0 }
 0x2a3   : > { %8868 = vst [vmem:[#allocation13_spill] sm:$0xff] %v7738_v36  ;;  %v7740_v46 = vpop.f32.mrb[63].mxu0 }
 0x2a4   : > { %8869 = vst [vmem:[#allocation15_spill] sm:$0xff] %v7740_v46 }
 0x2a6   : > { %v6016_v33 = vpop.f32.mrb[64].mxu0 }
 0x2a7   : > { %v3267_v7 = vpop.f32.mrb[65].mxu0 }
 0x2aa   : > { %v6019_v55 = vpop.f32.mrb[66].mxu0 }
 0x2ab   : > { %v3277_v29 = vpop.f32.mrb[67].mxu0 }
 0x2ae   : > { %v6022_v18 = vpop.f32.mrb[68].mxu0 }
 0x2af   : > { %v3287_v56 = vpop.f32.mrb[69].mxu0 }
 0x2b2   : > { %v7760_v6 = vpop.f32.mrb[70].mxu0 }
 0x2b3   : > { %v7762_v25 = vpop.f32.mrb[71].mxu0 }
 0x2b6   : > { %v7770_v23 = vpop.f32.mrb[72].mxu0 }
 0x2b7   : > { %v7772_v40 = vpop.f32.mrb[73].mxu0 }
 0x2ba   : > { %v7780_v50 = vpop.f32.mrb[74].mxu0 }
 0x2bb   : > { %v7782_v44 = vpop.f32.mrb[75].mxu0 }
 0x2be   : > { %v7784_v3 = vpop.f32.mrb[76].mxu0 }
 0x2bf   : > { %v7786_v26 = vpop.f32.mrb[77].mxu0 }
 0x2c2   : > { %v7788_v38 = vpop.f32.mrb[78].mxu0 }
 0x2c3   : > { %v7790_v37 = vpop.f32.mrb[79].mxu0 }
 0x2c6   : > { %v7792_v1 = vpop.f32.mrb[80].mxu0 }
 0x2c7   : > { %v7794_v62 = vpop.f32.mrb[81].mxu0 }
 0x2ca   : > { %v7796_v13 = vpop.f32.mrb[82].mxu0 }
 0x2cb   : > { %v7798_v51 = vpop.f32.mrb[83].mxu0 }
 0x2f2   : > { %v5936_v47 = vpop.f32.mrb[0].mxu1 }
 0x2f3   : > { %v6494_v32 = vadd.f32 %v5936_v47, %v7655_v10  ;;  %v2961_v16 = vpop.f32.mrb[1].mxu1 }
 0x2f4   : > { %v6496_v12 = vadd.f32 %v2961_v16, %v7658_v45 }
 0x2f5   : > { %v6495_v21 = vadd.f32 %v6494_v32, %v6016_v33 }
 0x2f6   : > { %v6497_v43 = vadd.f32 %v6496_v12, %v3267_v7  ;;  %v5939_v8 = vpop.f32.mrb[2].mxu1 }
 0x2f7   : > { %v7808_v34 = vadd.f32 %v6495_v21, %v7804_v27  ;;  %v6498_v53 = vadd.f32 %v5939_v8, %v7661_v52  ;;  %v2971_v63 = vpop.f32.mrb[3].mxu1 }
 0x2f8   : > { %v7812_v28 = vadd.f32 %v6497_v43, %v7804_v27  ;;  %v6500_v10 = vadd.f32 %v2971_v63, %v7664_v15 }
 0x2f9   : > { %v7816_v47 = vmul.f32 0.70710677, %v7808_v34  ;;  %v6499_v46 = vadd.f32 %v6498_v53, %v6019_v55 }
 0x2fa   : > { %v7819_v45 = vmul.f32 0.70710677, %v7812_v28  ;;  %v6501_v33 = vadd.f32 %v6500_v10, %v3277_v29  ;;  %v5942_v7 = vpop.f32.mrb[4].mxu1 }
 0x2fb   : > { %v3626_v32 = vand.u32 2147483647, %v7816_v47  ;;  %v7823_v16 = vadd.f32 %v6499_v46, %v7804_v27  ;;  %v6502_v52 = vadd.f32 %v5942_v7, %v7667_v42  ;;  %v2981_v12 = vpop.f32.mrb[5].mxu1  ;;  %vm3562_vm1 = vcmp.ge.f32.partialorder %v7816_v47, 0.0 }
 0x2fc   : > { %v3625_v21 = vand.u32 2147483647, %v7819_v45  ;;  %v7828_v15 = vadd.f32 %v6501_v33, %v7804_v27  ;;  %v6504_v55 = vadd.f32 %v2981_v12, %v7670_v59  ;;  %vm3561_vm2 = vcmp.ge.f32.partialorder %v7819_v45, 0.0 }
 0x2fd   : > { %v3658_v43 = vmul.f32 0.3275911, %v3626_v32  ;;  %v7832_v8 = vmul.f32 0.70710677, %v7823_v16  ;;  %v6503_v29 = vadd.f32 %v6502_v52, %v6022_v18  ;;  %v4074_v53 = vsub.f32 0.0, %v3626_v32 }
 0x2fe   : > { %v6505_v63 = vadd.f32 %v6504_v55, %v3287_v56  ;;  %v5945_v10 = vpop.f32.mrb[6].mxu1  ;;  %v7836_v42 = vmul.f32 0.70710677, %v7828_v15  ;;  %v3657_v4 = vmul.f32 0.3275911, %v3625_v21  ;;  %v4073_v59 = vsub.f32 0.0, %v3625_v21 }
 0x2ff   : > { %8870 = vst [vmem:[#allocation16_spill] sm:$0xff] %v7832_v8  ;;  %v3690_v46 = vadd.f32 1.0, %v3658_v43  ;;  %v3628_v36 = vand.u32 2147483647, %v7832_v8  ;;  %v2991_v7 = vpop.f32.mrb[7].mxu1  ;;  %v7839_v33 = vadd.f32 %v6503_v29, %v7804_v27  ;;  %v4106_v18 = vmul.f32 %v4074_v53, %v3626_v32 }
 0x300   : > { %v7842_v12 = vadd.f32 %v6505_v63, %v7804_v27  ;;  %v3627_v55 = vand.u32 2147483647, %v7836_v42  ;;  %v3689_v9 = vadd.f32 1.0, %v3657_v4  ;;  %v4105_v61 = vmul.f32 %v4073_v59, %v3625_v21 }
 0x301   : > { %8871 = vst [vmem:[#allocation17_spill] sm:$0xff] %v7839_v33  ;;  %6773 = vrcp.f32 %v3690_v46  ;;  %v4076_v56 = vsub.f32 0.0, %v3628_v36  ;;  %v7846_v20 = vmul.f32 0.70710677, %v7839_v33  ;;  %v6506_v29 = vadd.f32 %v5945_v10, %v7672_v30 }
 0x302   : > { %8872 = vst [vmem:[#allocation18_spill] sm:$0xff] %v7842_v12  ;;  %v5948_v52 = vpop.f32.mrb[8].mxu1  ;;  %v7849_v58 = vmul.f32 0.70710677, %v7842_v12  ;;  %v4139_v46 = vmul.f32 1.442695, %v4106_v18  ;;  %v6508_v63 = vadd.f32 %v2991_v7, %v7674_v11  ;;  %6775 = vrcp.f32 %v3689_v9 }
 0x303   : > { %v3001_v43 = vpop.f32.mrb[9].mxu1  ;;  %v3660_v14 = vmul.f32 0.3275911, %v3628_v36  ;;  %v4108_v53 = vmul.f32 %v4076_v56, %v3628_v36  ;;  %v4075_v60 = vsub.f32 0.0, %v3627_v55  ;;  %v6507_v57 = vadd.f32 %v6506_v29, %v7760_v6 }
 0x304   : > { %v3659_v4 = vmul.f32 0.3275911, %v3627_v55  ;;  %v3630_v21 = vand.u32 2147483647, %v7846_v20  ;;  %v6509_v59 = vadd.f32 %v6508_v63, %v7762_v25  ;;  %v4137_v33 = vmul.f32 1.442695, %v4105_v61 }
 0x305   : > { %v3629_v30 = vand.u32 2147483647, %v7849_v58  ;;  %v7860_v10 = vadd.f32 %v6507_v57, %v7804_v27  ;;  %v6510_v11 = vadd.f32 %v5948_v52, %v7676_v54  ;;  %6777 = vpow2.f32 %v4139_v46 }
 0x306   : > { %v5951_v32 = vpop.f32.mrb[10].mxu1  ;;  %v3692_v36 = vadd.f32 1.0, %v3660_v14  ;;  %v7864_v6 = vadd.f32 %v6509_v59, %v7804_v27  ;;  %v6512_v9 = vadd.f32 %v3001_v43, %v7678_v0  ;;  %v4143_v25 = vmul.f32 1.442695, %v4108_v53 }
 0x307   : > { %v7854_v8 = vpop.f32.mrb[11].mxu1  ;;  %8873 = vst [vmem:[#allocation19_spill] sm:$0xff] %v7860_v10  ;;  %v4107_v61 = vmul.f32 %v4075_v60, %v3627_v55  ;;  %v7872_v56 = vmul.f32 0.70710677, %v7860_v10  ;;  %v6511_v57 = vadd.f32 %v6510_v11, %v7770_v23  ;;  %v3691_v14 = vadd.f32 1.0, %v3659_v4 }
 0x308   : > { %8874 = vst [vmem:[#allocation20_spill] sm:$0xff] %v7864_v6  ;;  %v4078_v52 = vsub.f32 0.0, %v3630_v21  ;;  %v7879_v46 = vmul.f32 0.70710677, %v7864_v6  ;;  %v3662_v0 = vmul.f32 0.3275911, %v3630_v21  ;;  %v6513_v60 = vadd.f32 %v6512_v9, %v7772_v40 }
 0x309   : > { %8875 = vst [vmem:[#allocation21_spill] sm:$0xff] %v7872_v56  ;;  %v4077_v43 = vsub.f32 0.0, %v3629_v30  ;;  %v7882_v63 = vadd.f32 %v6511_v57, %v7804_v27  ;;  %6779 = vpow2.f32 %v4137_v33  ;;  %v3632_v23 = vand.u32 2147483647, %v7872_v56 }
 0x30a   : > { %v7867_v7 = vpop.f32.mrb[12].mxu1  ;;  %8876 = vst [vmem:[#allocation22_spill] sm:$0xff] %v7879_v46  ;;  %v6514_v53 = vadd.f32 %v5951_v32, %v7680_v2  ;;  %6781 = vrcp.f32 %v3692_v36  ;;  %v4141_v4 = vmul.f32 1.442695, %v4107_v61  ;;  %v3661_v11 = vmul.f32 0.3275911, %v3629_v30 }
 0x30b   : > { %v7869_v18 = vpop.eup %6773  ;;  %v7875_v29 = vpop.f32.mrb[13].mxu1  ;;  %8877 = vst [vmem:[#allocation23_spill] sm:$0xff] %v7882_v63  ;;  %v7890_v10 = vadd.f32 %v6513_v60, %v7804_v27  ;;  %v4110_v12 = vmul.f32 %v4078_v52, %v3630_v21  ;;  %v3631_v40 = vand.u32 2147483647, %v7879_v46  ;;  %6783 = vrcp.f32 %v3691_v14 }
 0x30c   : > { %v3786_v54 = vmul.f32 1.0614054, %v7869_v18  ;;  %v6515_v33 = vadd.f32 %v6514_v53, %v7780_v50  ;;  %v3694_v9 = vadd.f32 1.0, %v3662_v0  ;;  %v4109_v2 = vmul.f32 %v4077_v43, %v3629_v30  ;;  %v7900_v36 = vpop.eup %6775 }
 0x30d   : > { %8878 = vst [vmem:[#allocation24_spill] sm:$0xff] %v7890_v10  ;;  %v7898_v32 = vmul.f32 0.70710677, %v7882_v63  ;;  %6785 = vpow2.f32 %v4143_v25  ;;  %v4080_v60 = vsub.f32 0.0, %v3632_v23  ;;  %v7903_v21 = vmul.f32 0.70710677, %v7890_v10 }
 0x30e   : > { %v3818_v55 = vadd.f32 -1.4531521, %v3786_v54  ;;  %v7887_v59 = vpop.f32.mrb[14].mxu1  ;;  %v3664_v54 = vmul.f32 0.3275911, %v3632_v23  ;;  %6787 = vpow2.f32 %v4141_v4  ;;  %v7911_v43 = vadd.f32 %v6515_v33, %v7804_v27 }
 0x30f   : > { %v7892_v6 = vpop.f32.mrb[15].mxu1  ;;  %8879 = vst [vmem:[#allocation25_spill] sm:$0xff] %v7898_v32  ;;  %8880 = vst [vmem:[#allocation26_spill] sm:$0xff] %v7903_v21  ;;  %v7907_v50 = vpop.eup %6777  ;;  %v4147_v14 = vmul.f32 1.442695, %v4110_v12  ;;  %6789 = vrcp.f32 %v3694_v9  ;;  %v4079_v63 = vsub.f32 0.0, %v3631_v40  ;;  %v6516_v12 = vadd.f32 %v7854_v8, %v7682_v19 }
 0x310   : > { %v3850_v57 = vmul.f32 %v7869_v18, %v3818_v55  ;;  %v3693_v55 = vadd.f32 1.0, %v3661_v11  ;;  %v3663_v0 = vmul.f32 0.3275911, %v3631_v40  ;;  %8881 = vst [vmem:[#allocation27_spill] sm:$0xff] %v7911_v43  ;;  %v4145_v25 = vmul.f32 1.442695, %v4109_v2 }
 0x311   : > { %v3634_v53 = vand.u32 2147483647, %v7898_v32  ;;  %v3696_v11 = vadd.f32 1.0, %v3664_v54  ;;  %v3633_v46 = vand.u32 2147483647, %v7903_v21  ;;  %v6517_v19 = vadd.f32 %v6516_v12, %v7782_v44 }
 0x312   : > { %v3882_v61 = vadd.f32 1.4214138, %v3850_v57  ;;  %v5960_v56 = vpop.f32.mrb[16].mxu1  ;;  %v4112_v57 = vmul.f32 %v4080_v60, %v3632_v23  ;;  %6791 = vrcp.f32 %v3693_v55  ;;  %v3695_v9 = vadd.f32 1.0, %v3663_v0 }
 0x313   : > { %v7905_v52 = vpop.f32.mrb[17].mxu1  ;;  %v7921_v33 = vpop.eup %6779  ;;  %6793 = vpow2.f32 %v4147_v14  ;;  %v7924_v2 = vmul.f32 0.70710677, %v7911_v43  ;;  %v6518_v23 = vadd.f32 %v7867_v7, %v7684_v5  ;;  %v4082_v55 = vsub.f32 0.0, %v3634_v53 }
 0x314   : > { %v3914_v30 = vmul.f32 %v7869_v18, %v3882_v61  ;;  %v7928_v54 = vpop.eup %6781  ;;  %6795 = vpow2.f32 %v4145_v25  ;;  %v4151_v8 = vmul.f32 1.442695, %v4112_v57  ;;  %v3666_v43 = vmul.f32 0.3275911, %v3634_v53 }
 0x315   : > { %8882 = vst [vmem:[#allocation28_spill] sm:$0xff] %v7924_v2  ;;  %6797 = vrcp.f32 %v3696_v11  ;;  %v6519_v14 = vadd.f32 %v6518_v23, %v7784_v3  ;;  %v7933_v0 = vpop.eup %6783  ;;  %v4081_v32 = vsub.f32 0.0, %v3633_v46  ;;  %v7936_v21 = vadd.f32 %v6517_v19, %v7804_v27 }
 0x316   : > { %v3946_v4 = vadd.f32 -0.28449672, %v3914_v30  ;;  %v7914_v10 = vpop.f32.mrb[18].mxu1  ;;  %v4111_v30 = vmul.f32 %v4079_v63, %v3631_v40  ;;  %v6520_v5 = vadd.f32 %v7875_v29, %v7686_v41  ;;  %6799 = vrcp.f32 %v3695_v9 }
 0x317   : > { %v7919_v61 = vpop.f32.mrb[19].mxu1  ;;  %v7940_v7 = vpop.eup %6785  ;;  %v3636_v44 = vand.u32 2147483647, %v7924_v2  ;;  %v7944_v25 = vadd.f32 %v6519_v14, %v7804_v27  ;;  %v6522_v3 = vadd.f32 %v7887_v59, %v7688_v17  ;;  %v7951_v11 = vmul.f32 0.70710677, %v7936_v21 }
 0x318   : > { %v3978_v60 = vmul.f32 %v7869_v18, %v3946_v4  ;;  %v7948_v63 = vpop.eup %6787  ;;  %v4114_v4 = vmul.f32 %v4082_v55, %v3634_v53  ;;  %v6521_v41 = vadd.f32 %v6520_v5, %v7786_v26  ;;  %v4149_v29 = vmul.f32 1.442695, %v4111_v30 }
 0x319   : > { %8883 = vst [vmem:[#allocation29_spill] sm:$0xff] %v7944_v25  ;;  %v3665_v57 = vmul.f32 0.3275911, %v3633_v46  ;;  %v6523_v12 = vadd.f32 %v6522_v3, %v7788_v38  ;;  %v6524_v9 = vadd.f32 %v7892_v6, %v7690_v22  ;;  %v7957_v23 = vpop.eup %6789  ;;  %v4113_v19 = vmul.f32 %v4081_v32, %v3633_v46 }
 0x31a   : > { %v4010_v40 = vadd.f32 0.2548296, %v3978_v60  ;;  %v7960_v17 = vmul.f32 0.70710677, %v7944_v25  ;;  %v7963_v59 = vadd.f32 %v6521_v41, %v7804_v27  ;;  %v6526_v53 = vadd.f32 %v5960_v56, %v7692_v24 }
 0x31b   : > { %v3698_v60 = vadd.f32 1.0, %v3666_v43  ;;  %v4084_v26 = vsub.f32 0.0, %v3636_v44  ;;  %v7967_v55 = vadd.f32 %v6523_v12, %v7804_v27  ;;  %v6525_v38 = vadd.f32 %v6524_v9, %v7790_v37 }
 0x31c   : > { %8884 = vst [vmem:[#allocation30_spill] sm:$0xff] %v7960_v17  ;;  %8885 = vst [vmem:[#allocation31_spill] sm:$0xff] %v7963_v59  ;;  %v7970_v30 = vpop.eup %6791  ;;  %v4042_v22 = vmul.f32 %v7869_v18, %v4010_v40  ;;  %v4155_v6 = vmul.f32 1.442695, %v4114_v4  ;;  %v3635_v46 = vand.u32 2147483647, %v7951_v11  ;;  %v6527_v32 = vadd.f32 %v6526_v53, %v7792_v1 }
 0x31d   : > { %8886 = vst [vmem:[#allocation32_spill] sm:$0xff] %v7967_v55  ;;  %v7975_v14 = vpop.eup %6793  ;;  %6801 = vpow2.f32 %v4151_v8  ;;  %v3697_v24 = vadd.f32 1.0, %v3665_v57  ;;  %v3668_v56 = vmul.f32 0.3275911, %v3636_v44  ;;  %v4153_v5 = vmul.f32 1.442695, %v4113_v19 }
 0x31e   : > { %v7977_v43 = vpop.eup %6795  ;;  %6803 = vpow2.f32 %v4149_v29  ;;  %v3638_v37 = vand.u32 2147483647, %v7960_v17  ;;  %v7981_v3 = vmul.f32 0.70710677, %v7963_v59  ;;  %v4116_v40 = vmul.f32 %v4084_v26, %v3636_v44 }
 0x31f   : > { %v7983_v18 = vpop.eup %6797  ;;  %6805 = vrcp.f32 %v3698_v60  ;;  %v7986_v1 = vmul.f32 0.70710677, %v7967_v55  ;;  %v7989_v8 = vadd.f32 %v6525_v38, %v7804_v27  ;;  %v4202_v4 = vmul.f32 %v7907_v50, %v4042_v22 }
 0x320   : > { %8887 = vst [vmem:[#allocation33_spill] sm:$0xff] %v7981_v3  ;;  %6807 = vpow2.f32 %v4155_v6  ;;  %v3667_v41 = vmul.f32 0.3275911, %v3635_v46  ;;  %v7992_v29 = vpop.eup %6799  ;;  %v7995_v57 = vmul.f32 0.5, %v7808_v34  ;;  %v4083_v12 = vsub.f32 0.0, %v3635_v46 }
 0x321   : > { %8888 = vst [vmem:[#allocation34_spill] sm:$0xff] %v7986_v1  ;;  %8889 = vst [vmem:[#allocation35_spill] sm:$0xff] %v7989_v8  ;;  %6809 = vrcp.f32 %v3697_v24  ;;  %v3700_v44 = vadd.f32 1.0, %v3668_v56  ;;  %v4086_v9 = vsub.f32 0.0, %v3638_v37  ;;  %v3637_v19 = vand.u32 2147483647, %v7981_v3 }
 0x322   : > { %6811 = vpow2.f32 %v4153_v5  ;;  %v4159_v53 = vmul.f32 1.442695, %v4116_v40  ;;  %v3640_v60 = vand.u32 2147483647, %v7986_v1  ;;  %v8001_v50 = vmul.f32 0.70710677, %v7989_v8 }
 0x323   : > { %v8004_v26 = vadd.f32 %v6527_v32, %v7804_v27  ;;  %v4234_v34 = vsub.f32 1.0, %v4202_v4  ;;  %v3699_v38 = vadd.f32 1.0, %v3667_v41  ;;  %v3670_v22 = vmul.f32 0.3275911, %v3638_v37 }
 0x324   : > { %8890 = vst [vmem:[#allocation36_spill] sm:$0xff] %v8001_v50  ;;  %v6528_v6 = vadd.f32 %v7905_v52, %v7694_v31  ;;  %v4115_v24 = vmul.f32 %v4083_v12, %v3635_v46  ;;  %v3639_v56 = vand.u32 2147483647, %v8001_v50  ;;  %v6530_v40 = vadd.f32 %v7914_v10, %v7696_v35 }
 0x325   : > { %8891 = vst [vmem:[#allocation37_spill] sm:$0xff] %v8004_v26  ;;  %v8010_v5 = vmul.f32 0.70710677, %v8004_v26  ;;  %v4118_v1 = vmul.f32 %v4086_v9, %v3638_v37  ;;  %v4085_v55 = vsub.f32 0.0, %v3637_v19  ;;  %v6532_v4 = vadd.f32 %v7919_v61, %v7698_v39 }
 0x326   : > { %v6529_v32 = vadd.f32 %v6528_v6, %v7794_v62  ;;  %v3669_v8 = vmul.f32 0.3275911, %v3637_v19  ;;  %v4088_v31 = vsub.f32 0.0, %v3640_v60  ;;  %v6531_v46 = vadd.f32 %v6530_v40, %v7796_v13 }
 0x327   : > { %8892 = vst [vmem:[#allocation38_spill] sm:$0xff] %v8010_v5  ;;  %v8017_v41 = vpop.eup %6801  ;;  %v3642_v52 = vand.u32 2147483647, %v8010_v5  ;;  %v3702_v26 = vadd.f32 1.0, %v3670_v22  ;;  %v3672_v50 = vmul.f32 0.3275911, %v3640_v60  ;;  %v6533_v62 = vadd.f32 %v6532_v4, %v7798_v51 }
 0x328   : > { %v8021_v12 = vpop.eup %6803  ;;  %v8024_v35 = vadd.f32 %v6529_v32, %v7804_v27  ;;  %v8806_v39 = vmov -1.0   ;;  %6813 = vrcp.f32 %v3700_v44  ;;  %v4157_v37 = vmul.f32 1.442695, %v4115_v24 }
 0x329   : > { %v8027_v10 = vpop.eup %6805  ;;  %v3594_v61 = vsel %vm3562_vm1, 1.0, %v8806_v39  ;;  %v4087_v9 = vsub.f32 0.0, %v3639_v56  ;;  %6815 = vpow2.f32 %v4159_v53  ;;  %v4163_v22 = vmul.f32 1.442695, %v4118_v1 }
 0x32a   : > { %8893 = vst [vmem:[#allocation39_spill] sm:$0xff] %v8024_v35  ;;  %v8032_v13 = vpop.eup %6807  ;;  %v4266_v6 = vmul.f32 %v4234_v34, %v3594_v61  ;;  %v4117_v40 = vmul.f32 %v4085_v55, %v3637_v19  ;;  %6817 = vrcp.f32 %v3699_v38  ;;  %v3701_v51 = vadd.f32 1.0, %v3669_v8 }
 0x32b   : > { %8894 = vst [vmem:[#allocation40_spill] sm:$0xff] %v8032_v13  ;;  %v8034_v32 = vpop.eup %6809  ;;  %v4120_v4 = vmul.f32 %v4088_v31, %v3640_v60  ;;  %v4090_v5 = vsub.f32 0.0, %v3642_v52  ;;  %6819 = vrcp.f32 %v3702_v26  ;;  %v3704_v47 = vadd.f32 1.0, %v3672_v50 }
 0x32c   : > { %v8036_v17 = vpop.eup %6811  ;;  %v3671_v39 = vmul.f32 0.3275911, %v3639_v56  ;;  %v8039_v44 = vmul.f32 0.70710677, %v8024_v35  ;;  %6821 = vpow2.f32 %v4157_v37  ;;  %v4119_v24 = vmul.f32 %v4087_v9, %v3639_v56 }
 0x32d   : > { %v8042_v53 = vadd.f32 %v6531_v46, %v7804_v27  ;;  %v3785_v55 = vmul.f32 1.0614054, %v7900_v36  ;;  %6823 = vpow2.f32 %v4163_v22  ;;  %v4161_v8 = vmul.f32 1.442695, %v4117_v40 }
 0x32e   : > { %8895 = vst [vmem:[#allocation41_spill] sm:$0xff] %v8039_v44  ;;  %v3674_v19 = vmul.f32 0.3275911, %v3642_v52  ;;  %v8046_v60 = vadd.f32 %v6533_v62, %v7804_v27  ;;  %6825 = vrcp.f32 %v3701_v51  ;;  %v4167_v50 = vmul.f32 1.442695, %v4120_v4 }
 0x32f   : > { %8896 = vst [vmem:[#allocation42_spill] sm:$0xff] %v8042_v53  ;;  %v4122_v34 = vmul.f32 %v4090_v5, %v3642_v52  ;;  %v3817_v38 = vadd.f32 -1.4531521, %v3785_v55  ;;  %v4298_v31 = vadd.f32 1.0, %v4266_v6  ;;  %6827 = vrcp.f32 %v3704_v47 }
 0x330   : > { %8897 = vst [vmem:[#allocation43_spill] sm:$0xff] %v8046_v60  ;;  %v3703_v56 = vadd.f32 1.0, %v3671_v39  ;;  %v3641_v46 = vand.u32 2147483647, %v8039_v44  ;;  %v4165_v61 = vmul.f32 1.442695, %v4119_v24  ;;  %6829 = vpow2.f32 %v4161_v8 }
 0x331   : > { %v8052_v37 = vmul.f32 0.70710677, %v8042_v53  ;;  %v3849_v62 = vmul.f32 %v7900_v36, %v3817_v38  ;;  %v3706_v22 = vadd.f32 1.0, %v3674_v19  ;;  %v8059_v5 = vmul.f32 0.70710677, %v8046_v60 }
 0x332   : > { %v6046_v1 = vpop.f32.mrb[20].mxu1  ;;  %v8062_v52 = vmul.f32 0.5, %v7812_v28  ;;  %v8066_v6 = vpop.eup %6813  ;;  %6831 = vpow2.f32 %v4167_v50  ;;  %v4171_v40 = vmul.f32 1.442695, %v4122_v34  ;;  %v3787_v4 = vmul.f32 1.0614054, %v7933_v0 }
 0x333   : > { %v8048_v26 = vpop.f32.mrb[21].mxu1  ;;  %8898 = vst [vmem:[#allocation44_spill] sm:$0xff] %v8052_v37  ;;  %8899 = vst [vmem:[#allocation45_spill] sm:$0xff] %v8059_v5  ;;  %v3881_v51 = vadd.f32 1.4214138, %v3849_v62  ;;  %v8069_v47 = vpop.eup %6815  ;;  %v8072_v24 = vmul.f32 %v4298_v31, %v7995_v57  ;;  %6833 = vrcp.f32 %v3703_v56  ;;  %v8901_v8 = vmov -1.0  }
 0x334   : > { %8900 = vst [vmem:[#allocation46_spill] sm:$0xff] %v8069_v47  ;;  %v3673_v55 = vmul.f32 0.3275911, %v3641_v46  ;;  %v8077_v28 = vsel %vm3561_vm2, 1.0, %v8901_v8  ;;  %v8079_v19 = vpop.eup %6817  ;;  %6835 = vpow2.f32 %v4165_v61  ;;  %v3644_v50 = vand.u32 2147483647, %v8052_v37 }
 0x335   : > { %v3913_v34 = vmul.f32 %v7900_v36, %v3881_v51  ;;  %v3819_v38 = vadd.f32 -1.4531521, %v3787_v4  ;;  %v8085_v53 = vpop.eup %6819  ;;  %6837 = vrcp.f32 %v3706_v22  ;;  %v4089_v57 = vsub.f32 0.0, %v3641_v46 }
 0x336   : > { %v8056_v9 = vpop.f32.mrb[22].mxu1  ;;  %8902 = vst [vmem:[#allocation47_spill] sm:$0xff] %v8085_v53  ;;  %v8088_v31 = vmul.f32 0.5, %v7828_v15  ;;  %v3788_v45 = vmul.f32 1.0614054, %v7928_v54  ;;  %v8093_v60 = vpop.eup %6821  ;;  %6839 = vpow2.f32 %v4171_v40  ;;  %v3705_v35 = vadd.f32 1.0, %v3673_v55 }
 0x337   : > { %v8064_v39 = vpop.f32.mrb[23].mxu1  ;;  %8903 = vst [vmem:[#allocation48_spill] sm:$0xff] %v8093_v60  ;;  %v3643_v61 = vand.u32 2147483647, %v8059_v5  ;;  %v3945_v51 = vadd.f32 -0.28449672, %v3913_v34  ;;  %v3851_v4 = vmul.f32 %v7933_v0, %v3819_v38  ;;  %v8097_v37 = vpop.eup %6823  ;;  %v6534_v40 = vadd.f32 %v6046_v1, %v7700_v48 }
 0x338   : > { %8904 = vst [vmem:[#allocation49_spill] sm:$0xff] %v8097_v37  ;;  %vm3563_vm3 = vcmp.ge.f32.partialorder %v7836_v42, 0.0  ;;  %v3820_v22 = vadd.f32 -1.4531521, %v3788_v45  ;;  %v3789_v15 = vmul.f32 1.0614054, %v7970_v30  ;;  %v8101_v44 = vpop.eup %6825  ;;  %v4121_v38 = vmul.f32 %v4089_v57, %v3641_v46 }
 0x339   : > { %8905 = vst [vmem:[#allocation50_spill] sm:$0xff] %v8101_v44  ;;  %v3676_v25 = vmul.f32 0.3275911, %v3644_v50  ;;  %v3977_v47 = vmul.f32 %v7900_v36, %v3945_v51  ;;  %v3883_v59 = vadd.f32 1.4214138, %v3851_v4  ;;  %v8107_v34 = vpop.eup %6827  ;;  %v4092_v3 = vsub.f32 0.0, %v3644_v50 }
 0x33a   : > { %v8083_v62 = vpop.f32.mrb[24].mxu1  ;;  %8906 = vst [vmem:[#allocation51_spill] sm:$0xff] %v8107_v34  ;;  %v3852_v55 = vmul.f32 %v7928_v54, %v3820_v22  ;;  %v3821_v37 = vadd.f32 -1.4531521, %v3789_v15  ;;  %v3790_v45 = vmul.f32 1.0614054, %v7957_v23  ;;  %v8114_v4 = vpop.eup %6829  ;;  %v6535_v46 = vadd.f32 %v8048_v26, %v7702_v49 }
 0x33b   : > { %v8091_v56 = vpop.f32.mrb[25].mxu1  ;;  %v3675_v60 = vmul.f32 0.3275911, %v3643_v61  ;;  %v4009_v2 = vadd.f32 0.2548296, %v3977_v47  ;;  %v3915_v51 = vmul.f32 %v7933_v0, %v3883_v59  ;;  %8907 = vst [vmem:[#allocation52_spill] sm:$0xff] %v8114_v4  ;;  %6841 = vrcp.f32 %v3705_v35 }
 0x33c   : > { %v3884_v48 = vadd.f32 1.4214138, %v3852_v55  ;;  %v3853_v1 = vmul.f32 %v7970_v30, %v3821_v37  ;;  %v3822_v44 = vadd.f32 -1.4531521, %v3790_v45  ;;  %v8119_v57 = vpop.eup %6831  ;;  %v4091_v22 = vsub.f32 0.0, %v3643_v61 }
 0x33d   : > { %8908 = vst [vmem:[#allocation53_spill] sm:$0xff] %v8119_v57  ;;  %v4041_v15 = vmul.f32 %v7900_v36, %v4009_v2  ;;  %v3595_v47 = vsel %vm3563_vm3, 1.0, %v8901_v8  ;;  %v3947_v34 = vadd.f32 -0.28449672, %v3915_v51  ;;  %v8127_v4 = vpop.eup %6833  ;;  %v4169_v36 = vmul.f32 1.442695, %v4121_v38 }
 0x33e   : > { %v8105_v5 = vpop.f32.mrb[26].mxu1  ;;  %8910 = vst [vmem:[#allocation55_spill] sm:$0xff] %v8127_v4  ;;  %v3916_v37 = vmul.f32 %v7928_v54, %v3884_v48  ;;  %v3885_v55 = vadd.f32 1.4214138, %v3853_v1  ;;  %v3854_v49 = vmul.f32 %v7957_v23, %v3822_v44  ;;  %v8133_v45 = vpop.eup %6835  ;;  %v4124_v2 = vmul.f32 %v4092_v3, %v3644_v50 }
 0x33f   : > { %v8111_v53 = vpop.f32.mrb[27].mxu1  ;;  %8912 = vst [vmem:[#allocation57_spill] sm:$0xff] %v8133_v45  ;;  %v4201_v42 = vmul.f32 %v7921_v33, %v4041_v15  ;;  %v3979_v51 = vmul.f32 %v7933_v0, %v3947_v34  ;;  %v8137_v57 = vpop.eup %6837  ;;  %v3707_v44 = vadd.f32 1.0, %v3675_v60  ;;  %v8143_v45 = vadd.f32 %v6534_v40, %v7804_v27 }
 0x340   : > { %v3948_v4 = vadd.f32 -0.28449672, %v3916_v37  ;;  %v3917_v35 = vmul.f32 %v7970_v30, %v3885_v55  ;;  %v3886_v48 = vadd.f32 1.4214138, %v3854_v49  ;;  %v8140_v1 = vpop.eup %6839  ;;  %v4123_v3 = vmul.f32 %v4091_v22, %v3643_v61 }
 0x341   : > { %v4233_v13 = vsub.f32 1.0, %v4201_v42  ;;  %6843 = vpow2.f32 %v4169_v36  ;;  %v3500_v55 = vmul.f32 0.5, %v7823_v16  ;;  %v8913_v42 = vld [vmem:[#allocation16_spill] sm:$0xff]  ;;  %v8158_v36 = vmul.f32 0.70710677, %v8143_v45 }
 0x342   : > { %v8125_v59 = vpop.f32.mrb[28].mxu1  ;;  %v3980_v33 = vmul.f32 %v7928_v54, %v3948_v4  ;;  %v3949_v50 = vadd.f32 -0.28449672, %v3917_v35  ;;  %v3918_v34 = vmul.f32 %v7957_v23, %v3886_v48  ;;  %vm3564_vm4 = vcmp.ge.f32.partialorder %v8913_v42, 0.0 }
 0x343   : > { %8909 = vst [vmem:[#allocation54_spill] sm:$0xff] %v8125_v59  ;;  %v8131_v26 = vpop.f32.mrb[29].mxu1  ;;  %v3708_v59 = vadd.f32 1.0, %v3676_v25  ;;  %v4175_v25 = vmul.f32 1.442695, %v4124_v2  ;;  %v4265_v15 = vmul.f32 %v4233_v13, %v8077_v28  ;;  %vm3565_vm5 = vcmp.ge.f32.partialorder %v7849_v58, 0.0 }
 0x344   : > { %8911 = vst [vmem:[#allocation56_spill] sm:$0xff] %v8131_v26  ;;  %v4011_v26 = vadd.f32 0.2548296, %v3979_v51  ;;  %v4012_v40 = vadd.f32 0.2548296, %v3980_v33  ;;  %v3981_v61 = vmul.f32 %v7970_v30, %v3949_v50  ;;  %v8164_v51 = vadd.f32 %v6535_v46, %v7804_v27 }
 0x345   : > { %v3950_v22 = vadd.f32 -0.28449672, %v3918_v34  ;;  %v4297_v4 = vadd.f32 1.0, %v4265_v15  ;;  %6845 = vrcp.f32 %v3708_v59  ;;  %v8166_v35 = vpop.eup %6841  ;;  %v3596_v46 = vsel %vm3564_vm4, 1.0, %v8901_v8 }
 0x346   : > { %v8147_v38 = vpop.f32.mrb[30].mxu1  ;;  %v4043_v37 = vmul.f32 %v7933_v0, %v4011_v26  ;;  %v4044_v13 = vmul.f32 %v7928_v54, %v4012_v40  ;;  %v4013_v0 = vadd.f32 0.2548296, %v3981_v61  ;;  %v4173_v26 = vmul.f32 1.442695, %v4123_v3  ;;  %v8914_v61 = vld [vmem:[#allocation7_spill] sm:$0xff] }
 0x347   : > { %v8151_v60 = vpop.f32.mrb[31].mxu1  ;;  %v3982_v28 = vmul.f32 %v7957_v23, %v3950_v22  ;;  %v4329_v16 = vmul.f32 %v4297_v4, %v8062_v52  ;;  %6847 = vpow2.f32 %v4175_v25  ;;  %v3646_v3 = vand.u32 2147483647, %v8158_v36 }
 0x348   : > { %v4203_v49 = vmul.f32 %v7948_v63, %v4043_v37  ;;  %v4204_v63 = vmul.f32 %v7940_v7, %v4044_v13  ;;  %v4045_v59 = vmul.f32 %v7970_v30, %v4013_v0  ;;  %v3791_v52 = vmul.f32 1.0614054, %v7992_v29 }
 0x349   : > { %v4014_v48 = vadd.f32 0.2548296, %v3982_v28  ;;  %6094 = vmatprep.mubr.f32.mxu0 %v4329_v16  ;;  %v3597_v50 = vsel %vm3565_vm5, 1.0, %v8901_v8  ;;  %vm3566_vm6 = vcmp.ge.f32.partialorder %v7846_v20, 0.0  ;;  %v6536_v22 = vadd.f32 %v8056_v9, %v8914_v61 }
 0x34a   : > { %v4235_v2 = vsub.f32 1.0, %v4203_v49  ;;  %6095 = vmatmul.mubr.f32.vlgmr.msra.gmra.mrb[84].mxu0 %v8072_v24  ;;  %v4236_v33 = vsub.f32 1.0, %v4204_v63  ;;  %v4205_v7 = vmul.f32 %v7977_v43, %v4045_v59  ;;  %v3823_v34 = vadd.f32 -1.4531521, %v3791_v52  ;;  %v8915_v49 = vld [vmem:[#allocation18_spill] sm:$0xff] }
 0x34b   : > { %v4046_v58 = vmul.f32 %v7957_v23, %v4014_v48  ;;  %v8185_v37 = vpop.eup %6843  ;;  %v4094_v43 = vsub.f32 0.0, %v3646_v3  ;;  %v3501_v42 = vmul.f32 0.5, %v8915_v49  ;;  %6849 = vrcp.f32 %v3707_v44 }
 0x34c   : > { %v4267_v54 = vmul.f32 %v4235_v2, %v3595_v47  ;;  %v8181_v47 = vmul.f32 0.70710677, %v8164_v51  ;;  %v4268_v25 = vmul.f32 %v4236_v33, %v3596_v46  ;;  %v4237_v15 = vsub.f32 1.0, %v4205_v7  ;;  %v8916_v46 = vld [vmem:[#allocation17_spill] sm:$0xff] }
 0x34d   : > { %v4206_v24 = vmul.f32 %v7975_v14, %v4046_v58  ;;  %v3855_v23 = vmul.f32 %v7992_v29, %v3823_v34  ;;  %v3598_v20 = vsel %vm3566_vm6, 1.0, %v8901_v8  ;;  %v3678_v63 = vmul.f32 0.3275911, %v3646_v3  ;;  %v8917_v58 = vld [vmem:[#allocation6_spill] sm:$0xff] }
 0x34e   : > { %v4299_v30 = vadd.f32 1.0, %v4267_v54  ;;  %v4300_v4 = vadd.f32 1.0, %v4268_v25  ;;  %v4269_v13 = vmul.f32 %v4237_v15, %v3597_v50  ;;  %v3645_v14 = vand.u32 2147483647, %v8181_v47 }
 0x34f   : > { %v4238_v0 = vsub.f32 1.0, %v4206_v24  ;;  %v3887_v28 = vadd.f32 1.4214138, %v3855_v23  ;;  %v8194_v16 = vpop.eup %6845  ;;  %v4126_v48 = vmul.f32 %v4094_v43, %v3646_v3  ;;  %v3488_v54 = vadd.f32 %v6536_v22, %v7804_v27 }
 0x350   : > { %v4331_v40 = vmul.f32 %v4299_v30, %v8088_v31  ;;  %v4332_v31 = vmul.f32 %v4300_v4, %v3500_v55  ;;  %v4301_v2 = vadd.f32 1.0, %v4269_v13  ;;  %v3792_v52 = vmul.f32 1.0614054, %v7983_v18  ;;  %v8918_v4 = vld [vmem:[#allocation9_spill] sm:$0xff]  ;;  %v8919_v13 = vld [vmem:[#allocation22_spill] sm:$0xff] }
 0x351   : > { %v4270_v59 = vmul.f32 %v4238_v0, %v3598_v20  ;;  %v3919_v9 = vmul.f32 %v7992_v29, %v3887_v28  ;;  %v3502_v33 = vmul.f32 0.5, %v8916_v46  ;;  %v6537_v30 = vadd.f32 %v8064_v39, %v8917_v58  ;;  %v8202_v50 = vpop.eup %6847 }
 0x352   : > { %6097 = vmatprep.mubr.f32.mxu0 %v4331_v40  ;;  %v4333_v44 = vmul.f32 %v4301_v2, %v3501_v42  ;;  %6851 = vpow2.f32 %v4173_v26  ;;  %v4093_v55 = vsub.f32 0.0, %v3645_v14  ;;  %v3710_v3 = vadd.f32 1.0, %v3678_v63 }
 0x353   : > { %6098 = vmatmul.mubr.f32.gmra.mrb[86].mxu0 %v4332_v31  ;;  %v4302_v7 = vadd.f32 1.0, %v4270_v59  ;;  %v3951_v34 = vadd.f32 -0.28449672, %v3919_v9  ;;  %v3677_v15 = vmul.f32 0.3275911, %v3645_v14  ;;  %v8209_v22 = vmul.f32 0.5, %v8143_v45 }
 0x354   : > { %6100 = vmatprep.mubr.f32.mxu0 %v4333_v44  ;;  %v3824_v24 = vadd.f32 -1.4531521, %v3792_v52  ;;  %v4179_v40 = vmul.f32 1.442695, %v4126_v48  ;;  %v8205_v23 = vmul.f32 0.70710677, %v3488_v54  ;;  %v6538_v49 = vadd.f32 %v8083_v62, %v8918_v4 }
 0x355   : > { %v4334_v25 = vmul.f32 %v4302_v7, %v3502_v33  ;;  %v3983_v43 = vmul.f32 %v7992_v29, %v3951_v34  ;;  %v3793_v61 = vmul.f32 1.0614054, %v8034_v32  ;;  %v8212_v39 = vmul.f32 0.5, %v8164_v51  ;;  %v8219_v2 = vpop.eup %6849  ;;  %v8920_v62 = vld [vmem:[#allocation20_spill] sm:$0xff]  ;;  %v8921_v33 = vld [vmem:[#allocation21_spill] sm:$0xff] }
 0x356   : > { %v3856_v26 = vmul.f32 %v7983_v18, %v3824_v24  ;;  %v4125_v42 = vmul.f32 %v4093_v55, %v3645_v14  ;;  %vm3567_vm7 = vcmp.ge.f32.partialorder %v8919_v13, 0.0  ;;  %6853 = vrcp.f32 %v3710_v3  ;;  %v8923_v4 = vld [vmem:[#allocation24_spill] sm:$0xff] }
 0x357   : > { %6101 = vmatmul.mubr.f32.gmra.mrb[88].mxu0 %v4334_v25  ;;  %v4015_v0 = vadd.f32 0.2548296, %v3983_v43  ;;  %v3825_v20 = vadd.f32 -1.4531521, %v3793_v61  ;;  %v3709_v28 = vadd.f32 1.0, %v3677_v15  ;;  %v3487_v45 = vadd.f32 %v6537_v30, %v7804_v27 }
 0x358   : > { %v3888_v31 = vadd.f32 1.4214138, %v3856_v26  ;;  %6855 = vpow2.f32 %v4179_v40  ;;  %v3648_v63 = vand.u32 2147483647, %v8205_v23  ;;  %v3503_v14 = vmul.f32 0.5, %v8920_v62 }
 0x359   : > { %v4047_v51 = vmul.f32 %v7992_v29, %v4015_v0  ;;  %v3857_v59 = vmul.f32 %v8034_v32, %v3825_v20  ;;  %v3599_v48 = vsel %vm3567_vm7, 1.0, %v8901_v8  ;;  %v3490_v52 = vadd.f32 %v6538_v49, %v7804_v27  ;;  %v8922_v29 = vld [vmem:[#allocation19_spill] sm:$0xff] }
 0x35a   : > { %v3920_v9 = vmul.f32 %v7983_v18, %v3888_v31  ;;  %v4177_v44 = vmul.f32 1.442695, %v4125_v42  ;;  %vm3568_vm8 = vcmp.ge.f32.partialorder %v8921_v33, 0.0  ;;  %6857 = vrcp.f32 %v3709_v28  ;;  %v8924_v42 = vld [vmem:[#allocation26_spill] sm:$0xff]  ;;  %v8925_v33 = vld [vmem:[#allocation8_spill] sm:$0xff] }
 0x35b   : > { %v4207_v46 = vmul.f32 %v8021_v12, %v4047_v51  ;;  %v3889_v7 = vadd.f32 1.4214138, %v3857_v59  ;;  %v8231_v58 = vmul.f32 0.5, %v8922_v29  ;;  %v8233_v55 = vmul.f32 0.70710677, %v3487_v45 }
 0x35c   : > { %v3952_v30 = vadd.f32 -0.28449672, %v3920_v9  ;;  %v8235_v34 = vpop.eup %6851  ;;  %v3680_v25 = vmul.f32 0.3275911, %v3648_v63  ;;  %v4096_v15 = vsub.f32 0.0, %v3648_v63  ;;  %v8238_v40 = vmul.f32 0.5, %v3488_v54 }
 0x35d   : > { %v4239_v3 = vsub.f32 1.0, %v4207_v46  ;;  %v3921_v24 = vmul.f32 %v8034_v32, %v3889_v7  ;;  %v3600_v12 = vsel %vm3568_vm8, 1.0, %v8901_v8  ;;  %v8242_v61 = vmul.f32 0.70710677, %v3490_v52 }
 0x35e   : > { %v3984_v43 = vmul.f32 %v7983_v18, %v3952_v30  ;;  %v8245_v49 = vmul.f32 0.5, %v8923_v4  ;;  %vm3569_vm9 = vcmp.ge.f32.partialorder %v8924_v42, 0.0  ;;  %6859 = vpow2.f32 %v4177_v44 }
 0x35f   : > { %v4271_v26 = vmul.f32 %v4239_v3, %v3599_v48  ;;  %v3953_v13 = vadd.f32 -0.28449672, %v3921_v24  ;;  %v3647_v20 = vand.u32 2147483647, %v8233_v55  ;;  %v3794_v54 = vmul.f32 1.0614054, %v8027_v10 }
 0x360   : > { %v4016_v0 = vadd.f32 0.2548296, %v3984_v43  ;;  %v3712_v31 = vadd.f32 1.0, %v3680_v25  ;;  %v4128_v51 = vmul.f32 %v4096_v15, %v3648_v63  ;;  %v8251_v62 = vpop.eup %6853  ;;  %v3650_v9 = vand.u32 2147483647, %v8242_v61 }
 0x361   : > { %v4303_v28 = vadd.f32 1.0, %v4271_v26  ;;  %v3985_v59 = vmul.f32 %v8034_v32, %v3953_v13  ;;  %v3826_v46 = vadd.f32 -1.4531521, %v3794_v54  ;;  %v6539_v44 = vadd.f32 %v8091_v56, %v8925_v33  ;;  %v8926_v54 = vld [vmem:[#allocation11_spill] sm:$0xff] }
 0x362   : > { %v4048_v48 = vmul.f32 %v7983_v18, %v4016_v0  ;;  %v8257_v7 = vpop.eup %6855  ;;  %v8259_v30 = vmul.f32 0.5, %v3487_v45  ;;  %v3601_v63 = vsel %vm3569_vm9, 1.0, %v8901_v8  ;;  %v3679_v15 = vmul.f32 0.3275911, %v3647_v20 }
 0x363   : > { %v4335_v29 = vmul.f32 %v4303_v28, %v3503_v14  ;;  %v4017_v3 = vadd.f32 0.2548296, %v3985_v59  ;;  %v3858_v18 = vmul.f32 %v8027_v10, %v3826_v46  ;;  %v8267_v24 = vadd.f32 %v6539_v44, %v7804_v27 }
 0x364   : > { %v4208_v25 = vmul.f32 %v8017_v41, %v4048_v48  ;;  %6861 = vrcp.f32 %v3712_v31  ;;  %v4095_v56 = vsub.f32 0.0, %v3647_v20  ;;  %v3795_v45 = vmul.f32 1.0614054, %v8079_v19  ;;  %v8271_v43 = vpop.eup %6857 }
 0x365   : > { %6103 = vmatprep.mubr.f32.mxu0 %v4335_v29  ;;  %v4049_v14 = vmul.f32 %v8034_v32, %v4017_v3  ;;  %v4183_v26 = vmul.f32 1.442695, %v4128_v51  ;;  %v4098_v42 = vsub.f32 0.0, %v3650_v9  ;;  %v3890_v13 = vadd.f32 1.4214138, %v3858_v18 }
 0x366   : > { %v4240_v4 = vsub.f32 1.0, %v4208_v25  ;;  %v8275_v0 = vmul.f32 0.70710677, %v8267_v24  ;;  %v3827_v27 = vadd.f32 -1.4531521, %v3795_v45  ;;  %v6540_v28 = vadd.f32 %v8105_v5, %v8926_v54 }
 0x367   : > { %v4209_v41 = vmul.f32 %v8036_v17, %v4049_v14  ;;  %v3711_v59 = vadd.f32 1.0, %v3679_v15  ;;  %v8279_v32 = vmul.f32 0.5, %v3490_v52  ;;  %v3922_v48 = vmul.f32 %v8027_v10, %v3890_v13  ;;  %v8286_v17 = vld [vmem:[%s8769_s4] ss:$0 sm:$0xff] }
 0x368   : > { %v4272_v31 = vmul.f32 %v4240_v4, %v3600_v12  ;;  %v4127_v46 = vmul.f32 %v4095_v56, %v3647_v20  ;;  %v3859_v33 = vmul.f32 %v8079_v19, %v3827_v27  ;;  %v8289_v44 = vadd.f32 %v8286_v17, %v6540_v28  ;;  %v8291_v29 = vpop.eup %6859  ;;  %v8928_v56 = vld [vmem:[#allocation23_spill] sm:$0xff] }
 0x369   : > { %8927 = vst [vmem:[#allocation16_spill] sm:$0xff] %v8279_v32  ;;  %v4241_v51 = vsub.f32 1.0, %v4209_v41  ;;  %v3682_v12 = vmul.f32 0.3275911, %v3650_v9  ;;  %v4130_v52 = vmul.f32 %v4098_v42, %v3650_v9  ;;  %v3954_v3 = vadd.f32 -0.28449672, %v3922_v48 }
 0x36a   : > { %v4304_v5 = vadd.f32 1.0, %v4272_v31  ;;  %6863 = vpow2.f32 %v4183_v26  ;;  %v3649_v20 = vand.u32 2147483647, %v8275_v0  ;;  %v3891_v15 = vadd.f32 1.4214138, %v3859_v33  ;;  %v8930_v42 = vld [vmem:[#allocation25_spill] sm:$0xff] }
 0x36b   : > { %v4273_v25 = vmul.f32 %v4241_v51, %v3601_v63  ;;  %v3506_v14 = vmul.f32 0.5, %v8928_v56  ;;  %v3986_v45 = vmul.f32 %v8027_v10, %v3954_v3  ;;  %v8298_v4 = vmul.f32 0.70710677, %v8289_v44  ;;  %v8931_v51 = vld [vmem:[#allocation10_spill] sm:$0xff] }
 0x36c   : > { %v4336_v18 = vmul.f32 %v4304_v5, %v8231_v58  ;;  %6865 = vrcp.f32 %v3711_v59  ;;  %v4181_v13 = vmul.f32 1.442695, %v4127_v46  ;;  %v3923_v9 = vmul.f32 %v8079_v19, %v3891_v15 }
 0x36d   : > { %8929 = vst [vmem:[#allocation7_spill] sm:$0xff] %v8298_v4  ;;  %v4305_v41 = vadd.f32 1.0, %v4273_v25  ;;  %v3714_v26 = vadd.f32 1.0, %v3682_v12  ;;  %v4187_v63 = vmul.f32 1.442695, %v4130_v52  ;;  %vm3570_vm10 = vcmp.ge.f32.partialorder %v8930_v42, 0.0 }
 0x36e   : > { %6104 = vmatmul.mubr.f32.gmra.mrb[90].mxu0 %v4336_v18  ;;  %v4018_v27 = vadd.f32 0.2548296, %v3986_v45  ;;  %v8302_v54 = vpop.eup %6861  ;;  %v4097_v28 = vsub.f32 0.0, %v3649_v20  ;;  %vm3571_vm11 = vcmp.ge.f32.partialorder %v7951_v11, 0.0  ;;  %v3955_v31 = vadd.f32 -0.28449672, %v3923_v9 }
 0x36f   : > { %v4337_v58 = vmul.f32 %v4305_v41, %v8245_v49  ;;  %v3652_v48 = vand.u32 2147483647, %v8298_v4  ;;  %v3796_v46 = vmul.f32 1.0614054, %v8066_v6  ;;  %v6541_v33 = vadd.f32 %v8111_v53, %v8931_v51  ;;  %v8932_v52 = vld [vmem:[#allocation40_spill] sm:$0xff]  ;;  %v8934_v42 = vld [vmem:[#allocation50_spill] sm:$0xff] }
 0x370   : > { %v4050_v59 = vmul.f32 %v8027_v10, %v4018_v27  ;;  %6867 = vpow2.f32 %v4181_v13  ;;  %v3602_v5 = vsel %vm3570_vm10, 1.0, %v8901_v8  ;;  %v3507_v12 = vmul.f32 0.5, %v7936_v21  ;;  %v8935_v27 = vld [vmem:[#allocation12_spill] sm:$0xff] }
 0x371   : > { %6106 = vmatprep.mubr.f32.mxu0 %v4337_v58  ;;  %v3987_v49 = vmul.f32 %v8079_v19, %v3955_v31  ;;  %6869 = vrcp.f32 %v3714_v26  ;;  %v3828_v25 = vadd.f32 -1.4531521, %v3796_v46  ;;  %v8316_v10 = vadd.f32 %v8286_v17, %v6541_v33  ;;  %v8936_v58 = vld [vmem:[#allocation54_spill] sm:$0xff]  ;;  %v8939_v33 = vld [vmem:[#allocation48_spill] sm:$0xff] }
 0x372   : > { %v4210_v3 = vmul.f32 %v8932_v52, %v4050_v59  ;;  %6871 = vpow2.f32 %v4187_v63  ;;  %v3681_v15 = vmul.f32 0.3275911, %v3649_v20  ;;  %v3603_v53 = vsel %vm3571_vm11, 1.0, %v8901_v8 }
 0x373   : > { %8933 = vst [vmem:[#allocation18_spill] sm:$0xff] %v8316_v10  ;;  %v4019_v18 = vadd.f32 0.2548296, %v3987_v49  ;;  %v4129_v45 = vmul.f32 %v4097_v28, %v3649_v20  ;;  %v4100_v13 = vsub.f32 0.0, %v3652_v48  ;;  %v3860_v21 = vmul.f32 %v8066_v6, %v3828_v25  ;;  %v8938_v20 = vld [vmem:[#allocation28_spill] sm:$0xff] }
 0x374   : > { %v4242_v56 = vsub.f32 1.0, %v4210_v3  ;;  %v8322_v41 = vpop.eup %6863  ;;  %v8326_v26 = vmul.f32 0.70710677, %v8316_v10  ;;  %v3797_v63 = vmul.f32 1.0614054, %v8934_v42  ;;  %v6542_v31 = vadd.f32 %v8936_v58, %v8935_v27  ;;  %v8949_v10 = vld [vmem:[#allocation56_spill] sm:$0xff] }
 0x375   : > { %v4051_v9 = vmul.f32 %v8079_v19, %v4019_v18  ;;  %v8332_v59 = vmul.f32 0.5, %v8267_v24  ;;  %vm3572_vm12 = vcmp.ge.f32.partialorder %v8938_v20, 0.0  ;;  %v3892_v28 = vadd.f32 1.4214138, %v3860_v21 }
 0x376   : > { %v4274_v11 = vmul.f32 %v4242_v56, %v3602_v5  ;;  %v8335_v46 = vpop.eup %6865  ;;  %v3713_v51 = vadd.f32 1.0, %v3681_v15  ;;  %v3829_v49 = vadd.f32 -1.4531521, %v3797_v63  ;;  %v8339_v52 = vadd.f32 %v8286_v17, %v6542_v31 }
 0x377   : > { %8937 = vst [vmem:[#allocation17_spill] sm:$0xff] %v8332_v59  ;;  %v4211_v19 = vmul.f32 %v8939_v33, %v4051_v9  ;;  %v4185_v25 = vmul.f32 1.442695, %v4129_v45  ;;  %v3684_v18 = vmul.f32 0.3275911, %v3652_v48  ;;  %v3924_v5 = vmul.f32 %v8066_v6, %v3892_v28  ;;  %v8942_v9 = vld [vmem:[#allocation27_spill] sm:$0xff] }
 0x378   : > { %8940 = vst [vmem:[#allocation6_spill] sm:$0xff] %v8339_v52  ;;  %v4306_v3 = vadd.f32 1.0, %v4274_v11  ;;  %v4132_v24 = vmul.f32 %v4100_v13, %v3652_v48  ;;  %v3651_v27 = vand.u32 2147483647, %v8326_v26  ;;  %v3861_v21 = vmul.f32 %v8934_v42, %v3829_v49 }
 0x379   : > { %v4243_v56 = vsub.f32 1.0, %v4211_v19  ;;  %v8345_v15 = vmul.f32 0.5, %v8289_v44  ;;  %v8348_v63 = vmul.f32 0.5, %v8942_v9  ;;  %v3956_v31 = vadd.f32 -0.28449672, %v3924_v5  ;;  %v8947_v9 = vld [vmem:[#allocation31_spill] sm:$0xff] }
 0x37a   : > { %v4338_v58 = vmul.f32 %v4306_v3, %v3506_v14  ;;  %v8350_v33 = vpop.eup %6867  ;;  %6873 = vrcp.f32 %v3713_v51  ;;  %v3893_v11 = vadd.f32 1.4214138, %v3861_v21  ;;  %v8353_v28 = vmul.f32 0.70710677, %v8339_v52  ;;  %v8945_v21 = vld [vmem:[#allocation33_spill] sm:$0xff] }
 0x37b   : > { %8941 = vst [vmem:[#allocation9_spill] sm:$0xff] %v8345_v15  ;;  %v4275_v45 = vmul.f32 %v4243_v56, %v3603_v53  ;;  %v8355_v48 = vpop.eup %6869  ;;  %6875 = vpow2.f32 %v4185_v25  ;;  %v3716_v14 = vadd.f32 1.0, %v3684_v18  ;;  %v3604_v44 = vsel %vm3572_vm12, 1.0, %v8901_v8  ;;  %v8948_v15 = vld [vmem:[#allocation14_spill] sm:$0xff] }
 0x37c   : > { %8943 = vst [vmem:[#allocation22_spill] sm:$0xff] %v8353_v28  ;;  %6107 = vmatmul.mubr.f32.gmra.mrb[92].mxu0 %v4338_v58  ;;  %v3988_v13 = vmul.f32 %v8066_v6, %v3956_v31  ;;  %v8361_v19 = vpop.eup %6871  ;;  %v4191_v51 = vmul.f32 1.442695, %v4132_v24  ;;  %v3683_v53 = vmul.f32 0.3275911, %v3651_v27  ;;  %v3925_v3 = vmul.f32 %v8934_v42, %v3893_v11  ;;  %v8946_v58 = vld [vmem:[#allocation47_spill] sm:$0xff] }
 0x37d   : > { %8944 = vst [vmem:[#allocation20_spill] sm:$0xff] %v8361_v19  ;;  %v4307_v49 = vadd.f32 1.0, %v4275_v45  ;;  %v4099_v56 = vsub.f32 0.0, %v3651_v27  ;;  %vm3573_vm13 = vcmp.ge.f32.partialorder %v8945_v21, 0.0  ;;  %v3798_v25 = vmul.f32 1.0614054, %v8946_v58 }
 0x37e   : > { %v4020_v5 = vadd.f32 0.2548296, %v3988_v13  ;;  %v8367_v52 = vmul.f32 0.5, %v8947_v9  ;;  %v3957_v20 = vadd.f32 -0.28449672, %v3925_v3  ;;  %6877 = vrcp.f32 %v3716_v14 }
 0x37f   : > { %v4339_v18 = vmul.f32 %v4307_v49, %v3507_v12  ;;  %v3654_v31 = vand.u32 2147483647, %v8353_v28  ;;  %v3830_v24 = vadd.f32 -1.4531521, %v3798_v25  ;;  %v6543_v11 = vadd.f32 %v8949_v10, %v8948_v15  ;;  %v8950_v49 = vld [vmem:[#allocation46_spill] sm:$0xff]  ;;  %v8952_v25 = vld [vmem:[#allocation55_spill] sm:$0xff] }
 0x380   : > { %v4052_v45 = vmul.f32 %v8066_v6, %v4020_v5  ;;  %6879 = vpow2.f32 %v4191_v51  ;;  %v3715_v13 = vadd.f32 1.0, %v3683_v53  ;;  %v3605_v21 = vsel %vm3573_vm13, 1.0, %v8901_v8  ;;  %v8953_v10 = vld [vmem:[#allocation13_spill] sm:$0xff] }
 0x381   : > { %6109 = vmatprep.mubr.f32.mxu0 %v4339_v18  ;;  %v3989_v12 = vmul.f32 %v8934_v42, %v3957_v20  ;;  %v4131_v32 = vmul.f32 %v4099_v56, %v3651_v27  ;;  %v3862_v3 = vmul.f32 %v8946_v58, %v3830_v24  ;;  %v8378_v14 = vadd.f32 %v8286_v17, %v6543_v11  ;;  %v8954_v53 = vld [vmem:[#allocation29_spill] sm:$0xff] }
 0x382   : > { %v4212_v9 = vmul.f32 %v8950_v49, %v4052_v45  ;;  %v3686_v5 = vmul.f32 0.3275911, %v3654_v31  ;;  %v3799_v28 = vmul.f32 1.0614054, %v8952_v25  ;;  %v6544_v15 = vadd.f32 %v8147_v38, %v8953_v10 }
 0x383   : > { %8951 = vst [vmem:[#allocation21_spill] sm:$0xff] %v8378_v14  ;;  %v4021_v6 = vadd.f32 0.2548296, %v3989_v12  ;;  %v8384_v18 = vmul.f32 0.5, %v8954_v53  ;;  %v3894_v20 = vadd.f32 1.4214138, %v3862_v3  ;;  %6881 = vrcp.f32 %v3715_v13 }
 0x384   : > { %v4244_v51 = vsub.f32 1.0, %v4212_v9  ;;  %v8387_v45 = vmul.f32 0.70710677, %v8378_v14  ;;  %v8389_v27 = vpop.eup %6873  ;;  %v4102_v24 = vsub.f32 0.0, %v3654_v31  ;;  %v3831_v11 = vadd.f32 -1.4531521, %v3799_v28 }
 0x385   : > { %v4053_v56 = vmul.f32 %v8934_v42, %v4021_v6  ;;  %v8393_v12 = vadd.f32 %v8286_v17, %v6544_v15  ;;  %v8395_v49 = vpop.eup %6875  ;;  %v4189_v9 = vmul.f32 1.442695, %v4131_v32  ;;  %v3926_v10 = vmul.f32 %v8946_v58, %v3894_v20  ;;  %v8957_v53 = vld [vmem:[#allocation52_spill] sm:$0xff]  ;;  %v8959_v15 = vld [vmem:[#allocation30_spill] sm:$0xff] }
 0x386   : > { %8955 = vst [vmem:[#allocation19_spill] sm:$0xff] %v8387_v45  ;;  %v4276_v38 = vmul.f32 %v4244_v51, %v3604_v44  ;;  %v3653_v3 = vand.u32 2147483647, %v8387_v45  ;;  %v3863_v59 = vmul.f32 %v8952_v25, %v3831_v11  ;;  %v3718_v6 = vadd.f32 1.0, %v3686_v5 }
 0x387   : > { %8956 = vst [vmem:[#allocation24_spill] sm:$0xff] %v8393_v12  ;;  %v4213_v14 = vmul.f32 %v8957_v53, %v4053_v56  ;;  %v8402_v42 = vmul.f32 0.70710677, %v8393_v12  ;;  %vm3574_vm14 = vcmp.ge.f32.partialorder %v8959_v15, 0.0  ;;  %v3958_v4 = vadd.f32 -0.28449672, %v3926_v10 }
 0x388   : > { %v4308_v28 = vadd.f32 1.0, %v4276_v38  ;;  %v4134_v44 = vmul.f32 %v4102_v24, %v3654_v31  ;;  %v4101_v32 = vsub.f32 0.0, %v3653_v3  ;;  %v3895_v51 = vadd.f32 1.4214138, %v3863_v59  ;;  %v8405_v20 = vpop.eup %6877  ;;  %v8961_v38 = vld [vmem:[#allocation36_spill] sm:$0xff]  ;;  %v8962_v31 = vld [vmem:[#allocation35_spill] sm:$0xff] }
 0x389   : > { %8958 = vst [vmem:[#allocation26_spill] sm:$0xff] %v8402_v42  ;;  %v4245_v19 = vsub.f32 1.0, %v4213_v14  ;;  %6883 = vpow2.f32 %v4189_v9  ;;  %v3990_v56 = vmul.f32 %v8946_v58, %v3958_v4  ;;  %v3685_v11 = vmul.f32 0.3275911, %v3653_v3 }
 0x38a   : > { %v4340_v13 = vmul.f32 %v4308_v28, %v8348_v63  ;;  %v8409_v53 = vpop.eup %6879  ;;  %vm3575_vm15 = vcmp.ge.f32.partialorder %v8961_v38, 0.0  ;;  %v3927_v5 = vmul.f32 %v8952_v25, %v3895_v51  ;;  %v3656_v14 = vand.u32 2147483647, %v8402_v42  ;;  %v8963_v38 = vld [vmem:[#allocation51_spill] sm:$0xff] }
 0x38b   : > { %8960 = vst [vmem:[#allocation8_spill] sm:$0xff] %v8409_v53  ;;  %v4277_v12 = vmul.f32 %v4245_v19, %v3605_v21  ;;  %6885 = vrcp.f32 %v3718_v6  ;;  %v3606_v59 = vsel %vm3574_vm14, 1.0, %v8901_v8  ;;  %v4022_v63 = vadd.f32 0.2548296, %v3990_v56  ;;  %v8964_v56 = vld [vmem:[#allocation32_spill] sm:$0xff] }
 0x38c   : > { %6110 = vmatmul.mubr.f32.gmra.mrb[94].mxu0 %v4340_v13  ;;  %v8418_v24 = vmul.f32 0.5, %v8962_v31  ;;  %v4195_v9 = vmul.f32 1.442695, %v4134_v44  ;;  %v4133_v10 = vmul.f32 %v4101_v32, %v3653_v3  ;;  %v3959_v19 = vadd.f32 -0.28449672, %v3927_v5  ;;  %v8965_v31 = vld [vmem:[#allocation49_spill] sm:$0xff] }
 0x38d   : > { %v4309_v4 = vadd.f32 1.0, %v4277_v12  ;;  %v4054_v21 = vmul.f32 %v8946_v58, %v4022_v63  ;;  %v3717_v28 = vadd.f32 1.0, %v3685_v11  ;;  %v3607_v51 = vsel %vm3575_vm15, 1.0, %v8901_v8  ;;  %v8966_v32 = vld [vmem:[#allocation15_spill] sm:$0xff]  ;;  %v8431_v11 = vpop.eup %6881 }
 0x38e   : > { %v3800_v13 = vmul.f32 1.0614054, %v8963_v38  ;;  %v3991_v15 = vmul.f32 %v8952_v25, %v3959_v19  ;;  %v3688_v42 = vmul.f32 0.3275911, %v3656_v14  ;;  %v8426_v53 = vmul.f32 0.5, %v8964_v56 }
 0x38f   : > { %v4341_v6 = vmul.f32 %v4309_v4, %v8367_v52  ;;  %v4214_v12 = vmul.f32 %v8965_v31, %v4054_v21  ;;  %v4104_v44 = vsub.f32 0.0, %v3656_v14  ;;  %v6545_v58 = vadd.f32 %v8151_v60, %v8966_v32  ;;  %v8968_v31 = vld [vmem:[#allocation34_spill] sm:$0xff] }
 0x390   : > { %v3832_v3 = vadd.f32 -1.4531521, %v3800_v13  ;;  %6887 = vpow2.f32 %v4195_v9  ;;  %v4193_v5 = vmul.f32 1.442695, %v4133_v10  ;;  %v4023_v63 = vadd.f32 0.2548296, %v3991_v15 }
 0x391   : > { %6112 = vmatprep.mubr.f32.mxu0 %v4341_v6  ;;  %v3801_v52 = vmul.f32 1.0614054, %v8166_v35  ;;  %v4246_v4 = vsub.f32 1.0, %v4214_v12  ;;  %6889 = vrcp.f32 %v3717_v28  ;;  %v8436_v56 = vadd.f32 %v8286_v17, %v6545_v58  ;;  %v8971_v28 = vld [vmem:[#allocation57_spill] sm:$0xff] }
 0x392   : > { %v3864_v19 = vmul.f32 %v8963_v38, %v3832_v3  ;;  %v4055_v21 = vmul.f32 %v8952_v25, %v4023_v63  ;;  %v3720_v13 = vadd.f32 1.0, %v3688_v42  ;;  %vm3576_vm1 = vcmp.ge.f32.partialorder %v8968_v31, 0.0 }
 0x393   : > { %8967 = vst [vmem:[#allocation11_spill] sm:$0xff] %v8436_v56  ;;  %v3833_v60 = vadd.f32 -1.4531521, %v3801_v52  ;;  %v8440_v32 = vpop.eup %6883  ;;  %v4278_v9 = vmul.f32 %v4246_v4, %v3606_v59  ;;  %v4136_v10 = vmul.f32 %v4104_v44, %v3656_v14  ;;  %v8443_v15 = vmul.f32 0.70710677, %v8436_v56  ;;  %v8972_v44 = vld [vmem:[#allocation41_spill] sm:$0xff] }
 0x394   : > { %8969 = vst [vmem:[#allocation23_spill] sm:$0xff] %v8440_v32  ;;  %v3896_v6 = vadd.f32 1.4214138, %v3864_v19  ;;  %6891 = vpow2.f32 %v4193_v5  ;;  %v4215_v12 = vmul.f32 %v8971_v28, %v4055_v21  ;;  %v3802_v3 = vmul.f32 1.0614054, %v8137_v57  ;;  %v8978_v56 = vld [vmem:[#allocation45_spill] sm:$0xff] }
 0x395   : > { %8970 = vst [vmem:[#allocation25_spill] sm:$0xff] %v8443_v15  ;;  %v3865_v17 = vmul.f32 %v8166_v35, %v3833_v60  ;;  %v8448_v25 = vpop.eup %6885  ;;  %v4310_v42 = vadd.f32 1.0, %v4278_v9  ;;  %v3608_v58 = vsel %vm3576_vm1, 1.0, %v8901_v8  ;;  %v3655_v14 = vand.u32 2147483647, %v8443_v15  ;;  %v8974_v9 = vld [vmem:[#allocation38_spill] sm:$0xff] }
 0x396   : > { %v3928_v63 = vmul.f32 %v8963_v38, %v3896_v6  ;;  %v4247_v59 = vsub.f32 1.0, %v4215_v12  ;;  %vm3577_vm2 = vcmp.ge.f32.partialorder %v8972_v44, 0.0  ;;  %v3834_v5 = vadd.f32 -1.4531521, %v3802_v3  ;;  %v8975_v44 = vld [vmem:[#allocation39_spill] sm:$0xff] }
 0x397   : > { %v3897_v52 = vadd.f32 1.4214138, %v3865_v17  ;;  %v4342_v4 = vmul.f32 %v4310_v42, %v8384_v18  ;;  %6893 = vrcp.f32 %v3720_v13  ;;  %v8455_v19 = vmul.f32 1.442695, %v4136_v10 }
 0x398   : > { %v3960_v21 = vadd.f32 -0.28449672, %v3928_v63  ;;  %v4279_v31 = vmul.f32 %v4247_v59, %v3607_v51  ;;  %vm3578_vm3 = vcmp.ge.f32.partialorder %v8974_v9, 0.0  ;;  %v3866_v6 = vmul.f32 %v8137_v57, %v3834_v5 }
 0x399   : > { %8973 = vst [vmem:[#allocation10_spill] sm:$0xff] %v8455_v19  ;;  %v3929_v60 = vmul.f32 %v8166_v35, %v3897_v52  ;;  %6113 = vmatmul.mubr.f32.gmra.mrb[96].mxu0 %v4342_v4  ;;  %v3687_v12 = vmul.f32 0.3275911, %v3655_v14  ;;  %v8462_v17 = vmul.f32 0.5, %v8975_v44  ;;  %v3609_v18 = vsel %vm3577_vm2, 1.0, %v8901_v8  ;;  %v8977_v52 = vld [vmem:[#allocation37_spill] sm:$0xff] }
 0x39a   : > { %v3992_v28 = vmul.f32 %v8963_v38, %v3960_v21  ;;  %v8465_v13 = vpop.eup %6887  ;;  %v4311_v10 = vadd.f32 1.0, %v4279_v31  ;;  %v4103_v3 = vsub.f32 0.0, %v3655_v14  ;;  %v3898_v42 = vadd.f32 1.4214138, %v3866_v6 }
 0x39b   : > { %8976 = vst [vmem:[#allocation40_spill] sm:$0xff] %v8465_v13  ;;  %v3961_v51 = vadd.f32 -0.28449672, %v3929_v60  ;;  %v8467_v63 = vpop.eup %6889  ;;  %v8470_v5 = vmul.f32 0.5, %v8977_v52  ;;  %v8473_v4 = vsel %vm3578_vm3, 1.0, %v8901_v8  ;;  %vm3579_vm4 = vcmp.ge.f32.partialorder %v8978_v56, 0.0 }
 0x39c   : > { %v4024_v59 = vadd.f32 0.2548296, %v3992_v28  ;;  %v3803_v21 = vmul.f32 1.0614054, %v8219_v2  ;;  %v4343_v9 = vmul.f32 %v4311_v10, %v8418_v24  ;;  %v3930_v31 = vmul.f32 %v8137_v57, %v3898_v42  ;;  %v8979_v28 = vld [vmem:[#allocation43_spill] sm:$0xff] }
 0x39d   : > { %v3993_v44 = vmul.f32 %v8166_v35, %v3961_v51  ;;  %v3719_v6 = vadd.f32 1.0, %v3687_v12  ;;  %v8482_v15 = vmul.f32 0.5, %v8979_v28  ;;  %v8486_v19 = vmul.f32 %v4103_v3, %v3655_v14  ;;  %v8981_v51 = vld [vmem:[#allocation53_spill] sm:$0xff] }
 0x39e   : > { %v4056_v60 = vmul.f32 %v8963_v38, %v4024_v59  ;;  %v3835_v52 = vadd.f32 -1.4531521, %v3803_v21  ;;  %v8484_v13 = vpop.eup %6891  ;;  %6115 = vmatprep.mubr.f32.mxu0 %v4343_v9  ;;  %v3962_v24 = vadd.f32 -0.28449672, %v3930_v31  ;;  %v3804_v10 = vmul.f32 1.0614054, %v8194_v16 }
 0x39f   : > { %8980 = vst [vmem:[#allocation50_spill] sm:$0xff] %v8484_v13  ;;  %v4025_v45 = vadd.f32 0.2548296, %v3993_v44  ;;  %v8491_v56 = vsel %vm3579_vm4, 1.0, %v8901_v8  ;;  %v3805_v12 = vmul.f32 1.0614054, %v8271_v43  ;;  %6895 = vrcp.f32 %v3719_v6 }
 0x3a0   : > { %v4216_v42 = vmul.f32 %v8981_v51, %v4056_v60  ;;  %v3867_v38 = vmul.f32 %v8219_v2, %v3835_v52  ;;  %v3994_v21 = vmul.f32 %v8137_v57, %v3962_v24  ;;  %v8982_v9 = vld [vmem:[#allocation42_spill] sm:$0xff]  ;;  %v3836_v3 = vadd.f32 -1.4531521, %v3804_v10 }
 0x3a1   : > { %v4057_v59 = vmul.f32 %v8166_v35, %v4025_v45  ;;  %v8498_v14 = vmul.f32 0.5, %v8982_v9  ;;  %v8500_v44 = vpop.eup %6893  ;;  %v3837_v28 = vadd.f32 -1.4531521, %v3805_v12  ;;  %v3806_v32 = vmul.f32 1.0614054, %v8251_v62 }
 0x3a2   : > { %v4248_v31 = vsub.f32 1.0, %v4216_v42  ;;  %v3899_v60 = vadd.f32 1.4214138, %v3867_v38  ;;  %v4026_v13 = vadd.f32 0.2548296, %v3994_v21  ;;  %v3868_v52 = vmul.f32 %v8194_v16, %v3836_v3 }
 0x3a3   : > { %v4217_v51 = vmul.f32 %v8185_v37, %v4057_v59  ;;  %v3869_v24 = vmul.f32 %v8271_v43, %v3837_v28  ;;  %v3807_v10 = vmul.f32 1.0614054, %v8335_v46  ;;  %v3838_v38 = vadd.f32 -1.4531521, %v3806_v32  ;;  %v8983_v59 = vld [vmem:[#allocation44_spill] sm:$0xff] }
 0x3a4   : > { %v4280_v35 = vmul.f32 %v4248_v31, %v3608_v58  ;;  %v3931_v45 = vmul.f32 %v8219_v2, %v3899_v60  ;;  %v4058_v42 = vmul.f32 %v8137_v57, %v4026_v13  ;;  %v3900_v6 = vadd.f32 1.4214138, %v3868_v52 }
 0x3a5   : > { %v4249_v9 = vsub.f32 1.0, %v4217_v51  ;;  %vm3581_vm5 = vcmp.ge.f32.partialorder %v8181_v47, 0.0  ;;  %vm3580_vm6 = vcmp.ge.f32.partialorder %v8983_v59, 0.0  ;;  %v3901_v21 = vadd.f32 1.4214138, %v3869_v24 }
 0x3a6   : > { %v4312_v37 = vadd.f32 1.0, %v4280_v35  ;;  %v3963_v12 = vadd.f32 -0.28449672, %v3931_v45  ;;  %v4218_v58 = vmul.f32 %v8140_v1, %v4058_v42  ;;  %v3932_v31 = vmul.f32 %v8194_v16, %v3900_v6 }
 0x3a7   : > { %v4281_v3 = vmul.f32 %v4249_v9, %v3609_v18  ;;  %v3870_v60 = vmul.f32 %v8251_v62, %v3838_v38  ;;  %v3933_v32 = vmul.f32 %v8271_v43, %v3901_v21  ;;  %v3839_v13 = vadd.f32 -1.4531521, %v3807_v10 }
 0x3a8   : > { %v4344_v28 = vmul.f32 %v4312_v37, %v8426_v53  ;;  %v3995_v57 = vmul.f32 %v8219_v2, %v3963_v12  ;;  %v4250_v52 = vsub.f32 1.0, %v4218_v58  ;;  %v3964_v35 = vadd.f32 -0.28449672, %v3932_v31 }
 0x3a9   : > { %v4313_v51 = vadd.f32 1.0, %v4281_v3  ;;  %v3902_v45 = vadd.f32 1.4214138, %v3870_v60  ;;  %v3965_v18 = vadd.f32 -0.28449672, %v3933_v32  ;;  %v3871_v1 = vmul.f32 %v8335_v46, %v3839_v13  ;;  %v8523_v10 = vpop.eup %6895 }
 0x3aa   : > { %6116 = vmatmul.mubr.f32.gmra.mrb[98].mxu0 %v4344_v28  ;;  %v4027_v24 = vadd.f32 0.2548296, %v3995_v57  ;;  %v3808_v9 = vmul.f32 1.0614054, %v8302_v54  ;;  %v4282_v53 = vmul.f32 %v4250_v52, %v8473_v4  ;;  %v3996_v6 = vmul.f32 %v8194_v16, %v3964_v35 }
 0x3ab   : > { %v4345_v42 = vmul.f32 %v4313_v51, %v8462_v17  ;;  %v3934_v38 = vmul.f32 %v8251_v62, %v3902_v45  ;;  %v3997_v12 = vmul.f32 %v8271_v43, %v3965_v18  ;;  %v3903_v21 = vadd.f32 1.4214138, %v3871_v1 }
 0x3ac   : > { %v4059_v37 = vmul.f32 %v8219_v2, %v4027_v24  ;;  %v3840_v3 = vadd.f32 -1.4531521, %v3808_v9  ;;  %vm3582_vm7 = vcmp.ge.f32.partialorder %v8158_v36, 0.0  ;;  %v4314_v58 = vadd.f32 1.0, %v4282_v53 }
 0x3ad   : > { %6118 = vmatprep.mubr.f32.mxu0 %v4345_v42  ;;  %v3612_v17 = vsel %vm3580_vm6, 1.0, %v8901_v8  ;;  %v4028_v4 = vadd.f32 0.2548296, %v3996_v6  ;;  %v3966_v31 = vadd.f32 -0.28449672, %v3934_v38  ;;  %v3935_v57 = vmul.f32 %v8335_v46, %v3903_v21 }
 0x3ae   : > { %v4219_v60 = vmul.f32 %v8235_v34, %v4059_v37  ;;  %v4029_v28 = vadd.f32 0.2548296, %v3997_v12  ;;  %v3872_v2 = vmul.f32 %v8302_v54, %v3840_v3  ;;  %v4346_v32 = vmul.f32 %v4314_v58, %v8470_v5 }
 0x3af   : > { %v4060_v13 = vmul.f32 %v8194_v16, %v4028_v4  ;;  %v3998_v51 = vmul.f32 %v8251_v62, %v3966_v31  ;;  %v3809_v52 = vmul.f32 1.0614054, %v8389_v27  ;;  %vm3583_vm8 = vcmp.ge.f32.partialorder %v8233_v55, 0.0 }
 0x3b0   : > { %v4251_v59 = vsub.f32 1.0, %v4219_v60  ;;  %v4061_v35 = vmul.f32 %v8271_v43, %v4029_v28  ;;  %v3967_v45 = vadd.f32 -0.28449672, %v3935_v57  ;;  %v3904_v34 = vadd.f32 1.4214138, %v3872_v2  ;;  %6119 = vmatmul.mubr.f32.gmra.mrb[100].mxu0 %v4346_v32 }
 0x3b1   : > { %v4220_v24 = vmul.f32 %v8202_v50, %v4060_v13  ;;  %v3613_v5 = vsel %vm3581_vm5, 1.0, %v8901_v8  ;;  %v4030_v18 = vadd.f32 0.2548296, %v3998_v51  ;;  %v3841_v16 = vadd.f32 -1.4531521, %v3809_v52 }
 0x3b2   : > { %v4283_v1 = vmul.f32 %v4251_v59, %v8491_v56  ;;  %v4221_v9 = vmul.f32 %v8291_v29, %v4061_v35  ;;  %v3999_v42 = vmul.f32 %v8335_v46, %v3967_v45  ;;  %v3936_v53 = vmul.f32 %v8302_v54, %v3904_v34 }
 0x3b3   : > { %v4252_v43 = vsub.f32 1.0, %v4220_v24  ;;  %v4062_v6 = vmul.f32 %v8251_v62, %v4030_v18  ;;  %v3873_v38 = vmul.f32 %v8389_v27, %v3841_v16  ;;  %v3810_v50 = vmul.f32 1.0614054, %v8355_v48 }
 0x3b4   : > { %vm3584_vm9 = vcmp.ge.f32.partialorder %v8205_v23, 0.0  ;;  %v4315_v47 = vadd.f32 1.0, %v4283_v1  ;;  %v4253_v37 = vsub.f32 1.0, %v4221_v9  ;;  %v4031_v12 = vadd.f32 0.2548296, %v3999_v42 }
 0x3b5   : > { %v3968_v21 = vadd.f32 -0.28449672, %v3936_v53  ;;  %v4284_v56 = vmul.f32 %v4252_v43, %v3612_v17  ;;  %v4222_v29 = vmul.f32 %v8257_v7, %v4062_v6  ;;  %v3905_v3 = vadd.f32 1.4214138, %v3873_v38 }
 0x3b6   : > { %v3842_v58 = vadd.f32 -1.4531521, %v3810_v50  ;;  %v4347_v4 = vmul.f32 %v4315_v47, %v8482_v15  ;;  %v4285_v31 = vmul.f32 %v4253_v37, %v3613_v5  ;;  %v4063_v62 = vmul.f32 %v8335_v46, %v4031_v12 }
 0x3b7   : > { %v4000_v60 = vmul.f32 %v8302_v54, %v3968_v21  ;;  %vm3585_vm10 = vcmp.ge.f32.partialorder %v8275_v0, 0.0  ;;  %v4316_v28 = vadd.f32 1.0, %v4284_v56  ;;  %v4254_v57 = vsub.f32 1.0, %v4222_v29 }
 0x3b8   : > { %v3937_v2 = vmul.f32 %v8389_v27, %v3905_v3  ;;  %v3874_v32 = vmul.f32 %v8355_v48, %v3842_v58  ;;  %6121 = vmatprep.mubr.f32.mxu0 %v4347_v4  ;;  %v4317_v17 = vadd.f32 1.0, %v4285_v31  ;;  %v3614_v7 = vsel %vm3582_vm7, 1.0, %v8901_v8 }
 0x3b9   : > { %v4223_v15 = vmul.f32 %v8350_v33, %v4063_v62  ;;  %v4032_v13 = vadd.f32 0.2548296, %v4000_v60  ;;  %v4348_v46 = vmul.f32 %v4316_v28, %v8498_v14  ;;  %v4286_v51 = vmul.f32 %v4254_v57, %v3614_v7 }
 0x3ba   : > { %v3969_v52 = vadd.f32 -0.28449672, %v3937_v2  ;;  %v3906_v59 = vadd.f32 1.4214138, %v3874_v32  ;;  %v4349_v35 = vmul.f32 %v4317_v17, %v8212_v39  ;;  %v3811_v24 = vmul.f32 1.0614054, %v8431_v11 }
 0x3bb   : > { %v4255_v45 = vsub.f32 1.0, %v4223_v15  ;;  %v4064_v34 = vmul.f32 %v8302_v54, %v4032_v13  ;;  %vm3586_vm11 = vcmp.ge.f32.partialorder %v8242_v61, 0.0  ;;  %6122 = vmatmul.mubr.f32.gmra.mrb[102].mxu0 %v4348_v46  ;;  %v4318_v36 = vadd.f32 1.0, %v4286_v51  ;;  %v8984_v17 = vld [vmem:[#allocation20_spill] sm:$0xff]  ;;  %v8985_v46 = vld [vmem:[#allocation7_spill] sm:$0xff] }
 0x3bc   : > { %v3615_v33 = vsel %vm3583_vm8, 1.0, %v8901_v8  ;;  %v4001_v14 = vmul.f32 %v8389_v27, %v3969_v52  ;;  %v3938_v5 = vmul.f32 %v8355_v48, %v3906_v59  ;;  %6124 = vmatprep.mubr.f32.mxu0 %v4349_v35  ;;  %v3843_v16 = vadd.f32 -1.4531521, %v3811_v24 }
 0x3bd   : > { %v4287_v18 = vmul.f32 %v4255_v45, %v3615_v33  ;;  %v4224_v39 = vmul.f32 %v8322_v41, %v4064_v34  ;;  %v3812_v54 = vmul.f32 1.0614054, %v8405_v20  ;;  %v4197_v1 = vmul.f32 1.442695, %v8486_v19 }
 0x3be   : > { %v4350_v9 = vmul.f32 %v4318_v36, %v8209_v22  ;;  %v4033_v42 = vadd.f32 0.2548296, %v4001_v14  ;;  %v3970_v53 = vadd.f32 -0.28449672, %v3938_v5  ;;  %v3875_v6 = vmul.f32 %v8431_v11, %v3843_v16  ;;  %v8986_v5 = vld [vmem:[#allocation17_spill] sm:$0xff] }
 0x3bf   : > { %v4319_v43 = vadd.f32 1.0, %v4287_v18  ;;  %v4256_v55 = vsub.f32 1.0, %v4224_v39  ;;  %v3844_v38 = vadd.f32 -1.4531521, %v3812_v54  ;;  %v3616_v50 = vsel %vm3584_vm9, 1.0, %v8901_v8 }
 0x3c0   : > { %6125 = vmatmul.mubr.f32.gmra.mrb[104].mxu0 %v4350_v9  ;;  %v4065_v41 = vmul.f32 %v8389_v27, %v4033_v42  ;;  %v4002_v47 = vmul.f32 %v8355_v48, %v3970_v53  ;;  %v3813_v19 = vmul.f32 1.0614054, %v8467_v63  ;;  %v3907_v12 = vadd.f32 1.4214138, %v3875_v6 }
 0x3c1   : > { %v4351_v22 = vmul.f32 %v4319_v43, %v8259_v30  ;;  %v4288_v37 = vmul.f32 %v4256_v55, %v3616_v50  ;;  %v3876_v21 = vmul.f32 %v8405_v20, %v3844_v38  ;;  %v3814_v58 = vmul.f32 1.0614054, %v8448_v25  ;;  %v8987_v38 = vld [vmem:[#allocation23_spill] sm:$0xff] }
 0x3c2   : > { %v4225_v56 = vmul.f32 %v8395_v49, %v4065_v41  ;;  %v4034_v29 = vadd.f32 0.2548296, %v4002_v47  ;;  %v3845_v3 = vadd.f32 -1.4531521, %v3813_v19  ;;  %v3617_v27 = vsel %vm3585_vm10, 1.0, %v8901_v8 }
 0x3c3   : > { %6127 = vmatprep.mubr.f32.mxu0 %v4351_v22  ;;  %v4320_v23 = vadd.f32 1.0, %v4288_v37  ;;  %v3939_v4 = vmul.f32 %v8431_v11, %v3907_v12  ;;  %v3908_v31 = vadd.f32 1.4214138, %v3876_v21  ;;  %v3846_v28 = vadd.f32 -1.4531521, %v3814_v58  ;;  %v8988_v22 = vld [vmem:[#allocation19_spill] sm:$0xff] }
 0x3c4   : > { %v4257_v30 = vsub.f32 1.0, %v4225_v56  ;;  %v4066_v62 = vmul.f32 %v8355_v48, %v4034_v29  ;;  %v3877_v60 = vmul.f32 %v8467_v63, %v3845_v3  ;;  %vm3587_vm12 = vcmp.ge.f32.partialorder %v8326_v26, 0.0  ;;  %v8990_v56 = vld [vmem:[#allocation8_spill] sm:$0xff] }
 0x3c5   : > { %v4352_v49 = vmul.f32 %v4320_v23, %v8238_v40  ;;  %v3971_v57 = vadd.f32 -0.28449672, %v3939_v4  ;;  %v3940_v2 = vmul.f32 %v8405_v20, %v3908_v31  ;;  %v3815_v32 = vmul.f32 1.0614054, %v8523_v10  ;;  %v8991_v23 = vld [vmem:[#allocation10_spill] sm:$0xff] }
 0x3c6   : > { %v4289_v0 = vmul.f32 %v4257_v30, %v3617_v27  ;;  %v4226_v7 = vmul.f32 %v8984_v17, %v4066_v62  ;;  %v3909_v15 = vadd.f32 1.4214138, %v3877_v60  ;;  %v3878_v13 = vmul.f32 %v8448_v25, %v3846_v28  ;;  %v8992_v28 = vld [vmem:[#allocation18_spill] sm:$0xff] }
 0x3c7   : > { %vm3588_vm13 = vcmp.ge.f32.partialorder %v8985_v46, 0.0  ;;  %6128 = vmatmul.mubr.f32.gmra.mrb[106].mxu0 %v4352_v49  ;;  %v3618_v48 = vsel %vm3586_vm11, 1.0, %v8901_v8  ;;  %v4003_v40 = vmul.f32 %v8431_v11, %v3971_v57  ;;  %v3972_v51 = vadd.f32 -0.28449672, %v3940_v2  ;;  %v8993_v2 = vld [vmem:[#allocation50_spill] sm:$0xff] }
 0x3c8   : > { %v3847_v52 = vadd.f32 -1.4531521, %v3815_v32  ;;  %v4321_v59 = vadd.f32 1.0, %v4289_v0  ;;  %v4258_v35 = vsub.f32 1.0, %v4226_v7  ;;  %v3941_v45 = vmul.f32 %v8467_v63, %v3909_v15  ;;  %v8994_v15 = vld [vmem:[#allocation22_spill] sm:$0xff] }
 0x3c9   : > { %v3910_v34 = vadd.f32 1.4214138, %v3878_v13  ;;  %v4035_v24 = vadd.f32 0.2548296, %v4003_v40  ;;  %v4004_v36 = vmul.f32 %v8405_v20, %v3972_v51  ;;  %v3816_v14 = vmul.f32 1.0614054, %v8500_v44 }
 0x3ca   : > { %v3879_v33 = vmul.f32 %v8523_v10, %v3847_v52  ;;  %v4353_v18 = vmul.f32 %v4321_v59, %v8986_v5  ;;  %v4290_v61 = vmul.f32 %v4258_v35, %v3618_v48  ;;  %v3973_v39 = vadd.f32 -0.28449672, %v3941_v45  ;;  %v8995_v40 = vld [vmem:[#allocation40_spill] sm:$0xff]  ;;  %v8996_v45 = vld [vmem:[#allocation25_spill] sm:$0xff] }
 0x3cb   : > { %v3942_v16 = vmul.f32 %v8448_v25, %v3910_v34  ;;  %v4067_v54 = vmul.f32 %v8431_v11, %v4035_v24  ;;  %v4036_v9 = vadd.f32 0.2548296, %v4004_v36  ;;  %v3848_v53 = vadd.f32 -1.4531521, %v3816_v14  ;;  %v8989_v11 = vld [vmem:[#allocation16_spill] sm:$0xff]  ;;  %v8997_v36 = vld [vmem:[#allocation9_spill] sm:$0xff] }
 0x3cc   : > { %v3911_v42 = vadd.f32 1.4214138, %v3879_v33  ;;  %6897 = vpow2.f32 %v4197_v1  ;;  %6130 = vmatprep.mubr.f32.mxu0 %v4353_v18  ;;  %v4322_v43 = vadd.f32 1.0, %v4290_v61  ;;  %v4005_v55 = vmul.f32 %v8467_v63, %v3973_v39  ;;  %v8998_v61 = vld [vmem:[#allocation21_spill] sm:$0xff] }
 0x3cd   : > { %v3974_v6 = vadd.f32 -0.28449672, %v3942_v16  ;;  %v4227_v50 = vmul.f32 %v8987_v38, %v4067_v54  ;;  %v4068_v41 = vmul.f32 %v8405_v20, %v4036_v9  ;;  %v3880_v19 = vmul.f32 %v8500_v44, %v3848_v53  ;;  %v8999_v53 = vld [vmem:[#allocation6_spill] sm:$0xff] }
 0x3ce   : > { %v3943_v47 = vmul.f32 %v8523_v10, %v3911_v42  ;;  %vm3589_vm14 = vcmp.ge.f32.partialorder %v8988_v22, 0.0  ;;  %v4354_v37 = vmul.f32 %v4322_v43, %v8989_v11  ;;  %v4037_v12 = vadd.f32 0.2548296, %v4005_v55  ;;  %v9001_v22 = vld [vmem:[#allocation11_spill] sm:$0xff] }
 0x3cf   : > { %v4006_v1 = vmul.f32 %v8448_v25, %v3974_v6  ;;  %v4259_v21 = vsub.f32 1.0, %v4227_v50  ;;  %v4228_v29 = vmul.f32 %v8990_v56, %v4068_v41  ;;  %v3912_v58 = vadd.f32 1.4214138, %v3880_v19  ;;  %v9000_v50 = vld [vmem:[#allocation26_spill] sm:$0xff]  ;;  %v9002_v56 = vld [vmem:[#allocation24_spill] sm:$0xff] }
 0x3d0   : > { %v3975_v3 = vadd.f32 -0.28449672, %v3943_v47  ;;  %6899 = vpow2.f32 %v8991_v23  ;;  %6131 = vmatmul.mubr.f32.gmra.mrb[108].mxu0 %v4354_v37  ;;  %v3619_v20 = vsel %vm3587_vm12, 1.0, %v8901_v8  ;;  %v4069_v27 = vmul.f32 %v8467_v63, %v4037_v12  ;;  %v8657_v23 = vld [vmem:[%s8771_s6] ss:$0 sm:$0xff] }
 0x3d1   : > { %v4038_v4 = vadd.f32 0.2548296, %v4006_v1  ;;  %v4291_v31 = vmul.f32 %v4259_v21, %v3619_v20  ;;  %v4260_v30 = vsub.f32 1.0, %v4228_v29  ;;  %v3944_v60 = vmul.f32 %v8500_v44, %v3912_v58 }
 0x3d2   : > { %v4007_v62 = vmul.f32 %v8523_v10, %v3975_v3  ;;  %v3523_v49 = vmul.f32 0.5, %v8992_v28  ;;  %v3620_v57 = vsel %vm3588_vm13, 1.0, %v8901_v8  ;;  %v4229_v32 = vmul.f32 %v8993_v2, %v4069_v27 }
 0x3d3   : > { %v4070_v26 = vmul.f32 %v8448_v25, %v4038_v4  ;;  %v4323_v0 = vadd.f32 1.0, %v4291_v31  ;;  %v4292_v17 = vmul.f32 %v4260_v30, %v3620_v57  ;;  %v3976_v7 = vadd.f32 -0.28449672, %v3944_v60 }
 0x3d4   : > { %v4039_v63 = vadd.f32 0.2548296, %v4007_v62  ;;  %vm3590_vm15 = vcmp.ge.f32.partialorder %v8994_v15, 0.0  ;;  %v3621_v13 = vsel %vm3589_vm14, 1.0, %v8901_v8  ;;  %v4261_v48 = vsub.f32 1.0, %v4229_v32 }
 0x3d5   : > { %v4230_v51 = vmul.f32 %v8995_v40, %v4070_v26  ;;  %v4355_v52 = vmul.f32 %v4323_v0, %v3523_v49  ;;  %v4324_v46 = vadd.f32 1.0, %v4292_v17  ;;  %v4008_v35 = vmul.f32 %v8500_v44, %v3976_v7 }
 0x3d6   : > { %v4071_v59 = vmul.f32 %v8523_v10, %v4039_v63  ;;  %v6898_v25 = vpop.eup %6897  ;;  %vm3591_vm1 = vcmp.ge.f32.partialorder %v8996_v45, 0.0  ;;  %v4293_v34 = vmul.f32 %v4261_v48, %v3621_v13  ;;  %v3622_v14 = vsel %vm3590_vm15, 1.0, %v8901_v8 }
 0x3d7   : > { %v4262_v24 = vsub.f32 1.0, %v4230_v51  ;;  %6133 = vmatprep.mubr.f32.mxu0 %v4355_v52  ;;  %v4356_v33 = vmul.f32 %v4324_v46, %v8997_v36  ;;  %v4040_v18 = vadd.f32 0.2548296, %v4008_v35  ;;  %v3525_v39 = vmul.f32 0.5, %v8998_v61 }
 0x3d8   : > { %v4231_v5 = vmul.f32 %v6898_v25, %v4071_v59  ;;  %v4325_v16 = vadd.f32 1.0, %v4293_v34  ;;  %v3526_v43 = vmul.f32 0.5, %v8999_v53  ;;  %v3623_v38 = vsel %vm3591_vm1, 1.0, %v8901_v8 }
 0x3d9   : > { %v4294_v54 = vmul.f32 %v4262_v24, %v3622_v14  ;;  %6134 = vmatmul.mubr.f32.gmra.mrb[110].mxu0 %v4356_v33  ;;  %v4072_v9 = vmul.f32 %v8500_v44, %v4040_v18  ;;  %vm3592_vm2 = vcmp.ge.f32.partialorder %v9000_v50, 0.0  ;;  %v3527_v11 = vmul.f32 0.5, %v9001_v22 }
 0x3da   : > { %v4263_v10 = vsub.f32 1.0, %v4231_v5  ;;  %v6900_v42 = vpop.eup %6899  ;;  %v4357_v55 = vmul.f32 %v4325_v16, %v3525_v39  ;;  %v3624_v12 = vsel %vm3592_vm2, 1.0, %v8901_v8  ;;  %v3528_v29 = vmul.f32 0.5, %v9002_v56 }
 0x3db   : > { %v4326_v6 = vadd.f32 1.0, %v4294_v54  ;;  %v4232_v47 = vmul.f32 %v6900_v42, %v4072_v9 }
 0x3dc   : > { %v4295_v41 = vmul.f32 %v4263_v10, %v3623_v38  ;;  %6136 = vmatprep.mubr.f32.mxu0 %v4357_v55 }
 0x3dd   : > { %v4358_v19 = vmul.f32 %v4326_v6, %v3526_v43  ;;  %v4264_v44 = vsub.f32 1.0, %v4232_v47 }
 0x3de   : > { %v4327_v37 = vadd.f32 1.0, %v4295_v41 }
 0x3df   : > { %6137 = vmatmul.mubr.f32.gmra.mrb[112].mxu0 %v4358_v19  ;;  %v4296_v21 = vmul.f32 %v4264_v44, %v3624_v12 }
 0x3e0   : > { %v4359_v1 = vmul.f32 %v4327_v37, %v3527_v11 }
 0x3e1   : > { %v4328_v3 = vadd.f32 1.0, %v4296_v21 }
 0x3e2   : > { %6139 = vmatprep.mubr.f32.mxu0 %v4359_v1 }
 0x3e3   : > { %v4360_v58 = vmul.f32 %v4328_v3, %v3528_v29 }
 0x3e5   : > { %6140 = vmatmul.mubr.f32.gmra.mrb[114].mxu0 %v4360_v58 }
 0x41d   : > { %v6096_v8 = vpop.f32.mrb[84].mxu0 }
 0x41e   : > { %v4456_v20 = vadd.f32 %v6096_v8, %v8657_v23  ;;  %v4450_v27 = vpop.f32.mrb[85].mxu0 }
 0x41f   : > { %v4451_v4 = vadd.f32 %v8657_v23, %v4450_v27 }
 0x420   : > { %4610 = vst.msk [vmem:[%s8664_s21 + $0x8] sm:$0xff] %vm341_vm0, %v4456_v20 }
 0x421   : > { %4609 = vst.msk [vmem:[%s8664_s21] sm:$0xff] %vm341_vm0, %v4451_v4 }
 0x426   : > { %v6099_v31 = vpop.f32.mrb[86].mxu0 }
 0x427   : > { %v4466_v30 = vadd.f32 %v6099_v31, %v8657_v23  ;;  %v4460_v62 = vpop.f32.mrb[87].mxu0 }
 0x428   : > { %v4461_v60 = vadd.f32 %v8657_v23, %v4460_v62 }
 0x429   : > { %4612 = vst.msk [vmem:[%s8664_s21 + $0x18] sm:$0xff] %vm341_vm0, %v4466_v30 }
 0x42a   : > { %4611 = vst.msk [vmem:[%s8664_s21 + $0x10] sm:$0xff] %vm341_vm0, %v4461_v60  ;;  %v6102_v28 = vpop.f32.mrb[88].mxu0 }
 0x42b   : > { %v4476_v49 = vadd.f32 %v6102_v28, %v8657_v23  ;;  %v4470_v57 = vpop.f32.mrb[89].mxu0 }
 0x42c   : > { %v4471_v2 = vadd.f32 %v8657_v23, %v4470_v57 }
 0x42d   : > { %4614 = vst.msk [vmem:[%s8664_s21 + $0x28] sm:$0xff] %vm341_vm0, %v4476_v49 }
 0x42e   : > { %4613 = vst.msk [vmem:[%s8664_s21 + $0x20] sm:$0xff] %vm341_vm0, %v4471_v2 }
 0x441   : > { %v6105_v32 = vpop.f32.mrb[90].mxu0 }
 0x442   : > { %v4486_v26 = vadd.f32 %v6105_v32, %v8657_v23  ;;  %v4480_v0 = vpop.f32.mrb[91].mxu0 }
 0x443   : > { %v4481_v17 = vadd.f32 %v8657_v23, %v4480_v0 }
 0x444   : > { %4616 = vst.msk [vmem:[%s8664_s21 + $0x38] sm:$0xff] %vm341_vm0, %v4486_v26 }
 0x445   : > { %4615 = vst.msk [vmem:[%s8664_s21 + $0x30] sm:$0xff] %vm341_vm0, %v4481_v17 }
 0x44f   : > { %v6108_v63 = vpop.f32.mrb[92].mxu0 }
 0x450   : > { %v4496_v7 = vadd.f32 %v6108_v63, %v8657_v23  ;;  %v4490_v15 = vpop.f32.mrb[93].mxu0 }
 0x451   : > { %v4491_v13 = vadd.f32 %v8657_v23, %v4490_v15 }
 0x452   : > { %4618 = vst.msk [vmem:[%s8664_s21 + $0x48] sm:$0xff] %vm341_vm0, %v4496_v7 }
 0x453   : > { %4617 = vst.msk [vmem:[%s8664_s21 + $0x40] sm:$0xff] %vm341_vm0, %v4491_v13 }
 0x45f   : > { %v6111_v48 = vpop.f32.mrb[94].mxu0 }
 0x460   : > { %v4506_v40 = vadd.f32 %v6111_v48, %v8657_v23  ;;  %v4500_v51 = vpop.f32.mrb[95].mxu0 }
 0x461   : > { %v4501_v52 = vadd.f32 %v8657_v23, %v4500_v51 }
 0x462   : > { %4620 = vst.msk [vmem:[%s8664_s21 + $0x58] sm:$0xff] %vm341_vm0, %v4506_v40 }
 0x463   : > { %4619 = vst.msk [vmem:[%s8664_s21 + $0x50] sm:$0xff] %vm341_vm0, %v4501_v52 }
 0x46c   : > { %v6114_v46 = vpop.f32.mrb[96].mxu0 }
 0x46d   : > { %v4516_v59 = vadd.f32 %v6114_v46, %v8657_v23  ;;  %v4510_v35 = vpop.f32.mrb[97].mxu0 }
 0x46e   : > { %v4511_v25 = vadd.f32 %v8657_v23, %v4510_v35 }
 0x46f   : > { %4622 = vst.msk [vmem:[%s8664_s21 + $0x68] sm:$0xff] %vm341_vm0, %v4516_v59 }
 0x470   : > { %4621 = vst.msk [vmem:[%s8664_s21 + $0x60] sm:$0xff] %vm341_vm0, %v4511_v25 }
 0x47d   : > { %v6117_v45 = vpop.f32.mrb[98].mxu0 }
 0x47e   : > { %v4526_v34 = vadd.f32 %v6117_v45, %v8657_v23  ;;  %v4520_v24 = vpop.f32.mrb[99].mxu0 }
 0x47f   : > { %v4521_v36 = vadd.f32 %v8657_v23, %v4520_v24 }
 0x480   : > { %4624 = vst.msk [vmem:[%s8664_s21 + $0x78] sm:$0xff] %vm341_vm0, %v4526_v34 }
 0x481   : > { %4623 = vst.msk [vmem:[%s8664_s21 + $0x70] sm:$0xff] %vm341_vm0, %v4521_v36 }
 0x483   : > { %v6120_v33 = vpop.f32.mrb[100].mxu0 }
 0x484   : > { %v4536_v14 = vadd.f32 %v6120_v33, %v8657_v23  ;;  %v4530_v5 = vpop.f32.mrb[101].mxu0 }
 0x485   : > { %v4531_v18 = vadd.f32 %v8657_v23, %v4530_v5 }
 0x486   : > { %4626 = vst.msk [vmem:[%s8664_s21 + $0x88] sm:$0xff] %vm341_vm0, %v4536_v14 }
 0x487   : > { %4625 = vst.msk [vmem:[%s8664_s21 + $0x80] sm:$0xff] %vm341_vm0, %v4531_v18 }
 0x48e   : > { %v6123_v61 = vpop.f32.mrb[102].mxu0 }
 0x48f   : > { %v4546_v39 = vadd.f32 %v6123_v61, %v8657_v23  ;;  %v4540_v16 = vpop.f32.mrb[103].mxu0 }
 0x490   : > { %v4541_v54 = vadd.f32 %v8657_v23, %v4540_v16 }
 0x491   : > { %4628 = vst.msk [vmem:[%s8664_s21 + $0x98] sm:$0xff] %vm341_vm0, %v4546_v39 }
 0x492   : > { %4627 = vst.msk [vmem:[%s8664_s21 + $0x90] sm:$0xff] %vm341_vm0, %v4541_v54 }
 0x493   : > { %v6126_v10 = vpop.f32.mrb[104].mxu0 }
 0x494   : > { %v4556_v9 = vadd.f32 %v6126_v10, %v8657_v23  ;;  %v4550_v42 = vpop.f32.mrb[105].mxu0 }
 0x495   : > { %v4551_v53 = vadd.f32 %v8657_v23, %v4550_v42 }
 0x496   : > { %4630 = vst.msk [vmem:[%s8664_s21 + $0xa8] sm:$0xff] %vm341_vm0, %v4556_v9 }
 0x497   : > { %4629 = vst.msk [vmem:[%s8664_s21 + $0xa0] sm:$0xff] %vm341_vm0, %v4551_v53 }
 0x49a   : > { %v6129_v43 = vpop.f32.mrb[106].mxu0 }
 0x49b   : > { %v4566_v55 = vadd.f32 %v6129_v43, %v8657_v23  ;;  %v4560_v6 = vpop.f32.mrb[107].mxu0 }
 0x49c   : > { %v4561_v38 = vadd.f32 %v8657_v23, %v4560_v6 }
 0x49d   : > { %4632 = vst.msk [vmem:[%s8664_s21 + $0xb8] sm:$0xff] %vm341_vm0, %v4566_v55 }
 0x49e   : > { %4631 = vst.msk [vmem:[%s8664_s21 + $0xb0] sm:$0xff] %vm341_vm0, %v4561_v38 }
 0x4a3   : > { %v6132_v50 = vpop.f32.mrb[108].mxu0 }
 0x4a4   : > { %v4576_v41 = vadd.f32 %v6132_v50, %v8657_v23  ;;  %v4570_v47 = vpop.f32.mrb[109].mxu0 }
 0x4a5   : > { %v4571_v19 = vadd.f32 %v8657_v23, %v4570_v47 }
 0x4a6   : > { %4634 = vst.msk [vmem:[%s8664_s21 + $0xc8] sm:$0xff] %vm341_vm0, %v4576_v41 }
 0x4a7   : > { %4633 = vst.msk [vmem:[%s8664_s21 + $0xc0] sm:$0xff] %vm341_vm0, %v4571_v19 }
 0x4ac   : > { %v6135_v22 = vpop.f32.mrb[110].mxu0 }
 0x4ad   : > { %v4586_v11 = vadd.f32 %v6135_v22, %v8657_v23  ;;  %v4580_v37 = vpop.f32.mrb[111].mxu0 }
 0x4ae   : > { %v4581_v44 = vadd.f32 %v8657_v23, %v4580_v37 }
 0x4af   : > { %4636 = vst.msk [vmem:[%s8664_s21 + $0xd8] sm:$0xff] %vm341_vm0, %v4586_v11 }
 0x4b0   : > { %4635 = vst.msk [vmem:[%s8664_s21 + $0xd0] sm:$0xff] %vm341_vm0, %v4581_v44 }
 0x4b2   : > { %v6138_v12 = vpop.f32.mrb[112].mxu0 }
 0x4b3   : > { %v4596_v1 = vadd.f32 %v6138_v12, %v8657_v23  ;;  %v4590_v21 = vpop.f32.mrb[113].mxu0 }
 0x4b4   : > { %v4591_v56 = vadd.f32 %v8657_v23, %v4590_v21 }
 0x4b5   : > { %4638 = vst.msk [vmem:[%s8664_s21 + $0xe8] sm:$0xff] %vm341_vm0, %v4596_v1 }
 0x4b6   : > { %4637 = vst.msk [vmem:[%s8664_s21 + $0xe0] sm:$0xff] %vm341_vm0, %v4591_v56 }
 0x4b8   : > { %v6141_v29 = vpop.f32.mrb[114].mxu0 }
 0x4b9   : > { %v4606_v3 = vadd.f32 %v6141_v29, %v8657_v23  ;;  %v4600_v58 = vpop.f32.mrb[115].mxu0 }
 0x4ba   : > { %v4601_v8 = vadd.f32 %v8657_v23, %v4600_v58 }
 0x4bb   : > { %4640 = vst.msk [vmem:[%s8664_s21 + $0xf8] sm:$0xff] %vm341_vm0, %v4606_v3 }
 0x4bc   : > { %4639 = vst.msk [vmem:[%s8664_s21 + $0xf0] sm:$0xff] %vm341_vm0, %v4601_v8 }
 0x4bd PF: > { %s18_s24 = sadd.s32 1, %s6941_s24  }
 0x4be   : > { %p15_p3 = scmp.ge.s32.totalorder %s18_s24, 4  }
 0x4c0   :  { %17 = sbr.rel (!%p15_p3) target bundleno = 1 (0x1), region = 93 }
 0x4c7   :  { %4662 = vsyncpa [#allocation4], 1 }
 0x4c8   :  { %4664 = vsyncpa [#allocation4 + $0x1], 1 }

</bundles_post_ra>
